<compile_context>
chip_gen: v7x
topology: tpu7x:2x2x1
jax: 0.10.0
libtpu: 0.0.40
codegen_flags: <defaults>
</compile_context>

<pallas_src>
from functools import partial

import jax
import jax.numpy as jnp
from jax.experimental import pallas as pl
from jax.experimental.pallas import tpu as pltpu


def _tpi_kernel(x_ref,
                ag_ref, cg_ref, av_ref, cv_ref,
                wih_ref, bx_ref, whh_ref, bhn_ref,
                wt_ref, wtT_ref, bt_ref,
                wqk_ref, cqk_ref, wvo_ref, cvo_ref,
                out_ref,
                hall_scr, gx_scr,
                *, approx_recip=True):
    T, tm = x_ref.shape
    C = ag_ref.shape[0]
    H3, H = whh_ref.shape           # (3H, H)
    H2 = 2 * H

    xall = x_ref[...]                                   # (T, tm)  rows on lanes

    # Hoist column -> tile broadcasts out of the unrolled loops (no CSE in-loop).
    ag = jnp.broadcast_to(ag_ref[...], (C, tm))
    cg = jnp.broadcast_to(cg_ref[...], (C, tm))
    av = jnp.broadcast_to(av_ref[...], (C, tm))
    cv = jnp.broadcast_to(cv_ref[...], (C, tm))
    bx = jnp.broadcast_to(bx_ref[...], (H3, tm))        # bih (+ bhh folded for r/z)
    bhn = jnp.broadcast_to(bhn_ref[...], (H, tm))       # bhh, n-slice only
    wih_t = wih_ref[...]                                # (3H, C)
    whh_t = whh_ref[...]                                # (3H, H)

    # ---- phase 1: input path (fused Linear(1,C)+GLU -> wih matmul) ----------
    # Independent of the recurrence; pipelines freely against phase 2's MXU/EUP.
    for t in range(T):
        xt = xall[t:t + 1, :]                           # (1, tm)
        g_t = jax.nn.sigmoid(xt * ag + cg) * (xt * av + cv)               # (C, tm)
        gx_scr[t] = jnp.dot(wih_t, g_t, preferred_element_type=jnp.float32) + bx

    # ---- phase 2: GRU recurrence (only whh@h + gate math on critical path) --
    h = jnp.zeros((H, tm), jnp.float32)
    for t in range(T):
        gx = gx_scr[t]                                                     # (3H, tm)
        gh = jnp.dot(whh_t, h, preferred_element_type=jnp.float32)         # (3H, tm)
        rz = jax.nn.sigmoid(gx[:H2] + gh[:H2])
        r = rz[:H]
        z = rz[H:]
        n = jnp.tanh(gx[H2:] + r * (gh[H2:] + bhn))
        h = n + z * (h - n)
        hall_scr[t] = h                                 # static-index store

    # ---- phase 3: attention, q/k/v/out projections folded (length-1 query) --
    q = jnp.dot(wqk_ref[...], h, preferred_element_type=jnp.float32) + cqk_ref[...]  # (H, tm)
    qsum = jnp.sum(q, axis=0, keepdims=True)            # (1, tm)
    bt = bt_ref[...]                                    # (O, 1)

    hall = hall_scr[...]                                # (T, H, tm)

    # scores s[o,m] = sum_t wt[o,t] * (sum_h q[h,m] hall[t,h,m]) + bt[o]*qsum[m]
    u_all = jnp.sum(q[None, :, :] * hall, axis=1)       # (T, tm)  batched reduce
    s = jnp.dot(wt_ref[...], u_all, preferred_element_type=jnp.float32) + bt * qsum

    s = s - jnp.max(s, axis=0, keepdims=True)
    e = jnp.exp(s)
    denom = jnp.sum(e, axis=0, keepdims=True)
    inv = pl.reciprocal(denom, approx=True) if approx_recip else (1.0 / denom)
    attn = e * inv                                      # (O, tm)

    # ctx[h,m] = sum_t (wt^T attn)[t,m] hall[t,h,m] + sum_o attn[o,m] bt[o]
    wtat = jnp.dot(wtT_ref[...], attn, preferred_element_type=jnp.float32)  # (T, tm)
    ctx = jnp.sum(wtat[:, None, :] * hall, axis=0)      # (H, tm)  leading-axis adds
    ctx = ctx + jnp.sum(bt * attn, axis=0, keepdims=True)

    out_ref[...] = (jnp.dot(wvo_ref[...], ctx, preferred_element_type=jnp.float32)
                    + cvo_ref[...])                     # (E, tm), lane-dense store


def _fuse_params(P):
    """Fold Linear(1,C) through the GLU, GRU biases, and q/k/v/out through the MHA."""
    f = lambda a: jnp.asarray(a, jnp.float32)
    C = P["wg"].shape[0]
    H = P["whh"].shape[0]
    E = P["wo"].shape[0]
    scale = 1.0 / float(P["wq"].shape[1]) ** 0.5

    ag = (f(P["w1"]) @ f(P["wg"])).reshape(C, 1)
    cg = (f(P["b1"]) @ f(P["wg"]) + f(P["bg"])).reshape(C, 1)
    av = (f(P["w1"]) @ f(P["wvg"])).reshape(C, 1)
    cv = (f(P["b1"]) @ f(P["wvg"]) + f(P["bvg"])).reshape(C, 1)
    wih_t = f(P["wih"]).T                               # (3H, C)
    whh_t = f(P["whh"]).T                               # (3H, H)
    bih = f(P["bih"]).reshape(3 * H, 1)
    bhh = f(P["bhh"]).reshape(3 * H, 1)
    # r/z slices need bih+bhh together; n slice needs bhh inside the r* term.
    bx = jnp.concatenate([bih[:2 * H] + bhh[:2 * H], bih[2 * H:]], axis=0)   # (3H, 1)
    bhn = bhh[2 * H:]                                                        # (H, 1)
    wt = f(P["wt"])                                     # (O, T)
    wtT = wt.T                                          # (T, O)
    bt = f(P["bt"]).reshape(-1, 1)                      # (O, 1)
    wqk = scale * (f(P["wk"]) @ f(P["wq"]).T)           # (H_kv, H): q~ = wqk @ h + cqk
    cqk = scale * (f(P["wk"]) @ f(P["bq"]).T)           # (H_kv, 1)  (bk cancels in softmax)
    wvo = (f(P["wv2"]) @ f(P["wo"])).T                  # (E, H_kv)
    cvo = (f(P["bv2"]) @ f(P["wo"]) + f(P["bo"])).reshape(E, 1)
    return [ag, cg, av, cv, wih_t, bx, whh_t, bhn, wt, wtT, bt, wqk, cqk, wvo, cvo]


def temporal_pattern_initializer(x, params, tm=None,
                                 vmem_limit_bytes=48 * 1024 * 1024,
                                 approx_softmax=True):
    """x: (B, T, N) float32  ->  (B, N, E) float32."""
    B, T, N = x.shape
    M = B * N
    H = params["whh"].shape[0]
    E = params["wo"].shape[0]

    # Lane-aligned row tile.  ~8 KB of VMEM per row with the hall + gx scratch
    # buffers, so tm=2048 keeps a tile well inside v7x's 64 MiB VMEM while still
    # amortizing the ~0.35us per-grid-step overhead.  v5e/v6e (128 MiB) callers
    # may pass tm=4096..8192 (and raise vmem_limit_bytes accordingly).
    if tm is None:
        m_lanes = pl.cdiv(M, 128) * 128
        tm = min(2048, m_lanes)
        if m_lanes >= 256:
            # >= 2 grid steps so v7x's two TensorCores both get work.
            tm = min(tm, (m_lanes // 2) // 128 * 128)
        tm = max(tm, 128)
    assert tm % 128 == 0, "row tile tm must be a multiple of 128 (lane-dense)"
    Mp = pl.cdiv(M, tm) * tm

    # time on sublanes, rows (B*N) on lanes; pad rows so every block is lane-dense
    xm = jnp.transpose(x, (1, 0, 2)).reshape(T, M).astype(jnp.float32)
    if Mp != M:
        xm = jnp.pad(xm, ((0, 0), (0, Mp - M)))

    plist = _fuse_params(params)
    param_specs = [pl.BlockSpec(p.shape, lambda i: (0, 0)) for p in plist]

    out = pl.pallas_call(
        partial(_tpi_kernel, approx_recip=approx_softmax),
        out_shape=jax.ShapeDtypeStruct((E, Mp), jnp.float32),
        grid=(Mp // tm,),
        in_specs=[pl.BlockSpec((T, tm), lambda i: (0, i))] + param_specs,
        out_specs=pl.BlockSpec((E, tm), lambda i: (0, i)),
        scratch_shapes=[pltpu.VMEM((T, H, tm), jnp.float32),       # hall
                        pltpu.VMEM((T, 3 * H, tm), jnp.float32)],  # gx (hoisted input path)
        compiler_params=pltpu.CompilerParams(
            dimension_semantics=("parallel",),
            vmem_limit_bytes=vmem_limit_bytes),
    )(xm, *plist)

    # TODO(synk): interface-mandated (E,M)->(B,N,E) transpose; fuse into consumer.
    return out[:, :M].T.reshape(B, N, E)


def init_params(key, C=32, H=32, T=8, E=32, O=32, scale=0.1):
    keys = jax.random.split(key, 20)
    w = lambda k, s: (scale * jax.random.normal(k, s)).astype(jnp.float32)
    return dict(
        w1=w(keys[0], (1, C)), b1=w(keys[1], (1, C)),
        wg=w(keys[2], (C, C)), bg=w(keys[3], (1, C)),
        wvg=w(keys[4], (C, C)), bvg=w(keys[5], (1, C)),
        wih=w(keys[6], (C, 3 * H)), bih=w(keys[7], (1, 3 * H)),
        whh=w(keys[8], (H, 3 * H)), bhh=w(keys[9], (1, 3 * H)),
        wt=w(keys[10], (O, T)), bt=w(keys[11], (O, 1)),
        wq=w(keys[12], (H, E)), bq=w(keys[13], (1, E)),
        wk=w(keys[14], (E, E)), bk=w(keys[15], (1, E)),
        wv2=w(keys[16], (E, E)), bv2=w(keys[17], (1, E)),
        wo=w(keys[18], (E, E)), bo=w(keys[19], (1, E)),
    )


def reference(x, P):
    """Pure-JAX mirror of the PyTorch forward (eval mode), unfused params."""
    B, T, N = x.shape
    M = B * N
    H = P["whh"].shape[0]
    xm = jnp.transpose(x, (0, 2, 1)).reshape(M, T)
    p = xm[..., None] * P["w1"][0] + P["b1"][0]                       # (M, T, C)
    g = jax.nn.sigmoid(p @ P["wg"] + P["bg"][0]) * (p @ P["wvg"] + P["bvg"][0])
    gx = g @ P["wih"] + P["bih"][0]                                   # (M, T, 3H)
    h = jnp.zeros((M, H), jnp.float32)
    hs = []
    for t in range(T):
        gxt = gx[:, t]
        gh = h @ P["whh"] + P["bhh"][0]
        r = jax.nn.sigmoid(gxt[:, :H] + gh[:, :H])
        z = jax.nn.sigmoid(gxt[:, H:2 * H] + gh[:, H:2 * H])
        n = jnp.tanh(gxt[:, 2 * H:] + r * gh[:, 2 * H:])
        h = (1.0 - z) * n + z * h
        hs.append(h)
    hall = jnp.stack(hs, axis=1)                                      # (M, T, H)
    kconv = jnp.einsum("ot,mtc->moc", P["wt"], hall) + P["bt"][:, 0][None, :, None]
    qp = h @ P["wq"] + P["bq"][0]
    kp = kconv @ P["wk"] + P["bk"][0]
    vp = kconv @ P["wv2"] + P["bv2"][0]
    s = jnp.einsum("md,mod->mo", qp, kp) / jnp.sqrt(jnp.float32(qp.shape[-1]))
    a = jax.nn.softmax(s, axis=-1)
    ctx = jnp.einsum("mo,mod->md", a, vp)
    out = ctx @ P["wo"] + P["bo"][0]
    return out.reshape(B, N, -1)


if __name__ == "__main__":
    B, T, N = 2, 8, 4          # small t_window=8; hidden dims are 32 (fixed by MHA/tconv)
    key = jax.random.PRNGKey(0)
    kx, kp = jax.random.split(key)
    x = jax.random.normal(kx, (B, T, N), dtype=jnp.float32)
    params = init_params(kp, C=32, H=32, T=T, E=32, O=32)

    y = temporal_pattern_initializer(x, params)
    y = jax.block_until_ready(y)

    y_ref = reference(x, params)
    assert y.shape == (B, N, 32), y.shape
    max_err = float(jnp.max(jnp.abs(y - y_ref)))
    assert max_err < 2e-3, f"mismatch vs reference: {max_err}"
    print("KERNEL_OK")
</pallas_src>

<mosaic_0001>
module attributes {stable_mosaic.version = 11 : i64} {
  func.func @_tpi_kernel(%arg0: i32, %arg1: memref<8x128xf32, #tpu.memory_space<vmem>>, %arg2: memref<32x1xf32, #tpu.memory_space<vmem>>, %arg3: memref<32x1xf32, #tpu.memory_space<vmem>>, %arg4: memref<32x1xf32, #tpu.memory_space<vmem>>, %arg5: memref<32x1xf32, #tpu.memory_space<vmem>>, %arg6: memref<96x32xf32, #tpu.memory_space<vmem>>, %arg7: memref<96x1xf32, #tpu.memory_space<vmem>>, %arg8: memref<96x32xf32, #tpu.memory_space<vmem>>, %arg9: memref<32x1xf32, #tpu.memory_space<vmem>>, %arg10: memref<32x8xf32, #tpu.memory_space<vmem>>, %arg11: memref<8x32xf32, #tpu.memory_space<vmem>>, %arg12: memref<32x1xf32, #tpu.memory_space<vmem>>, %arg13: memref<32x32xf32, #tpu.memory_space<vmem>>, %arg14: memref<32x1xf32, #tpu.memory_space<vmem>>, %arg15: memref<32x32xf32, #tpu.memory_space<vmem>>, %arg16: memref<32x1xf32, #tpu.memory_space<vmem>>, %arg17: memref<32x128xf32, #tpu.memory_space<vmem>>, %arg18: memref<8x32x128xf32, #tpu.memory_space<vmem>>, %arg19: memref<8x96x128xf32, #tpu.memory_space<vmem>>) attributes {dimension_semantics = [#tpu.dimension_semantics<parallel>], iteration_bounds = array<i64: 1>, scalar_prefetch = 0 : i64, scratch_operands = 2 : i64, tpu.core_type = #tpu.core_type<tc>, window_params = [{transform_indices = @transform_0, window_bounds = array<i64: 8, 128>}, {pipeline_mode = #tpu.pipeline_mode<synchronous>, transform_indices = @transform_1, window_bounds = array<i64: 32, 1>}, {pipeline_mode = #tpu.pipeline_mode<synchronous>, transform_indices = @transform_2, window_bounds = array<i64: 32, 1>}, {pipeline_mode = #tpu.pipeline_mode<synchronous>, transform_indices = @transform_3, window_bounds = array<i64: 32, 1>}, {pipeline_mode = #tpu.pipeline_mode<synchronous>, transform_indices = @transform_4, window_bounds = array<i64: 32, 1>}, {pipeline_mode = #tpu.pipeline_mode<synchronous>, transform_indices = @transform_5, window_bounds = array<i64: 96, 32>}, {pipeline_mode = #tpu.pipeline_mode<synchronous>, transform_indices = @transform_6, window_bounds = array<i64: 96, 1>}, {pipeline_mode = #tpu.pipeline_mode<synchronous>, transform_indices = @transform_7, window_bounds = array<i64: 96, 32>}, {pipeline_mode = #tpu.pipeline_mode<synchronous>, transform_indices = @transform_8, window_bounds = array<i64: 32, 1>}, {pipeline_mode = #tpu.pipeline_mode<synchronous>, transform_indices = @transform_9, window_bounds = array<i64: 32, 8>}, {pipeline_mode = #tpu.pipeline_mode<synchronous>, transform_indices = @transform_10, window_bounds = array<i64: 8, 32>}, {pipeline_mode = #tpu.pipeline_mode<synchronous>, transform_indices = @transform_11, window_bounds = array<i64: 32, 1>}, {pipeline_mode = #tpu.pipeline_mode<synchronous>, transform_indices = @transform_12, window_bounds = array<i64: 32, 32>}, {pipeline_mode = #tpu.pipeline_mode<synchronous>, transform_indices = @transform_13, window_bounds = array<i64: 32, 1>}, {pipeline_mode = #tpu.pipeline_mode<synchronous>, transform_indices = @transform_14, window_bounds = array<i64: 32, 32>}, {pipeline_mode = #tpu.pipeline_mode<synchronous>, transform_indices = @transform_15, window_bounds = array<i64: 32, 1>}, {transform_indices = @transform_16, window_bounds = array<i64: 32, 128>}]} {
    %c0 = arith.constant 0 : index
    %c0_0 = arith.constant 0 : index
    %0 = vector.load %arg1[%c0, %c0_0] : memref<8x128xf32, #tpu.memory_space<vmem>>, vector<8x128xf32>
    %c0_1 = arith.constant 0 : index
    %c0_2 = arith.constant 0 : index
    %1 = vector.load %arg2[%c0_1, %c0_2] : memref<32x1xf32, #tpu.memory_space<vmem>>, vector<32x1xf32>
    %2 = vector.shape_cast %1 : vector<32x1xf32> to vector<32x1xf32>
    %3 = vector.broadcast %2 : vector<32x1xf32> to vector<32x128xf32>
    %c0_3 = arith.constant 0 : index
    %c0_4 = arith.constant 0 : index
    %4 = vector.load %arg3[%c0_3, %c0_4] : memref<32x1xf32, #tpu.memory_space<vmem>>, vector<32x1xf32>
    %5 = vector.shape_cast %4 : vector<32x1xf32> to vector<32x1xf32>
    %6 = vector.broadcast %5 : vector<32x1xf32> to vector<32x128xf32>
    %c0_5 = arith.constant 0 : index
    %c0_6 = arith.constant 0 : index
    %7 = vector.load %arg4[%c0_5, %c0_6] : memref<32x1xf32, #tpu.memory_space<vmem>>, vector<32x1xf32>
    %8 = vector.shape_cast %7 : vector<32x1xf32> to vector<32x1xf32>
    %9 = vector.broadcast %8 : vector<32x1xf32> to vector<32x128xf32>
    %c0_7 = arith.constant 0 : index
    %c0_8 = arith.constant 0 : index
    %10 = vector.load %arg5[%c0_7, %c0_8] : memref<32x1xf32, #tpu.memory_space<vmem>>, vector<32x1xf32>
    %11 = vector.shape_cast %10 : vector<32x1xf32> to vector<32x1xf32>
    %12 = vector.broadcast %11 : vector<32x1xf32> to vector<32x128xf32>
    %c0_9 = arith.constant 0 : index
    %c0_10 = arith.constant 0 : index
    %13 = vector.load %arg7[%c0_9, %c0_10] : memref<96x1xf32, #tpu.memory_space<vmem>>, vector<96x1xf32>
    %14 = vector.shape_cast %13 : vector<96x1xf32> to vector<96x1xf32>
    %15 = vector.broadcast %14 : vector<96x1xf32> to vector<96x128xf32>
    %c0_11 = arith.constant 0 : index
    %c0_12 = arith.constant 0 : index
    %16 = vector.load %arg9[%c0_11, %c0_12] : memref<32x1xf32, #tpu.memory_space<vmem>>, vector<32x1xf32>
    %17 = vector.shape_cast %16 : vector<32x1xf32> to vector<32x1xf32>
    %18 = vector.broadcast %17 : vector<32x1xf32> to vector<32x128xf32>
    %c0_13 = arith.constant 0 : index
    %c0_14 = arith.constant 0 : index
    %19 = vector.load %arg6[%c0_13, %c0_14] : memref<96x32xf32, #tpu.memory_space<vmem>>, vector<96x32xf32>
    %c0_15 = arith.constant 0 : index
    %c0_16 = arith.constant 0 : index
    %20 = vector.load %arg8[%c0_15, %c0_16] : memref<96x32xf32, #tpu.memory_space<vmem>>, vector<96x32xf32>
    %21 = vector.extract_strided_slice %0 {offsets = [0, 0], sizes = [1, 128], strides = [1, 1]} : vector<8x128xf32> to vector<1x128xf32>
    %22 = vector.broadcast %21 : vector<1x128xf32> to vector<32x128xf32>
    %23 = arith.mulf %22, %3 : vector<32x128xf32>
    %24 = arith.addf %23, %6 : vector<32x128xf32>
    %25 = arith.negf %24 : vector<32x128xf32>
    %26 = math.exp %25 : vector<32x128xf32>
    %cst = arith.constant 1.000000e+00 : f32
    %27 = vector.broadcast %cst : f32 to vector<32x128xf32>
    %28 = arith.addf %27, %26 : vector<32x128xf32>
    %29 = arith.divf %27, %28 : vector<32x128xf32>
    %30 = vector.broadcast %21 : vector<1x128xf32> to vector<32x128xf32>
    %31 = arith.mulf %30, %9 : vector<32x128xf32>
    %32 = arith.addf %31, %12 : vector<32x128xf32>
    %33 = arith.mulf %29, %32 : vector<32x128xf32>
    %cst_17 = arith.constant dense<0.000000e+00> : vector<96x128xf32>
    %34 = tpu.matmul %19, %33, %cst_17 {dimension_numbers = #tpu.dot_dimension_numbers<[1], [0], [0], [1], [0, 0, 1, 1], [], []>} : vector<96x32xf32>, vector<32x128xf32>, vector<96x128xf32> -> vector<96x128xf32>
    %35 = arith.addf %34, %15 : vector<96x128xf32>
    %c0_18 = arith.constant 0 : index
    %c0_19 = arith.constant 0 : index
    %c0_20 = arith.constant 0 : index
    %36 = vector.load %arg19[%c0_18, %c0_19, %c0_20] : memref<8x96x128xf32, #tpu.memory_space<vmem>>, vector<1x96x128xf32>
    %37 = vector.shape_cast %36 : vector<1x96x128xf32> to vector<96x128xf32>
    %38 = vector.shape_cast %35 : vector<96x128xf32> to vector<1x96x128xf32>
    tpu.vector_store %arg19[%c0_18, %c0_19, %c0_20], %38 {strides = array<i32>} : memref<8x96x128xf32, #tpu.memory_space<vmem>>, vector<1x96x128xf32>,
    %39 = vector.extract_strided_slice %0 {offsets = [1, 0], sizes = [1, 128], strides = [1, 1]} : vector<8x128xf32> to vector<1x128xf32>
    %40 = vector.broadcast %39 : vector<1x128xf32> to vector<32x128xf32>
    %41 = arith.mulf %40, %3 : vector<32x128xf32>
    %42 = arith.addf %41, %6 : vector<32x128xf32>
    %43 = arith.negf %42 : vector<32x128xf32>
    %44 = math.exp %43 : vector<32x128xf32>
    %cst_21 = arith.constant 1.000000e+00 : f32
    %45 = vector.broadcast %cst_21 : f32 to vector<32x128xf32>
    %46 = arith.addf %45, %44 : vector<32x128xf32>
    %47 = arith.divf %45, %46 : vector<32x128xf32>
    %48 = vector.broadcast %39 : vector<1x128xf32> to vector<32x128xf32>
    %49 = arith.mulf %48, %9 : vector<32x128xf32>
    %50 = arith.addf %49, %12 : vector<32x128xf32>
    %51 = arith.mulf %47, %50 : vector<32x128xf32>
    %cst_22 = arith.constant dense<0.000000e+00> : vector<96x128xf32>
    %52 = tpu.matmul %19, %51, %cst_22 {dimension_numbers = #tpu.dot_dimension_numbers<[1], [0], [0], [1], [0, 0, 1, 1], [], []>} : vector<96x32xf32>, vector<32x128xf32>, vector<96x128xf32> -> vector<96x128xf32>
    %53 = arith.addf %52, %15 : vector<96x128xf32>
    %c1 = arith.constant 1 : index
    %c0_23 = arith.constant 0 : index
    %c0_24 = arith.constant 0 : index
    %54 = vector.load %arg19[%c1, %c0_23, %c0_24] : memref<8x96x128xf32, #tpu.memory_space<vmem>>, vector<1x96x128xf32>
    %55 = vector.shape_cast %54 : vector<1x96x128xf32> to vector<96x128xf32>
    %56 = vector.shape_cast %53 : vector<96x128xf32> to vector<1x96x128xf32>
    tpu.vector_store %arg19[%c1, %c0_23, %c0_24], %56 {strides = array<i32>} : memref<8x96x128xf32, #tpu.memory_space<vmem>>, vector<1x96x128xf32>,
    %57 = vector.extract_strided_slice %0 {offsets = [2, 0], sizes = [1, 128], strides = [1, 1]} : vector<8x128xf32> to vector<1x128xf32>
    %58 = vector.broadcast %57 : vector<1x128xf32> to vector<32x128xf32>
    %59 = arith.mulf %58, %3 : vector<32x128xf32>
    %60 = arith.addf %59, %6 : vector<32x128xf32>
    %61 = arith.negf %60 : vector<32x128xf32>
    %62 = math.exp %61 : vector<32x128xf32>
    %cst_25 = arith.constant 1.000000e+00 : f32
    %63 = vector.broadcast %cst_25 : f32 to vector<32x128xf32>
    %64 = arith.addf %63, %62 : vector<32x128xf32>
    %65 = arith.divf %63, %64 : vector<32x128xf32>
    %66 = vector.broadcast %57 : vector<1x128xf32> to vector<32x128xf32>
    %67 = arith.mulf %66, %9 : vector<32x128xf32>
    %68 = arith.addf %67, %12 : vector<32x128xf32>
    %69 = arith.mulf %65, %68 : vector<32x128xf32>
    %cst_26 = arith.constant dense<0.000000e+00> : vector<96x128xf32>
    %70 = tpu.matmul %19, %69, %cst_26 {dimension_numbers = #tpu.dot_dimension_numbers<[1], [0], [0], [1], [0, 0, 1, 1], [], []>} : vector<96x32xf32>, vector<32x128xf32>, vector<96x128xf32> -> vector<96x128xf32>
    %71 = arith.addf %70, %15 : vector<96x128xf32>
    %c2 = arith.constant 2 : index
    %c0_27 = arith.constant 0 : index
    %c0_28 = arith.constant 0 : index
    %72 = vector.load %arg19[%c2, %c0_27, %c0_28] : memref<8x96x128xf32, #tpu.memory_space<vmem>>, vector<1x96x128xf32>
    %73 = vector.shape_cast %72 : vector<1x96x128xf32> to vector<96x128xf32>
    %74 = vector.shape_cast %71 : vector<96x128xf32> to vector<1x96x128xf32>
    tpu.vector_store %arg19[%c2, %c0_27, %c0_28], %74 {strides = array<i32>} : memref<8x96x128xf32, #tpu.memory_space<vmem>>, vector<1x96x128xf32>,
    %75 = vector.extract_strided_slice %0 {offsets = [3, 0], sizes = [1, 128], strides = [1, 1]} : vector<8x128xf32> to vector<1x128xf32>
    %76 = vector.broadcast %75 : vector<1x128xf32> to vector<32x128xf32>
    %77 = arith.mulf %76, %3 : vector<32x128xf32>
    %78 = arith.addf %77, %6 : vector<32x128xf32>
    %79 = arith.negf %78 : vector<32x128xf32>
    %80 = math.exp %79 : vector<32x128xf32>
    %cst_29 = arith.constant 1.000000e+00 : f32
    %81 = vector.broadcast %cst_29 : f32 to vector<32x128xf32>
    %82 = arith.addf %81, %80 : vector<32x128xf32>
    %83 = arith.divf %81, %82 : vector<32x128xf32>
    %84 = vector.broadcast %75 : vector<1x128xf32> to vector<32x128xf32>
    %85 = arith.mulf %84, %9 : vector<32x128xf32>
    %86 = arith.addf %85, %12 : vector<32x128xf32>
    %87 = arith.mulf %83, %86 : vector<32x128xf32>
    %cst_30 = arith.constant dense<0.000000e+00> : vector<96x128xf32>
    %88 = tpu.matmul %19, %87, %cst_30 {dimension_numbers = #tpu.dot_dimension_numbers<[1], [0], [0], [1], [0, 0, 1, 1], [], []>} : vector<96x32xf32>, vector<32x128xf32>, vector<96x128xf32> -> vector<96x128xf32>
    %89 = arith.addf %88, %15 : vector<96x128xf32>
    %c3 = arith.constant 3 : index
    %c0_31 = arith.constant 0 : index
    %c0_32 = arith.constant 0 : index
    %90 = vector.load %arg19[%c3, %c0_31, %c0_32] : memref<8x96x128xf32, #tpu.memory_space<vmem>>, vector<1x96x128xf32>
    %91 = vector.shape_cast %90 : vector<1x96x128xf32> to vector<96x128xf32>
    %92 = vector.shape_cast %89 : vector<96x128xf32> to vector<1x96x128xf32>
    tpu.vector_store %arg19[%c3, %c0_31, %c0_32], %92 {strides = array<i32>} : memref<8x96x128xf32, #tpu.memory_space<vmem>>, vector<1x96x128xf32>,
    %93 = vector.extract_strided_slice %0 {offsets = [4, 0], sizes = [1, 128], strides = [1, 1]} : vector<8x128xf32> to vector<1x128xf32>
    %94 = vector.broadcast %93 : vector<1x128xf32> to vector<32x128xf32>
    %95 = arith.mulf %94, %3 : vector<32x128xf32>
    %96 = arith.addf %95, %6 : vector<32x128xf32>
    %97 = arith.negf %96 : vector<32x128xf32>
    %98 = math.exp %97 : vector<32x128xf32>
    %cst_33 = arith.constant 1.000000e+00 : f32
    %99 = vector.broadcast %cst_33 : f32 to vector<32x128xf32>
    %100 = arith.addf %99, %98 : vector<32x128xf32>
    %101 = arith.divf %99, %100 : vector<32x128xf32>
    %102 = vector.broadcast %93 : vector<1x128xf32> to vector<32x128xf32>
    %103 = arith.mulf %102, %9 : vector<32x128xf32>
    %104 = arith.addf %103, %12 : vector<32x128xf32>
    %105 = arith.mulf %101, %104 : vector<32x128xf32>
    %cst_34 = arith.constant dense<0.000000e+00> : vector<96x128xf32>
    %106 = tpu.matmul %19, %105, %cst_34 {dimension_numbers = #tpu.dot_dimension_numbers<[1], [0], [0], [1], [0, 0, 1, 1], [], []>} : vector<96x32xf32>, vector<32x128xf32>, vector<96x128xf32> -> vector<96x128xf32>
    %107 = arith.addf %106, %15 : vector<96x128xf32>
    %c4 = arith.constant 4 : index
    %c0_35 = arith.constant 0 : index
    %c0_36 = arith.constant 0 : index
    %108 = vector.load %arg19[%c4, %c0_35, %c0_36] : memref<8x96x128xf32, #tpu.memory_space<vmem>>, vector<1x96x128xf32>
    %109 = vector.shape_cast %108 : vector<1x96x128xf32> to vector<96x128xf32>
    %110 = vector.shape_cast %107 : vector<96x128xf32> to vector<1x96x128xf32>
    tpu.vector_store %arg19[%c4, %c0_35, %c0_36], %110 {strides = array<i32>} : memref<8x96x128xf32, #tpu.memory_space<vmem>>, vector<1x96x128xf32>,
    %111 = vector.extract_strided_slice %0 {offsets = [5, 0], sizes = [1, 128], strides = [1, 1]} : vector<8x128xf32> to vector<1x128xf32>
    %112 = vector.broadcast %111 : vector<1x128xf32> to vector<32x128xf32>
    %113 = arith.mulf %112, %3 : vector<32x128xf32>
    %114 = arith.addf %113, %6 : vector<32x128xf32>
    %115 = arith.negf %114 : vector<32x128xf32>
    %116 = math.exp %115 : vector<32x128xf32>
    %cst_37 = arith.constant 1.000000e+00 : f32
    %117 = vector.broadcast %cst_37 : f32 to vector<32x128xf32>
    %118 = arith.addf %117, %116 : vector<32x128xf32>
    %119 = arith.divf %117, %118 : vector<32x128xf32>
    %120 = vector.broadcast %111 : vector<1x128xf32> to vector<32x128xf32>
    %121 = arith.mulf %120, %9 : vector<32x128xf32>
    %122 = arith.addf %121, %12 : vector<32x128xf32>
    %123 = arith.mulf %119, %122 : vector<32x128xf32>
    %cst_38 = arith.constant dense<0.000000e+00> : vector<96x128xf32>
    %124 = tpu.matmul %19, %123, %cst_38 {dimension_numbers = #tpu.dot_dimension_numbers<[1], [0], [0], [1], [0, 0, 1, 1], [], []>} : vector<96x32xf32>, vector<32x128xf32>, vector<96x128xf32> -> vector<96x128xf32>
    %125 = arith.addf %124, %15 : vector<96x128xf32>
    %c5 = arith.constant 5 : index
    %c0_39 = arith.constant 0 : index
    %c0_40 = arith.constant 0 : index
    %126 = vector.load %arg19[%c5, %c0_39, %c0_40] : memref<8x96x128xf32, #tpu.memory_space<vmem>>, vector<1x96x128xf32>
    %127 = vector.shape_cast %126 : vector<1x96x128xf32> to vector<96x128xf32>
    %128 = vector.shape_cast %125 : vector<96x128xf32> to vector<1x96x128xf32>
    tpu.vector_store %arg19[%c5, %c0_39, %c0_40], %128 {strides = array<i32>} : memref<8x96x128xf32, #tpu.memory_space<vmem>>, vector<1x96x128xf32>,
    %129 = vector.extract_strided_slice %0 {offsets = [6, 0], sizes = [1, 128], strides = [1, 1]} : vector<8x128xf32> to vector<1x128xf32>
    %130 = vector.broadcast %129 : vector<1x128xf32> to vector<32x128xf32>
    %131 = arith.mulf %130, %3 : vector<32x128xf32>
    %132 = arith.addf %131, %6 : vector<32x128xf32>
    %133 = arith.negf %132 : vector<32x128xf32>
    %134 = math.exp %133 : vector<32x128xf32>
    %cst_41 = arith.constant 1.000000e+00 : f32
    %135 = vector.broadcast %cst_41 : f32 to vector<32x128xf32>
    %136 = arith.addf %135, %134 : vector<32x128xf32>
    %137 = arith.divf %135, %136 : vector<32x128xf32>
    %138 = vector.broadcast %129 : vector<1x128xf32> to vector<32x128xf32>
    %139 = arith.mulf %138, %9 : vector<32x128xf32>
    %140 = arith.addf %139, %12 : vector<32x128xf32>
    %141 = arith.mulf %137, %140 : vector<32x128xf32>
    %cst_42 = arith.constant dense<0.000000e+00> : vector<96x128xf32>
    %142 = tpu.matmul %19, %141, %cst_42 {dimension_numbers = #tpu.dot_dimension_numbers<[1], [0], [0], [1], [0, 0, 1, 1], [], []>} : vector<96x32xf32>, vector<32x128xf32>, vector<96x128xf32> -> vector<96x128xf32>
    %143 = arith.addf %142, %15 : vector<96x128xf32>
    %c6 = arith.constant 6 : index
    %c0_43 = arith.constant 0 : index
    %c0_44 = arith.constant 0 : index
    %144 = vector.load %arg19[%c6, %c0_43, %c0_44] : memref<8x96x128xf32, #tpu.memory_space<vmem>>, vector<1x96x128xf32>
    %145 = vector.shape_cast %144 : vector<1x96x128xf32> to vector<96x128xf32>
    %146 = vector.shape_cast %143 : vector<96x128xf32> to vector<1x96x128xf32>
    tpu.vector_store %arg19[%c6, %c0_43, %c0_44], %146 {strides = array<i32>} : memref<8x96x128xf32, #tpu.memory_space<vmem>>, vector<1x96x128xf32>,
    %147 = vector.extract_strided_slice %0 {offsets = [7, 0], sizes = [1, 128], strides = [1, 1]} : vector<8x128xf32> to vector<1x128xf32>
    %148 = vector.broadcast %147 : vector<1x128xf32> to vector<32x128xf32>
    %149 = arith.mulf %148, %3 : vector<32x128xf32>
    %150 = arith.addf %149, %6 : vector<32x128xf32>
    %151 = arith.negf %150 : vector<32x128xf32>
    %152 = math.exp %151 : vector<32x128xf32>
    %cst_45 = arith.constant 1.000000e+00 : f32
    %153 = vector.broadcast %cst_45 : f32 to vector<32x128xf32>
    %154 = arith.addf %153, %152 : vector<32x128xf32>
    %155 = arith.divf %153, %154 : vector<32x128xf32>
    %156 = vector.broadcast %147 : vector<1x128xf32> to vector<32x128xf32>
    %157 = arith.mulf %156, %9 : vector<32x128xf32>
    %158 = arith.addf %157, %12 : vector<32x128xf32>
    %159 = arith.mulf %155, %158 : vector<32x128xf32>
    %cst_46 = arith.constant dense<0.000000e+00> : vector<96x128xf32>
    %160 = tpu.matmul %19, %159, %cst_46 {dimension_numbers = #tpu.dot_dimension_numbers<[1], [0], [0], [1], [0, 0, 1, 1], [], []>} : vector<96x32xf32>, vector<32x128xf32>, vector<96x128xf32> -> vector<96x128xf32>
    %161 = arith.addf %160, %15 : vector<96x128xf32>
    %c7 = arith.constant 7 : index
    %c0_47 = arith.constant 0 : index
    %c0_48 = arith.constant 0 : index
    %162 = vector.load %arg19[%c7, %c0_47, %c0_48] : memref<8x96x128xf32, #tpu.memory_space<vmem>>, vector<1x96x128xf32>
    %163 = vector.shape_cast %162 : vector<1x96x128xf32> to vector<96x128xf32>
    %164 = vector.shape_cast %161 : vector<96x128xf32> to vector<1x96x128xf32>
    tpu.vector_store %arg19[%c7, %c0_47, %c0_48], %164 {strides = array<i32>} : memref<8x96x128xf32, #tpu.memory_space<vmem>>, vector<1x96x128xf32>,
    %cst_49 = arith.constant 0.000000e+00 : f32
    %165 = vector.broadcast %cst_49 : f32 to vector<32x128xf32>
    %c0_50 = arith.constant 0 : index
    %c0_51 = arith.constant 0 : index
    %c0_52 = arith.constant 0 : index
    %166 = vector.load %arg19[%c0_50, %c0_51, %c0_52] : memref<8x96x128xf32, #tpu.memory_space<vmem>>, vector<1x96x128xf32>
    %167 = vector.shape_cast %166 : vector<1x96x128xf32> to vector<96x128xf32>
    %cst_53 = arith.constant dense<0.000000e+00> : vector<96x128xf32>
    %168 = tpu.matmul %20, %165, %cst_53 {dimension_numbers = #tpu.dot_dimension_numbers<[1], [0], [0], [1], [0, 0, 1, 1], [], []>} : vector<96x32xf32>, vector<32x128xf32>, vector<96x128xf32> -> vector<96x128xf32>
    %169 = vector.extract_strided_slice %167 {offsets = [0, 0], sizes = [64, 128], strides = [1, 1]} : vector<96x128xf32> to vector<64x128xf32>
    %170 = vector.extract_strided_slice %168 {offsets = [0, 0], sizes = [64, 128], strides = [1, 1]} : vector<96x128xf32> to vector<64x128xf32>
    %171 = arith.addf %169, %170 : vector<64x128xf32>
    %172 = arith.negf %171 : vector<64x128xf32>
    %173 = math.exp %172 : vector<64x128xf32>
    %cst_54 = arith.constant 1.000000e+00 : f32
    %174 = vector.broadcast %cst_54 : f32 to vector<64x128xf32>
    %175 = arith.addf %174, %173 : vector<64x128xf32>
    %176 = arith.divf %174, %175 : vector<64x128xf32>
    %177 = vector.extract_strided_slice %176 {offsets = [0, 0], sizes = [32, 128], strides = [1, 1]} : vector<64x128xf32> to vector<32x128xf32>
    %178 = vector.extract_strided_slice %176 {offsets = [32, 0], sizes = [32, 128], strides = [1, 1]} : vector<64x128xf32> to vector<32x128xf32>
    %179 = vector.extract_strided_slice %167 {offsets = [64, 0], sizes = [32, 128], strides = [1, 1]} : vector<96x128xf32> to vector<32x128xf32>
    %180 = vector.extract_strided_slice %168 {offsets = [64, 0], sizes = [32, 128], strides = [1, 1]} : vector<96x128xf32> to vector<32x128xf32>
    %181 = arith.addf %180, %18 : vector<32x128xf32>
    %182 = arith.mulf %177, %181 : vector<32x128xf32>
    %183 = arith.addf %179, %182 : vector<32x128xf32>
    %184 = math.tanh %183 : vector<32x128xf32>
    %185 = arith.subf %165, %184 : vector<32x128xf32>
    %186 = arith.mulf %178, %185 : vector<32x128xf32>
    %187 = arith.addf %184, %186 : vector<32x128xf32>
    %c0_55 = arith.constant 0 : index
    %c0_56 = arith.constant 0 : index
    %c0_57 = arith.constant 0 : index
    %188 = vector.load %arg18[%c0_55, %c0_56, %c0_57] : memref<8x32x128xf32, #tpu.memory_space<vmem>>, vector<1x32x128xf32>
    %189 = vector.shape_cast %188 : vector<1x32x128xf32> to vector<32x128xf32>
    %190 = vector.shape_cast %187 : vector<32x128xf32> to vector<1x32x128xf32>
    tpu.vector_store %arg18[%c0_55, %c0_56, %c0_57], %190 {strides = array<i32>} : memref<8x32x128xf32, #tpu.memory_space<vmem>>, vector<1x32x128xf32>,
    %c1_58 = arith.constant 1 : index
    %c0_59 = arith.constant 0 : index
    %c0_60 = arith.constant 0 : index
    %191 = vector.load %arg19[%c1_58, %c0_59, %c0_60] : memref<8x96x128xf32, #tpu.memory_space<vmem>>, vector<1x96x128xf32>
    %192 = vector.shape_cast %191 : vector<1x96x128xf32> to vector<96x128xf32>
    %cst_61 = arith.constant dense<0.000000e+00> : vector<96x128xf32>
    %193 = tpu.matmul %20, %187, %cst_61 {dimension_numbers = #tpu.dot_dimension_numbers<[1], [0], [0], [1], [0, 0, 1, 1], [], []>} : vector<96x32xf32>, vector<32x128xf32>, vector<96x128xf32> -> vector<96x128xf32>
    %194 = vector.extract_strided_slice %192 {offsets = [0, 0], sizes = [64, 128], strides = [1, 1]} : vector<96x128xf32> to vector<64x128xf32>
    %195 = vector.extract_strided_slice %193 {offsets = [0, 0], sizes = [64, 128], strides = [1, 1]} : vector<96x128xf32> to vector<64x128xf32>
    %196 = arith.addf %194, %195 : vector<64x128xf32>
    %197 = arith.negf %196 : vector<64x128xf32>
    %198 = math.exp %197 : vector<64x128xf32>
    %cst_62 = arith.constant 1.000000e+00 : f32
    %199 = vector.broadcast %cst_62 : f32 to vector<64x128xf32>
    %200 = arith.addf %199, %198 : vector<64x128xf32>
    %201 = arith.divf %199, %200 : vector<64x128xf32>
    %202 = vector.extract_strided_slice %201 {offsets = [0, 0], sizes = [32, 128], strides = [1, 1]} : vector<64x128xf32> to vector<32x128xf32>
    %203 = vector.extract_strided_slice %201 {offsets = [32, 0], sizes = [32, 128], strides = [1, 1]} : vector<64x128xf32> to vector<32x128xf32>
    %204 = vector.extract_strided_slice %192 {offsets = [64, 0], sizes = [32, 128], strides = [1, 1]} : vector<96x128xf32> to vector<32x128xf32>
    %205 = vector.extract_strided_slice %193 {offsets = [64, 0], sizes = [32, 128], strides = [1, 1]} : vector<96x128xf32> to vector<32x128xf32>
    %206 = arith.addf %205, %18 : vector<32x128xf32>
    %207 = arith.mulf %202, %206 : vector<32x128xf32>
    %208 = arith.addf %204, %207 : vector<32x128xf32>
    %209 = math.tanh %208 : vector<32x128xf32>
    %210 = arith.subf %187, %209 : vector<32x128xf32>
    %211 = arith.mulf %203, %210 : vector<32x128xf32>
    %212 = arith.addf %209, %211 : vector<32x128xf32>
    %c1_63 = arith.constant 1 : index
    %c0_64 = arith.constant 0 : index
    %c0_65 = arith.constant 0 : index
    %213 = vector.load %arg18[%c1_63, %c0_64, %c0_65] : memref<8x32x128xf32, #tpu.memory_space<vmem>>, vector<1x32x128xf32>
    %214 = vector.shape_cast %213 : vector<1x32x128xf32> to vector<32x128xf32>
    %215 = vector.shape_cast %212 : vector<32x128xf32> to vector<1x32x128xf32>
    tpu.vector_store %arg18[%c1_63, %c0_64, %c0_65], %215 {strides = array<i32>} : memref<8x32x128xf32, #tpu.memory_space<vmem>>, vector<1x32x128xf32>,
    %c2_66 = arith.constant 2 : index
    %c0_67 = arith.constant 0 : index
    %c0_68 = arith.constant 0 : index
    %216 = vector.load %arg19[%c2_66, %c0_67, %c0_68] : memref<8x96x128xf32, #tpu.memory_space<vmem>>, vector<1x96x128xf32>
    %217 = vector.shape_cast %216 : vector<1x96x128xf32> to vector<96x128xf32>
    %cst_69 = arith.constant dense<0.000000e+00> : vector<96x128xf32>
    %218 = tpu.matmul %20, %212, %cst_69 {dimension_numbers = #tpu.dot_dimension_numbers<[1], [0], [0], [1], [0, 0, 1, 1], [], []>} : vector<96x32xf32>, vector<32x128xf32>, vector<96x128xf32> -> vector<96x128xf32>
    %219 = vector.extract_strided_slice %217 {offsets = [0, 0], sizes = [64, 128], strides = [1, 1]} : vector<96x128xf32> to vector<64x128xf32>
    %220 = vector.extract_strided_slice %218 {offsets = [0, 0], sizes = [64, 128], strides = [1, 1]} : vector<96x128xf32> to vector<64x128xf32>
    %221 = arith.addf %219, %220 : vector<64x128xf32>
    %222 = arith.negf %221 : vector<64x128xf32>
    %223 = math.exp %222 : vector<64x128xf32>
    %cst_70 = arith.constant 1.000000e+00 : f32
    %224 = vector.broadcast %cst_70 : f32 to vector<64x128xf32>
    %225 = arith.addf %224, %223 : vector<64x128xf32>
    %226 = arith.divf %224, %225 : vector<64x128xf32>
    %227 = vector.extract_strided_slice %226 {offsets = [0, 0], sizes = [32, 128], strides = [1, 1]} : vector<64x128xf32> to vector<32x128xf32>
    %228 = vector.extract_strided_slice %226 {offsets = [32, 0], sizes = [32, 128], strides = [1, 1]} : vector<64x128xf32> to vector<32x128xf32>
    %229 = vector.extract_strided_slice %217 {offsets = [64, 0], sizes = [32, 128], strides = [1, 1]} : vector<96x128xf32> to vector<32x128xf32>
    %230 = vector.extract_strided_slice %218 {offsets = [64, 0], sizes = [32, 128], strides = [1, 1]} : vector<96x128xf32> to vector<32x128xf32>
    %231 = arith.addf %230, %18 : vector<32x128xf32>
    %232 = arith.mulf %227, %231 : vector<32x128xf32>
    %233 = arith.addf %229, %232 : vector<32x128xf32>
    %234 = math.tanh %233 : vector<32x128xf32>
    %235 = arith.subf %212, %234 : vector<32x128xf32>
    %236 = arith.mulf %228, %235 : vector<32x128xf32>
    %237 = arith.addf %234, %236 : vector<32x128xf32>
    %c2_71 = arith.constant 2 : index
    %c0_72 = arith.constant 0 : index
    %c0_73 = arith.constant 0 : index
    %238 = vector.load %arg18[%c2_71, %c0_72, %c0_73] : memref<8x32x128xf32, #tpu.memory_space<vmem>>, vector<1x32x128xf32>
    %239 = vector.shape_cast %238 : vector<1x32x128xf32> to vector<32x128xf32>
    %240 = vector.shape_cast %237 : vector<32x128xf32> to vector<1x32x128xf32>
    tpu.vector_store %arg18[%c2_71, %c0_72, %c0_73], %240 {strides = array<i32>} : memref<8x32x128xf32, #tpu.memory_space<vmem>>, vector<1x32x128xf32>,
    %c3_74 = arith.constant 3 : index
    %c0_75 = arith.constant 0 : index
    %c0_76 = arith.constant 0 : index
    %241 = vector.load %arg19[%c3_74, %c0_75, %c0_76] : memref<8x96x128xf32, #tpu.memory_space<vmem>>, vector<1x96x128xf32>
    %242 = vector.shape_cast %241 : vector<1x96x128xf32> to vector<96x128xf32>
    %cst_77 = arith.constant dense<0.000000e+00> : vector<96x128xf32>
    %243 = tpu.matmul %20, %237, %cst_77 {dimension_numbers = #tpu.dot_dimension_numbers<[1], [0], [0], [1], [0, 0, 1, 1], [], []>} : vector<96x32xf32>, vector<32x128xf32>, vector<96x128xf32> -> vector<96x128xf32>
    %244 = vector.extract_strided_slice %242 {offsets = [0, 0], sizes = [64, 128], strides = [1, 1]} : vector<96x128xf32> to vector<64x128xf32>
    %245 = vector.extract_strided_slice %243 {offsets = [0, 0], sizes = [64, 128], strides = [1, 1]} : vector<96x128xf32> to vector<64x128xf32>
    %246 = arith.addf %244, %245 : vector<64x128xf32>
    %247 = arith.negf %246 : vector<64x128xf32>
    %248 = math.exp %247 : vector<64x128xf32>
    %cst_78 = arith.constant 1.000000e+00 : f32
    %249 = vector.broadcast %cst_78 : f32 to vector<64x128xf32>
    %250 = arith.addf %249, %248 : vector<64x128xf32>
    %251 = arith.divf %249, %250 : vector<64x128xf32>
    %252 = vector.extract_strided_slice %251 {offsets = [0, 0], sizes = [32, 128], strides = [1, 1]} : vector<64x128xf32> to vector<32x128xf32>
    %253 = vector.extract_strided_slice %251 {offsets = [32, 0], sizes = [32, 128], strides = [1, 1]} : vector<64x128xf32> to vector<32x128xf32>
    %254 = vector.extract_strided_slice %242 {offsets = [64, 0], sizes = [32, 128], strides = [1, 1]} : vector<96x128xf32> to vector<32x128xf32>
    %255 = vector.extract_strided_slice %243 {offsets = [64, 0], sizes = [32, 128], strides = [1, 1]} : vector<96x128xf32> to vector<32x128xf32>
    %256 = arith.addf %255, %18 : vector<32x128xf32>
    %257 = arith.mulf %252, %256 : vector<32x128xf32>
    %258 = arith.addf %254, %257 : vector<32x128xf32>
    %259 = math.tanh %258 : vector<32x128xf32>
    %260 = arith.subf %237, %259 : vector<32x128xf32>
    %261 = arith.mulf %253, %260 : vector<32x128xf32>
    %262 = arith.addf %259, %261 : vector<32x128xf32>
    %c3_79 = arith.constant 3 : index
    %c0_80 = arith.constant 0 : index
    %c0_81 = arith.constant 0 : index
    %263 = vector.load %arg18[%c3_79, %c0_80, %c0_81] : memref<8x32x128xf32, #tpu.memory_space<vmem>>, vector<1x32x128xf32>
    %264 = vector.shape_cast %263 : vector<1x32x128xf32> to vector<32x128xf32>
    %265 = vector.shape_cast %262 : vector<32x128xf32> to vector<1x32x128xf32>
    tpu.vector_store %arg18[%c3_79, %c0_80, %c0_81], %265 {strides = array<i32>} : memref<8x32x128xf32, #tpu.memory_space<vmem>>, vector<1x32x128xf32>,
    %c4_82 = arith.constant 4 : index
    %c0_83 = arith.constant 0 : index
    %c0_84 = arith.constant 0 : index
    %266 = vector.load %arg19[%c4_82, %c0_83, %c0_84] : memref<8x96x128xf32, #tpu.memory_space<vmem>>, vector<1x96x128xf32>
    %267 = vector.shape_cast %266 : vector<1x96x128xf32> to vector<96x128xf32>
    %cst_85 = arith.constant dense<0.000000e+00> : vector<96x128xf32>
    %268 = tpu.matmul %20, %262, %cst_85 {dimension_numbers = #tpu.dot_dimension_numbers<[1], [0], [0], [1], [0, 0, 1, 1], [], []>} : vector<96x32xf32>, vector<32x128xf32>, vector<96x128xf32> -> vector<96x128xf32>
    %269 = vector.extract_strided_slice %267 {offsets = [0, 0], sizes = [64, 128], strides = [1, 1]} : vector<96x128xf32> to vector<64x128xf32>
    %270 = vector.extract_strided_slice %268 {offsets = [0, 0], sizes = [64, 128], strides = [1, 1]} : vector<96x128xf32> to vector<64x128xf32>
    %271 = arith.addf %269, %270 : vector<64x128xf32>
    %272 = arith.negf %271 : vector<64x128xf32>
    %273 = math.exp %272 : vector<64x128xf32>
    %cst_86 = arith.constant 1.000000e+00 : f32
    %274 = vector.broadcast %cst_86 : f32 to vector<64x128xf32>
    %275 = arith.addf %274, %273 : vector<64x128xf32>
    %276 = arith.divf %274, %275 : vector<64x128xf32>
    %277 = vector.extract_strided_slice %276 {offsets = [0, 0], sizes = [32, 128], strides = [1, 1]} : vector<64x128xf32> to vector<32x128xf32>
    %278 = vector.extract_strided_slice %276 {offsets = [32, 0], sizes = [32, 128], strides = [1, 1]} : vector<64x128xf32> to vector<32x128xf32>
    %279 = vector.extract_strided_slice %267 {offsets = [64, 0], sizes = [32, 128], strides = [1, 1]} : vector<96x128xf32> to vector<32x128xf32>
    %280 = vector.extract_strided_slice %268 {offsets = [64, 0], sizes = [32, 128], strides = [1, 1]} : vector<96x128xf32> to vector<32x128xf32>
    %281 = arith.addf %280, %18 : vector<32x128xf32>
    %282 = arith.mulf %277, %281 : vector<32x128xf32>
    %283 = arith.addf %279, %282 : vector<32x128xf32>
    %284 = math.tanh %283 : vector<32x128xf32>
    %285 = arith.subf %262, %284 : vector<32x128xf32>
    %286 = arith.mulf %278, %285 : vector<32x128xf32>
    %287 = arith.addf %284, %286 : vector<32x128xf32>
    %c4_87 = arith.constant 4 : index
    %c0_88 = arith.constant 0 : index
    %c0_89 = arith.constant 0 : index
    %288 = vector.load %arg18[%c4_87, %c0_88, %c0_89] : memref<8x32x128xf32, #tpu.memory_space<vmem>>, vector<1x32x128xf32>
    %289 = vector.shape_cast %288 : vector<1x32x128xf32> to vector<32x128xf32>
    %290 = vector.shape_cast %287 : vector<32x128xf32> to vector<1x32x128xf32>
    tpu.vector_store %arg18[%c4_87, %c0_88, %c0_89], %290 {strides = array<i32>} : memref<8x32x128xf32, #tpu.memory_space<vmem>>, vector<1x32x128xf32>,
    %c5_90 = arith.constant 5 : index
    %c0_91 = arith.constant 0 : index
    %c0_92 = arith.constant 0 : index
    %291 = vector.load %arg19[%c5_90, %c0_91, %c0_92] : memref<8x96x128xf32, #tpu.memory_space<vmem>>, vector<1x96x128xf32>
    %292 = vector.shape_cast %291 : vector<1x96x128xf32> to vector<96x128xf32>
    %cst_93 = arith.constant dense<0.000000e+00> : vector<96x128xf32>
    %293 = tpu.matmul %20, %287, %cst_93 {dimension_numbers = #tpu.dot_dimension_numbers<[1], [0], [0], [1], [0, 0, 1, 1], [], []>} : vector<96x32xf32>, vector<32x128xf32>, vector<96x128xf32> -> vector<96x128xf32>
    %294 = vector.extract_strided_slice %292 {offsets = [0, 0], sizes = [64, 128], strides = [1, 1]} : vector<96x128xf32> to vector<64x128xf32>
    %295 = vector.extract_strided_slice %293 {offsets = [0, 0], sizes = [64, 128], strides = [1, 1]} : vector<96x128xf32> to vector<64x128xf32>
    %296 = arith.addf %294, %295 : vector<64x128xf32>
    %297 = arith.negf %296 : vector<64x128xf32>
    %298 = math.exp %297 : vector<64x128xf32>
    %cst_94 = arith.constant 1.000000e+00 : f32
    %299 = vector.broadcast %cst_94 : f32 to vector<64x128xf32>
    %300 = arith.addf %299, %298 : vector<64x128xf32>
    %301 = arith.divf %299, %300 : vector<64x128xf32>
    %302 = vector.extract_strided_slice %301 {offsets = [0, 0], sizes = [32, 128], strides = [1, 1]} : vector<64x128xf32> to vector<32x128xf32>
    %303 = vector.extract_strided_slice %301 {offsets = [32, 0], sizes = [32, 128], strides = [1, 1]} : vector<64x128xf32> to vector<32x128xf32>
    %304 = vector.extract_strided_slice %292 {offsets = [64, 0], sizes = [32, 128], strides = [1, 1]} : vector<96x128xf32> to vector<32x128xf32>
    %305 = vector.extract_strided_slice %293 {offsets = [64, 0], sizes = [32, 128], strides = [1, 1]} : vector<96x128xf32> to vector<32x128xf32>
    %306 = arith.addf %305, %18 : vector<32x128xf32>
    %307 = arith.mulf %302, %306 : vector<32x128xf32>
    %308 = arith.addf %304, %307 : vector<32x128xf32>
    %309 = math.tanh %308 : vector<32x128xf32>
    %310 = arith.subf %287, %309 : vector<32x128xf32>
    %311 = arith.mulf %303, %310 : vector<32x128xf32>
    %312 = arith.addf %309, %311 : vector<32x128xf32>
    %c5_95 = arith.constant 5 : index
    %c0_96 = arith.constant 0 : index
    %c0_97 = arith.constant 0 : index
    %313 = vector.load %arg18[%c5_95, %c0_96, %c0_97] : memref<8x32x128xf32, #tpu.memory_space<vmem>>, vector<1x32x128xf32>
    %314 = vector.shape_cast %313 : vector<1x32x128xf32> to vector<32x128xf32>
    %315 = vector.shape_cast %312 : vector<32x128xf32> to vector<1x32x128xf32>
    tpu.vector_store %arg18[%c5_95, %c0_96, %c0_97], %315 {strides = array<i32>} : memref<8x32x128xf32, #tpu.memory_space<vmem>>, vector<1x32x128xf32>,
    %c6_98 = arith.constant 6 : index
    %c0_99 = arith.constant 0 : index
    %c0_100 = arith.constant 0 : index
    %316 = vector.load %arg19[%c6_98, %c0_99, %c0_100] : memref<8x96x128xf32, #tpu.memory_space<vmem>>, vector<1x96x128xf32>
    %317 = vector.shape_cast %316 : vector<1x96x128xf32> to vector<96x128xf32>
    %cst_101 = arith.constant dense<0.000000e+00> : vector<96x128xf32>
    %318 = tpu.matmul %20, %312, %cst_101 {dimension_numbers = #tpu.dot_dimension_numbers<[1], [0], [0], [1], [0, 0, 1, 1], [], []>} : vector<96x32xf32>, vector<32x128xf32>, vector<96x128xf32> -> vector<96x128xf32>
    %319 = vector.extract_strided_slice %317 {offsets = [0, 0], sizes = [64, 128], strides = [1, 1]} : vector<96x128xf32> to vector<64x128xf32>
    %320 = vector.extract_strided_slice %318 {offsets = [0, 0], sizes = [64, 128], strides = [1, 1]} : vector<96x128xf32> to vector<64x128xf32>
    %321 = arith.addf %319, %320 : vector<64x128xf32>
    %322 = arith.negf %321 : vector<64x128xf32>
    %323 = math.exp %322 : vector<64x128xf32>
    %cst_102 = arith.constant 1.000000e+00 : f32
    %324 = vector.broadcast %cst_102 : f32 to vector<64x128xf32>
    %325 = arith.addf %324, %323 : vector<64x128xf32>
    %326 = arith.divf %324, %325 : vector<64x128xf32>
    %327 = vector.extract_strided_slice %326 {offsets = [0, 0], sizes = [32, 128], strides = [1, 1]} : vector<64x128xf32> to vector<32x128xf32>
    %328 = vector.extract_strided_slice %326 {offsets = [32, 0], sizes = [32, 128], strides = [1, 1]} : vector<64x128xf32> to vector<32x128xf32>
    %329 = vector.extract_strided_slice %317 {offsets = [64, 0], sizes = [32, 128], strides = [1, 1]} : vector<96x128xf32> to vector<32x128xf32>
    %330 = vector.extract_strided_slice %318 {offsets = [64, 0], sizes = [32, 128], strides = [1, 1]} : vector<96x128xf32> to vector<32x128xf32>
    %331 = arith.addf %330, %18 : vector<32x128xf32>
    %332 = arith.mulf %327, %331 : vector<32x128xf32>
    %333 = arith.addf %329, %332 : vector<32x128xf32>
    %334 = math.tanh %333 : vector<32x128xf32>
    %335 = arith.subf %312, %334 : vector<32x128xf32>
    %336 = arith.mulf %328, %335 : vector<32x128xf32>
    %337 = arith.addf %334, %336 : vector<32x128xf32>
    %c6_103 = arith.constant 6 : index
    %c0_104 = arith.constant 0 : index
    %c0_105 = arith.constant 0 : index
    %338 = vector.load %arg18[%c6_103, %c0_104, %c0_105] : memref<8x32x128xf32, #tpu.memory_space<vmem>>, vector<1x32x128xf32>
    %339 = vector.shape_cast %338 : vector<1x32x128xf32> to vector<32x128xf32>
    %340 = vector.shape_cast %337 : vector<32x128xf32> to vector<1x32x128xf32>
    tpu.vector_store %arg18[%c6_103, %c0_104, %c0_105], %340 {strides = array<i32>} : memref<8x32x128xf32, #tpu.memory_space<vmem>>, vector<1x32x128xf32>,
    %c7_106 = arith.constant 7 : index
    %c0_107 = arith.constant 0 : index
    %c0_108 = arith.constant 0 : index
    %341 = vector.load %arg19[%c7_106, %c0_107, %c0_108] : memref<8x96x128xf32, #tpu.memory_space<vmem>>, vector<1x96x128xf32>
    %342 = vector.shape_cast %341 : vector<1x96x128xf32> to vector<96x128xf32>
    %cst_109 = arith.constant dense<0.000000e+00> : vector<96x128xf32>
    %343 = tpu.matmul %20, %337, %cst_109 {dimension_numbers = #tpu.dot_dimension_numbers<[1], [0], [0], [1], [0, 0, 1, 1], [], []>} : vector<96x32xf32>, vector<32x128xf32>, vector<96x128xf32> -> vector<96x128xf32>
    %344 = vector.extract_strided_slice %342 {offsets = [0, 0], sizes = [64, 128], strides = [1, 1]} : vector<96x128xf32> to vector<64x128xf32>
    %345 = vector.extract_strided_slice %343 {offsets = [0, 0], sizes = [64, 128], strides = [1, 1]} : vector<96x128xf32> to vector<64x128xf32>
    %346 = arith.addf %344, %345 : vector<64x128xf32>
    %347 = arith.negf %346 : vector<64x128xf32>
    %348 = math.exp %347 : vector<64x128xf32>
    %cst_110 = arith.constant 1.000000e+00 : f32
    %349 = vector.broadcast %cst_110 : f32 to vector<64x128xf32>
    %350 = arith.addf %349, %348 : vector<64x128xf32>
    %351 = arith.divf %349, %350 : vector<64x128xf32>
    %352 = vector.extract_strided_slice %351 {offsets = [0, 0], sizes = [32, 128], strides = [1, 1]} : vector<64x128xf32> to vector<32x128xf32>
    %353 = vector.extract_strided_slice %351 {offsets = [32, 0], sizes = [32, 128], strides = [1, 1]} : vector<64x128xf32> to vector<32x128xf32>
    %354 = vector.extract_strided_slice %342 {offsets = [64, 0], sizes = [32, 128], strides = [1, 1]} : vector<96x128xf32> to vector<32x128xf32>
    %355 = vector.extract_strided_slice %343 {offsets = [64, 0], sizes = [32, 128], strides = [1, 1]} : vector<96x128xf32> to vector<32x128xf32>
    %356 = arith.addf %355, %18 : vector<32x128xf32>
    %357 = arith.mulf %352, %356 : vector<32x128xf32>
    %358 = arith.addf %354, %357 : vector<32x128xf32>
    %359 = math.tanh %358 : vector<32x128xf32>
    %360 = arith.subf %337, %359 : vector<32x128xf32>
    %361 = arith.mulf %353, %360 : vector<32x128xf32>
    %362 = arith.addf %359, %361 : vector<32x128xf32>
    %c7_111 = arith.constant 7 : index
    %c0_112 = arith.constant 0 : index
    %c0_113 = arith.constant 0 : index
    %363 = vector.load %arg18[%c7_111, %c0_112, %c0_113] : memref<8x32x128xf32, #tpu.memory_space<vmem>>, vector<1x32x128xf32>
    %364 = vector.shape_cast %363 : vector<1x32x128xf32> to vector<32x128xf32>
    %365 = vector.shape_cast %362 : vector<32x128xf32> to vector<1x32x128xf32>
    tpu.vector_store %arg18[%c7_111, %c0_112, %c0_113], %365 {strides = array<i32>} : memref<8x32x128xf32, #tpu.memory_space<vmem>>, vector<1x32x128xf32>,
    %c0_114 = arith.constant 0 : index
    %c0_115 = arith.constant 0 : index
    %366 = vector.load %arg13[%c0_114, %c0_115] : memref<32x32xf32, #tpu.memory_space<vmem>>, vector<32x32xf32>
    %cst_116 = arith.constant dense<0.000000e+00> : vector<32x128xf32>
    %367 = tpu.matmul %366, %362, %cst_116 {dimension_numbers = #tpu.dot_dimension_numbers<[1], [0], [0], [1], [0, 0, 1, 1], [], []>} : vector<32x32xf32>, vector<32x128xf32>, vector<32x128xf32> -> vector<32x128xf32>
    %c0_117 = arith.constant 0 : index
    %c0_118 = arith.constant 0 : index
    %368 = vector.load %arg14[%c0_117, %c0_118] : memref<32x1xf32, #tpu.memory_space<vmem>>, vector<32x1xf32>
    %369 = vector.broadcast %368 : vector<32x1xf32> to vector<32x128xf32>
    %370 = arith.addf %367, %369 : vector<32x128xf32>
    %cst_119 = arith.constant dense<0.000000e+00> : vector<128xf32>
    %371 = vector.multi_reduction <add>, %370, %cst_119 [0] : vector<32x128xf32> to vector<128xf32>
    %372 = vector.shape_cast %371 : vector<128xf32> to vector<1x128xf32>
    %c0_120 = arith.constant 0 : index
    %c0_121 = arith.constant 0 : index
    %373 = vector.load %arg12[%c0_120, %c0_121] : memref<32x1xf32, #tpu.memory_space<vmem>>, vector<32x1xf32>
    %c0_122 = arith.constant 0 : index
    %c0_123 = arith.constant 0 : index
    %c0_124 = arith.constant 0 : index
    %374 = vector.load %arg18[%c0_122, %c0_123, %c0_124] : memref<8x32x128xf32, #tpu.memory_space<vmem>>, vector<8x32x128xf32>
    %375 = vector.shape_cast %370 : vector<32x128xf32> to vector<1x32x128xf32>
    %376 = vector.broadcast %375 : vector<1x32x128xf32> to vector<8x32x128xf32>
    %377 = arith.mulf %376, %374 : vector<8x32x128xf32>
    %cst_125 = arith.constant dense<0.000000e+00> : vector<8x128xf32>
    %378 = vector.multi_reduction <add>, %377, %cst_125 [1] : vector<8x32x128xf32> to vector<8x128xf32>
    %c0_126 = arith.constant 0 : index
    %c0_127 = arith.constant 0 : index
    %379 = vector.load %arg10[%c0_126, %c0_127] : memref<32x8xf32, #tpu.memory_space<vmem>>, vector<32x8xf32>
    %cst_128 = arith.constant dense<0.000000e+00> : vector<32x128xf32>
    %380 = tpu.matmul %379, %378, %cst_128 {dimension_numbers = #tpu.dot_dimension_numbers<[1], [0], [0], [1], [0, 0, 1, 1], [], []>} : vector<32x8xf32>, vector<8x128xf32>, vector<32x128xf32> -> vector<32x128xf32>
    %381 = vector.broadcast %373 : vector<32x1xf32> to vector<32x128xf32>
    %382 = vector.broadcast %372 : vector<1x128xf32> to vector<32x128xf32>
    %383 = arith.mulf %381, %382 : vector<32x128xf32>
    %384 = arith.addf %380, %383 : vector<32x128xf32>
    %cst_129 = arith.constant dense<0xFF800000> : vector<128xf32>
    %385 = vector.multi_reduction <maximumf>, %384, %cst_129 [0] : vector<32x128xf32> to vector<128xf32>
    %386 = vector.shape_cast %385 : vector<128xf32> to vector<1x128xf32>
    %387 = vector.broadcast %386 : vector<1x128xf32> to vector<32x128xf32>
    %388 = arith.subf %384, %387 : vector<32x128xf32>
    %389 = math.exp %388 : vector<32x128xf32>
    %cst_130 = arith.constant dense<0.000000e+00> : vector<128xf32>
    %390 = vector.multi_reduction <add>, %389, %cst_130 [0] : vector<32x128xf32> to vector<128xf32>
    %391 = vector.shape_cast %390 : vector<128xf32> to vector<1x128xf32>
    %392 = tpu.reciprocal %391 {approx = true} : vector<1x128xf32> -> vector<1x128xf32>
    %393 = vector.broadcast %392 : vector<1x128xf32> to vector<32x128xf32>
    %394 = arith.mulf %389, %393 : vector<32x128xf32>
    %c0_131 = arith.constant 0 : index
    %c0_132 = arith.constant 0 : index
    %395 = vector.load %arg11[%c0_131, %c0_132] : memref<8x32xf32, #tpu.memory_space<vmem>>, vector<8x32xf32>
    %cst_133 = arith.constant dense<0.000000e+00> : vector<8x128xf32>
    %396 = tpu.matmul %395, %394, %cst_133 {dimension_numbers = #tpu.dot_dimension_numbers<[1], [0], [0], [1], [0, 0, 1, 1], [], []>} : vector<8x32xf32>, vector<32x128xf32>, vector<8x128xf32> -> vector<8x128xf32>
    %397 = vector.shape_cast %396 : vector<8x128xf32> to vector<8x1x128xf32>
    %398 = vector.broadcast %397 : vector<8x1x128xf32> to vector<8x32x128xf32>
    %399 = arith.mulf %398, %374 : vector<8x32x128xf32>
    %cst_134 = arith.constant dense<0.000000e+00> : vector<32x128xf32>
    %400 = vector.multi_reduction <add>, %399, %cst_134 [0] : vector<8x32x128xf32> to vector<32x128xf32>
    %401 = vector.broadcast %373 : vector<32x1xf32> to vector<32x128xf32>
    %402 = arith.mulf %401, %394 : vector<32x128xf32>
    %cst_135 = arith.constant dense<0.000000e+00> : vector<128xf32>
    %403 = vector.multi_reduction <add>, %402, %cst_135 [0] : vector<32x128xf32> to vector<128xf32>
    %404 = vector.shape_cast %403 : vector<128xf32> to vector<1x128xf32>
    %405 = vector.broadcast %404 : vector<1x128xf32> to vector<32x128xf32>
    %406 = arith.addf %400, %405 : vector<32x128xf32>
    %c0_136 = arith.constant 0 : index
    %c0_137 = arith.constant 0 : index
    %407 = vector.load %arg15[%c0_136, %c0_137] : memref<32x32xf32, #tpu.memory_space<vmem>>, vector<32x32xf32>
    %cst_138 = arith.constant dense<0.000000e+00> : vector<32x128xf32>
    %408 = tpu.matmul %407, %406, %cst_138 {dimension_numbers = #tpu.dot_dimension_numbers<[1], [0], [0], [1], [0, 0, 1, 1], [], []>} : vector<32x32xf32>, vector<32x128xf32>, vector<32x128xf32> -> vector<32x128xf32>
    %c0_139 = arith.constant 0 : index
    %c0_140 = arith.constant 0 : index
    %409 = vector.load %arg16[%c0_139, %c0_140] : memref<32x1xf32, #tpu.memory_space<vmem>>, vector<32x1xf32>
    %410 = vector.broadcast %409 : vector<32x1xf32> to vector<32x128xf32>
    %411 = arith.addf %408, %410 : vector<32x128xf32>
    %c0_141 = arith.constant 0 : index
    %c0_142 = arith.constant 0 : index
    %412 = vector.load %arg17[%c0_141, %c0_142] : memref<32x128xf32, #tpu.memory_space<vmem>>, vector<32x128xf32>
    tpu.vector_store %arg17[%c0_141, %c0_142], %411 {strides = array<i32>} : memref<32x128xf32, #tpu.memory_space<vmem>>, vector<32x128xf32>,
    return
  }
  func.func @transform_0(%arg0: i32) -> (i32, i32) {
    %c0_i32 = arith.constant 0 : i32
    %c0_i32_0 = arith.constant 0 : i32
    return %c0_i32, %arg0 : i32, i32
  }
  func.func @transform_1(%arg0: i32) -> (i32, i32) {
    %c0_i32 = arith.constant 0 : i32
    %c0_i32_0 = arith.constant 0 : i32
    %c0_i32_1 = arith.constant 0 : i32
    return %c0_i32, %c0_i32_0 : i32, i32
  }
  func.func @transform_2(%arg0: i32) -> (i32, i32) {
    %c0_i32 = arith.constant 0 : i32
    %c0_i32_0 = arith.constant 0 : i32
    %c0_i32_1 = arith.constant 0 : i32
    return %c0_i32, %c0_i32_0 : i32, i32
  }
  func.func @transform_3(%arg0: i32) -> (i32, i32) {
    %c0_i32 = arith.constant 0 : i32
    %c0_i32_0 = arith.constant 0 : i32
    %c0_i32_1 = arith.constant 0 : i32
    return %c0_i32, %c0_i32_0 : i32, i32
  }
  func.func @transform_4(%arg0: i32) -> (i32, i32) {
    %c0_i32 = arith.constant 0 : i32
    %c0_i32_0 = arith.constant 0 : i32
    %c0_i32_1 = arith.constant 0 : i32
    return %c0_i32, %c0_i32_0 : i32, i32
  }
  func.func @transform_5(%arg0: i32) -> (i32, i32) {
    %c0_i32 = arith.constant 0 : i32
    %c0_i32_0 = arith.constant 0 : i32
    %c0_i32_1 = arith.constant 0 : i32
    return %c0_i32, %c0_i32_0 : i32, i32
  }
  func.func @transform_6(%arg0: i32) -> (i32, i32) {
    %c0_i32 = arith.constant 0 : i32
    %c0_i32_0 = arith.constant 0 : i32
    %c0_i32_1 = arith.constant 0 : i32
    return %c0_i32, %c0_i32_0 : i32, i32
  }
  func.func @transform_7(%arg0: i32) -> (i32, i32) {
    %c0_i32 = arith.constant 0 : i32
    %c0_i32_0 = arith.constant 0 : i32
    %c0_i32_1 = arith.constant 0 : i32
    return %c0_i32, %c0_i32_0 : i32, i32
  }
  func.func @transform_8(%arg0: i32) -> (i32, i32) {
    %c0_i32 = arith.constant 0 : i32
    %c0_i32_0 = arith.constant 0 : i32
    %c0_i32_1 = arith.constant 0 : i32
    return %c0_i32, %c0_i32_0 : i32, i32
  }
  func.func @transform_9(%arg0: i32) -> (i32, i32) {
    %c0_i32 = arith.constant 0 : i32
    %c0_i32_0 = arith.constant 0 : i32
    %c0_i32_1 = arith.constant 0 : i32
    return %c0_i32, %c0_i32_0 : i32, i32
  }
  func.func @transform_10(%arg0: i32) -> (i32, i32) {
    %c0_i32 = arith.constant 0 : i32
    %c0_i32_0 = arith.constant 0 : i32
    %c0_i32_1 = arith.constant 0 : i32
    return %c0_i32, %c0_i32_0 : i32, i32
  }
  func.func @transform_11(%arg0: i32) -> (i32, i32) {
    %c0_i32 = arith.constant 0 : i32
    %c0_i32_0 = arith.constant 0 : i32
    %c0_i32_1 = arith.constant 0 : i32
    return %c0_i32, %c0_i32_0 : i32, i32
  }
  func.func @transform_12(%arg0: i32) -> (i32, i32) {
    %c0_i32 = arith.constant 0 : i32
    %c0_i32_0 = arith.constant 0 : i32
    %c0_i32_1 = arith.constant 0 : i32
    return %c0_i32, %c0_i32_0 : i32, i32
  }
  func.func @transform_13(%arg0: i32) -> (i32, i32) {
    %c0_i32 = arith.constant 0 : i32
    %c0_i32_0 = arith.constant 0 : i32
    %c0_i32_1 = arith.constant 0 : i32
    return %c0_i32, %c0_i32_0 : i32, i32
  }
  func.func @transform_14(%arg0: i32) -> (i32, i32) {
    %c0_i32 = arith.constant 0 : i32
    %c0_i32_0 = arith.constant 0 : i32
    %c0_i32_1 = arith.constant 0 : i32
    return %c0_i32, %c0_i32_0 : i32, i32
  }
  func.func @transform_15(%arg0: i32) -> (i32, i32) {
    %c0_i32 = arith.constant 0 : i32
    %c0_i32_0 = arith.constant 0 : i32
    %c0_i32_1 = arith.constant 0 : i32
    return %c0_i32, %c0_i32_0 : i32, i32
  }
  func.func @transform_16(%arg0: i32) -> (i32, i32) {
    %c0_i32 = arith.constant 0 : i32
    %c0_i32_0 = arith.constant 0 : i32
    return %c0_i32, %arg0 : i32, i32
  }
}

</mosaic_0001>

<bundles_post_ra>
// kernel: tpu_custom_call.1
= control target key start
LH: loop header
LB: loop body
LE: loop exit
PB: predicated region body
PF: predicated region fallthrough
CT: control target
= control target key end

     0   :  { %s7948_s0 = inlined_call_operand.vmem [shape: f32[8,128], index: 0, kind: input, shape index: {}]   ;;  %s7949_s1 = inlined_call_operand.vmem [shape: f32[32,1], index: 1, kind: input, shape index: {}]   ;;  %s7950_s2 = inlined_call_operand.vmem [shape: f32[32,1], index: 2, kind: input, shape index: {}]   ;;  %s7951_s3 = inlined_call_operand.vmem [shape: f32[32,1], index: 3, kind: input, shape index: {}]   ;;  %s7952_s4 = inlined_call_operand.vmem [shape: f32[32,1], index: 4, kind: input, shape index: {}]   ;;  %s7953_s5 = inlined_call_operand.vmem [shape: f32[96,32], index: 5, kind: input, shape index: {}]   ;;  %s7954_s6 = inlined_call_operand.vmem [shape: f32[96,1], index: 6, kind: input, shape index: {}]   ;;  %s7955_s7 = inlined_call_operand.vmem [shape: f32[96,32], index: 7, kind: input, shape index: {}]   ;;  %s7956_s8 = inlined_call_operand.vmem [shape: f32[32,1], index: 8, kind: input, shape index: {}]   ;;  %s7957_s9 = inlined_call_operand.vmem [shape: f32[32,8], index: 9, kind: input, shape index: {}]   ;;  %s7958_s10 = inlined_call_operand.vmem [shape: f32[8,32], index: 10, kind: input, shape index: {}]   ;;  %s7959_s11 = inlined_call_operand.vmem [shape: f32[32,1], index: 11, kind: input, shape index: {}]   ;;  %s7960_s12 = inlined_call_operand.vmem [shape: f32[32,32], index: 12, kind: input, shape index: {}]   ;;  %s7961_s13 = inlined_call_operand.vmem [shape: f32[32,1], index: 13, kind: input, shape index: {}]   ;;  %s7962_s14 = inlined_call_operand.vmem [shape: f32[32,32], index: 14, kind: input, shape index: {}]   ;;  %s7963_s15 = inlined_call_operand.vmem [shape: f32[32,1], index: 15, kind: input, shape index: {}]   ;;  %s7964_s16 = inlined_call_operand.hbm [shape: f32[32,128], index: 16, kind: output, shape index: {}]  }
   0x1   :  { %8009 = sst [smem:[#allocation37_spill]] %s7948_s0 }
   0x2   :  { %v79_v0 = vld [vmem:[%s7950_s2] sm:$0xff]  ;;  %v6294_v2 = vmov 0   ;;  %v80_v3 = vld [vmem:[%s7950_s2 + $0x8] sm:$0xff]  ;;  %v58_v5 = vld [vmem:[%s7949_s1 + $0x18] sm:$0xff] }
   0x3   :  { %v55_v1 = vld [vmem:[%s7949_s1] sm:$0xff]  ;;  %5798 = vset.pattern.permute.xlu1 %v6294_v2  ;;  %5797 = vset.pattern.permute.xlu0 %v6294_v2  ;;  %v56_v4 = vld [vmem:[%s7949_s1 + $0x8] sm:$0xff]  ;;  %v57_v6 = vld [vmem:[%s7949_s1 + $0x10] sm:$0xff] }
   0x4   :  { %85 = vperm.xlu1 %5798, %v79_v0   ;;  %61 = vperm.xlu0 %5797, %v55_v1   ;;  %v82_v7 = vld [vmem:[%s7950_s2 + $0x18] sm:$0xff]  ;;  %v81_v8 = vld [vmem:[%s7950_s2 + $0x10] sm:$0xff]  ;;  %v104_v9 = vld [vmem:[%s7951_s3 + $0x8] sm:$0xff] }
   0x5   :  { %v103_v10 = vld [vmem:[%s7951_s3] sm:$0xff] }
   0x8   :  { %90 = vperm.xlu1 %5798, %v80_v3   ;;  %66 = vperm.xlu0 %5797, %v56_v4  }
   0xc   :  { %76 = vperm.xlu1 %5798, %v58_v5   ;;  %71 = vperm.xlu0 %5797, %v57_v6  }
  0x10   :  { %100 = vperm.xlu1 %5798, %v82_v7   ;;  %95 = vperm.xlu0 %5797, %v81_v8  }
  0x11   :  { %21 = vsyncpa [#allocation5], 0  ;;  %v128_v11 = vld [vmem:[%s7952_s4 + $0x8] sm:$0xff]  ;;  %v127_v12 = vld [vmem:[%s7952_s4] sm:$0xff]  ;;  %vm319_vm0 = vcmask 261120   ;;  %v271_v46 = vlaneseq  ;;  %s8012_s19 = sld [smem:[#allocation37_spill]] }
  0x12   :  { %v106_v13 = vld [vmem:[%s7951_s3 + $0x18] sm:$0xff]  ;;  %v105_v14 = vld [vmem:[%s7951_s3 + $0x10] sm:$0xff]  ;;  %v152_v17 = vld [vmem:[%s7954_s6 + $0x8] sm:$0xff]  ;;  %vm3963_vm1 = vcmask 64512   ;;  %vm3948_vm2 = vcmask 1041409   ;;  %vm3950_vm3 = vcmask 1042434  }
  0x13   :  { %v130_v15 = vld [vmem:[%s7952_s4 + $0x18] sm:$0xff]  ;;  %v129_v16 = vld [vmem:[%s7952_s4 + $0x10] sm:$0xff]  ;;  %v151_v18 = vld [vmem:[%s7954_s6] sm:$0xff]  ;;  %v6528_v47 = vshrl.u32 %v271_v46, 7  ;;  %vm3952_vm4 = vcmask 1043459   ;;  %vm3954_vm5 = vcmask 1044484  }
  0x14   :  { %114 = vperm.xlu1 %5798, %v104_v9   ;;  %109 = vperm.xlu0 %5797, %v103_v10   ;;  %v154_v19 = vld [vmem:[%s7954_s6 + $0x18] sm:$0xff]  ;;  %v153_v20 = vld [vmem:[%s7954_s6 + $0x10] sm:$0xff]  ;;  %v156_v21 = vld [vmem:[%s7954_s6 + $0x28] sm:$0xff]  ;;  %vm3956_vm6 = vcmask 1045509   ;;  %vm3958_vm7 = vcmask 1046534   ;;  %vm3960_vm8 = vcmask 1047559  }
  0x15   :  { %v155_v22 = vld [vmem:[%s7954_s6 + $0x20] sm:$0xff]  ;;  %v158_v23 = vld [vmem:[%s7954_s6 + $0x38] sm:$0xff]  ;;  %v157_v24 = vld [vmem:[%s7954_s6 + $0x30] sm:$0xff]  ;;  %8010 = vst [vmem:[#allocation7_spill] sm:$0xff] %v6528_v47  ;;  %v6531_v48 = vsub.s32 0, %v6528_v47  ;;  %v495_v52 = vsub.s32 1, %v6528_v47 }
  0x16   :  { %v224_v25 = vld [vmem:[%s7956_s8 + $0x8] sm:$0xff]  ;;  %v223_v26 = vld [vmem:[%s7956_s8] sm:$0xff]  ;;  %v226_v29 = vld [vmem:[%s7956_s8 + $0x18] sm:$0xff]  ;;  %v681_v59 = vsub.s32 2, %v6528_v47  ;;  %v867_v62 = vsub.s32 3, %v6528_v47  ;;  %v1053_v0 = vsub.s32 4, %v6528_v47 }
  0x17   :  { %v160_v27 = vld [vmem:[%s7954_s6 + $0x48] sm:$0xff]  ;;  %v159_v28 = vld [vmem:[%s7954_s6 + $0x40] sm:$0xff]  ;;  %v225_v30 = vld [vmem:[%s7956_s8 + $0x10] sm:$0xff]  ;;  %8011 = vst [vmem:[#allocation8_spill] sm:$0xff] %v6531_v48  ;;  %v1239_v1 = vsub.s32 5, %v6528_v47  ;;  %v1425_v2 = vsub.s32 6, %v6528_v47 }
  0x18   :  { %138 = vperm.xlu1 %5798, %v128_v11   ;;  %133 = vperm.xlu0 %5797, %v127_v12   ;;  %v162_v31 = vld [vmem:[%s7954_s6 + $0x58] sm:$0xff]  ;;  %v161_v32 = vld [vmem:[%s7954_s6 + $0x50] sm:$0xff]  ;;  %v3643_v33 = vld [vmem:[%s7961_s13 + $0x8] sm:$0xff]  ;;  %v1611_v8 = vsub.s32 7, %v6528_v47  ;;  %vm6297_vm9 = vmmov 0   ;;  %s6299_s17 = smov [#allocation4]  }
  0x19   :  { %v3642_v34 = vld [vmem:[%s7961_s13] sm:$0xff]  ;;  %v3645_v36 = vld [vmem:[%s7961_s13 + $0x18] sm:$0xff]  ;;  %v3644_v37 = vld [vmem:[%s7961_s13 + $0x10] sm:$0xff]  ;;  %s4471_s18 = sshll.u32 %s6299_s17, 4  ;;  %s4472_s18 = int_to_ptr.vmem [resolvable:$true] %s4471_s18 }
  0x1a   :  { %v6492_v35 = vld [vmem:[%s7953_s5] sm:$0xff]  ;;  %v3773_v38 = vld [vmem:[%s7959_s11 + $0x8] sm:$0xff]  ;;  %v3775_v40 = vld [vmem:[%s7959_s11 + $0x18] sm:$0xff]  ;;  %p6275_p1 = scmp.lt.s32.totalorder %s4472_s18, %s4472_s18 }
  0x1b   :  { %5070 = vmatprep.mubr.msk.f32.mxu0 %vm319_vm0, %v6492_v35  ;;  %5096 = vmatprep.mubr.msk.f32.mxu1 %vm319_vm0, %v6492_v35  ;;  %v3772_v39 = vld [vmem:[%s7959_s11] sm:$0xff]  ;;  %v3774_v41 = vld [vmem:[%s7959_s11 + $0x10] sm:$0xff]  ;;  %v4342_v42 = vld [vmem:[%s7963_s15 + $0x8] sm:$0xff] }
  0x1c   :  { %124 = vperm.xlu1 %5798, %v106_v13   ;;  %119 = vperm.xlu0 %5797, %v105_v14   ;;  %v4341_v43 = vld [vmem:[%s7963_s15] sm:$0xff]  ;;  %v4344_v44 = vld [vmem:[%s7963_s15 + $0x18] sm:$0xff]  ;;  %v4343_v45 = vld [vmem:[%s7963_s15 + $0x10] sm:$0xff] }
  0x1d   :  { %v54_v51 = vld [vmem:[%s8012_s19] sm:$0xff] }
  0x1e   :  { %v6540_v53 = vrot.slane %v54_v51, %v6531_v48  ;;  %v6546_v56 = vrot.slane %v54_v51, %v495_v52  ;;  %v6560_v3 = vrot.slane %v54_v51, %v681_v59  ;;  %v6570_v9 = vrot.slane %v54_v51, %v867_v62 }
  0x1f   :  { %v6576_v13 = vrot.slane %v54_v51, %v1053_v0  ;;  %v6578_v14 = vrot.slane %v54_v51, %v1239_v1 }
  0x20   :  { %148 = vperm.xlu1 %5798, %v130_v15   ;;  %143 = vperm.xlu0 %5797, %v129_v16   ;;  %v6580_v15 = vrot.slane %v54_v51, %v1425_v2 }
  0x24   :  { %170 = vperm.xlu1 %5798, %v152_v17   ;;  %165 = vperm.xlu0 %5797, %v151_v18  }
  0x28   :  { %180 = vperm.xlu1 %5798, %v154_v19   ;;  %175 = vperm.xlu0 %5797, %v153_v20  }
  0x2c   :  { %190 = vperm.xlu1 %5798, %v156_v21   ;;  %185 = vperm.xlu0 %5797, %v155_v22  }
  0x30   :  { %200 = vperm.xlu1 %5798, %v158_v23   ;;  %195 = vperm.xlu0 %5797, %v157_v24  }
  0x34   :  { %234 = vperm.xlu1 %5798, %v224_v25   ;;  %229 = vperm.xlu0 %5797, %v223_v26   ;;  %v6593_v25 = vrot.slane %v54_v51, %v1611_v8 }
  0x38   :  { %210 = vperm.xlu1 %5798, %v160_v27   ;;  %205 = vperm.xlu0 %5797, %v159_v28  }
  0x3c   :  { %244 = vperm.xlu1 %5798, %v226_v29   ;;  %239 = vperm.xlu0 %5797, %v225_v30  }
  0x40   :  { %220 = vperm.xlu1 %5798, %v162_v31   ;;  %215 = vperm.xlu0 %5797, %v161_v32  }
  0x44   :  { %3653 = vperm.xlu1 %5798, %v3643_v33   ;;  %3648 = vperm.xlu0 %5797, %v3642_v34  }
  0x48   :  { %3663 = vperm.xlu1 %5798, %v3645_v36   ;;  %3658 = vperm.xlu0 %5797, %v3644_v37  }
  0x4c   :  { %3923 = vperm.xlu1 %5798, %v3773_v38   ;;  %3918 = vperm.xlu0 %5797, %v3772_v39  }
  0x50   :  { %3933 = vperm.xlu1 %5798, %v3775_v40   ;;  %3928 = vperm.xlu0 %5797, %v3774_v41  }
  0x54   :  { %4352 = vperm.xlu1 %5798, %v4342_v42   ;;  %4347 = vperm.xlu0 %5797, %v4341_v43  }
  0x58   :  { %4362 = vperm.xlu1 %5798, %v4344_v44   ;;  %4357 = vperm.xlu0 %5797, %v4343_v45  }
  0x83   :  { %v6533_v49 = vpop.permute.xlu1 %85  ;;  %v62_v50 = vpop.permute.xlu0 %61 }
  0x84   :  { %v275_v57 = vmul.f32 %v6540_v53, %v62_v50  ;;  %v497_v61 = vmul.f32 %v6546_v56, %v62_v50  ;;  %v683_v17 = vmul.f32 %v6560_v3, %v62_v50  ;;  %v869_v28 = vmul.f32 %v6570_v9, %v62_v50 }
  0x85   :  { %v1055_v29 = vmul.f32 %v6576_v13, %v62_v50  ;;  %v1241_v30 = vmul.f32 %v6578_v14, %v62_v50  ;;  %v1427_v32 = vmul.f32 %v6580_v15, %v62_v50  ;;  %v6611_v45 = vmul.f32 %v6593_v25, %v62_v50 }
  0x86   :  { %v279_v63 = vadd.f32 %v275_v57, %v6533_v49  ;;  %v501_v7 = vadd.f32 %v497_v61, %v6533_v49  ;;  %v687_v36 = vadd.f32 %v683_v17, %v6533_v49  ;;  %v873_v44 = vadd.f32 %v869_v28, %v6533_v49 }
  0x87   :  { %v6542_v54 = vpop.permute.xlu1 %90  ;;  %v6544_v55 = vpop.permute.xlu0 %66  ;;  %v6616_v51 = vadd.f32 %v1055_v29, %v6533_v49  ;;  %v6619_v52 = vadd.f32 %v1241_v30, %v6533_v49  ;;  %v6623_v61 = vadd.f32 %v1427_v32, %v6533_v49 }
  0x88   :  { %v276_v4 = vmul.f32 %v6540_v53, %v6544_v55  ;;  %v498_v5 = vmul.f32 %v6546_v56, %v6544_v55  ;;  %v4482_v12 = vmul.f32 -1.442695, %v279_v63  ;;  %v4498_v24 = vmul.f32 -1.442695, %v501_v7 }
  0x89   :  { %v684_v26 = vmul.f32 %v6560_v3, %v6544_v55  ;;  %v870_v37 = vmul.f32 %v6570_v9, %v6544_v55  ;;  %v4514_v57 = vmul.f32 -1.442695, %v687_v36  ;;  %v6627_v50 = vmul.f32 %v6576_v13, %v6544_v55 }
  0x8a   :  { %v280_v20 = vadd.f32 %v276_v4, %v6542_v54  ;;  %v502_v23 = vadd.f32 %v498_v5, %v6542_v54  ;;  %5799 = vpow2.f32 %v4482_v12  ;;  %v6631_v62 = vmul.f32 %v6578_v14, %v6544_v55 }
  0x8b   :  { %v6549_v58 = vpop.permute.xlu0 %71  ;;  %v6552_v60 = vpop.permute.xlu1 %76  ;;  %5801 = vpow2.f32 %v4498_v24  ;;  %v688_v41 = vadd.f32 %v684_v26, %v6542_v54  ;;  %v874_v59 = vadd.f32 %v870_v37, %v6542_v54  ;;  %v6635_v0 = vmul.f32 %v6580_v15, %v6544_v55 }
  0x8c   :  { %v277_v10 = vmul.f32 %v6540_v53, %v6549_v58  ;;  %v278_v16 = vmul.f32 %v6540_v53, %v6552_v60  ;;  %v499_v18 = vmul.f32 %v6546_v56, %v6549_v58  ;;  %v500_v21 = vmul.f32 %v6546_v56, %v6552_v60 }
  0x8d   :  { %v4483_v34 = vmul.f32 -1.442695, %v280_v20  ;;  %v4499_v39 = vmul.f32 -1.442695, %v502_v23  ;;  %v4515_v63 = vmul.f32 -1.442695, %v688_v41  ;;  %v686_v1 = vmul.f32 %v6560_v3, %v6552_v60 }
  0x8e   :  { %v4530_v2 = vmul.f32 -1.442695, %v873_v44  ;;  %v872_v5 = vmul.f32 %v6570_v9, %v6552_v60  ;;  %v1058_v7 = vmul.f32 %v6576_v13, %v6552_v60  ;;  %v1244_v8 = vmul.f32 %v6578_v14, %v6552_v60 }
  0x8f   :  { %v6566_v6 = vpop.permute.xlu0 %95  ;;  %v6574_v11 = vpop.permute.xlu1 %100  ;;  %5803 = vpow2.f32 %v4483_v34  ;;  %v6651_v12 = vmul.f32 %v6593_v25, %v6552_v60  ;;  %v1057_v24 = vmul.f32 %v6576_v13, %v6549_v58  ;;  %v1243_v28 = vmul.f32 %v6578_v14, %v6549_v58 }
  0x90   :  { %v281_v19 = vadd.f32 %v277_v10, %v6566_v6  ;;  %v282_v22 = vadd.f32 %v278_v16, %v6574_v11  ;;  %v503_v27 = vadd.f32 %v499_v18, %v6566_v6  ;;  %v504_v31 = vadd.f32 %v500_v21, %v6574_v11 }
  0x91   :  { %5805 = vpow2.f32 %v4499_v39  ;;  %v6647_v10 = vmul.f32 %v6580_v15, %v6552_v60  ;;  %v4531_v18 = vmul.f32 -1.442695, %v874_v59  ;;  %v690_v20 = vadd.f32 %v686_v1, %v6574_v11 }
  0x92   :  { %v4484_v33 = vmul.f32 -1.442695, %v281_v19  ;;  %v4485_v38 = vmul.f32 -1.442695, %v282_v22  ;;  %v4500_v40 = vmul.f32 -1.442695, %v503_v27  ;;  %v685_v19 = vmul.f32 %v6560_v3, %v6549_v58 }
  0x93   :  { %v4501_v42 = vmul.f32 -1.442695, %v504_v31  ;;  %v6607_v43 = vpop.permute.xlu0 %109  ;;  %v6613_v46 = vpop.permute.xlu1 %114  ;;  %v876_v21 = vadd.f32 %v872_v5, %v6574_v11  ;;  %v871_v60 = vmul.f32 %v6570_v9, %v6549_v58  ;;  %v1062_v26 = vadd.f32 %v1058_v7, %v6574_v11 }
  0x94   :  { %5807 = vpow2.f32 %v4484_v33  ;;  %v5800_v4 = vpop.eup %5799  ;;  %v689_v29 = vadd.f32 %v685_v19, %v6566_v6  ;;  %v6670_v32 = vadd.f32 %v1244_v8, %v6574_v11  ;;  %v4517_v37 = vmul.f32 -1.442695, %v690_v20 }
  0x95   :  { %5809 = vpow2.f32 %v4485_v38  ;;  %v295_v17 = vadd.f32 1.0, %v5800_v4  ;;  %v5802_v23 = vpop.eup %5801  ;;  %v875_v33 = vadd.f32 %v871_v60, %v6566_v6  ;;  %v6673_v38 = vmul.f32 -1.442695, %v876_v21 }
  0x96   :  { %5811 = vpow2.f32 %v4500_v40  ;;  %v517_v30 = vadd.f32 1.0, %v5802_v23  ;;  %v6675_v41 = vmul.f32 -1.442695, %v1062_v26  ;;  %v6681_v1 = vadd.f32 %v1243_v28, %v6566_v6 }
  0x97   :  { %5813 = vpow2.f32 %v4501_v42  ;;  %v6653_v16 = vpop.permute.xlu0 %133  ;;  %v6659_v22 = vpop.permute.xlu1 %138  ;;  %v1061_v42 = vadd.f32 %v1057_v24, %v6566_v6  ;;  %v4532_v7 = vmul.f32 -1.442695, %v875_v33  ;;  %v307_v8 = vmul.f32 %v6540_v53, %v6607_v43 }
  0x98   :  { %5815 = vpow2.f32 %v4514_v57  ;;  %v529_v19 = vmul.f32 %v6546_v56, %v6607_v43  ;;  %v530_v24 = vmul.f32 %v6546_v56, %v6613_v46 }
  0x99   :  { %5817 = vpow2.f32 %v4515_v63  ;;  %v5804_v27 = vpop.eup %5803  ;;  %v4516_v63 = vmul.f32 -1.442695, %v689_v29  ;;  %v6691_v23 = vmul.f32 -1.442695, %v1061_v42  ;;  %v311_v60 = vadd.f32 %v307_v8, %v6653_v16 }
  0x9a   :  { %5819 = vrcp.f32 %v295_v17  ;;  %v296_v34 = vadd.f32 1.0, %v5804_v27  ;;  %v533_v28 = vadd.f32 %v529_v19, %v6653_v16  ;;  %v534_v33 = vadd.f32 %v530_v24, %v6659_v22 }
  0x9b   :  { %5821 = vpow2.f32 %v4530_v2  ;;  %v5806_v31 = vpop.eup %5805  ;;  %v6678_v44 = vpop.permute.xlu0 %119  ;;  %v4546_v24 = vmul.f32 -1.442695, %v6616_v51 }
  0x9c   :  { %5823 = vpow2.f32 %v4531_v18  ;;  %v518_v39 = vadd.f32 1.0, %v5806_v31  ;;  %v6683_v2 = vpop.permute.xlu1 %124  ;;  %v308_v18 = vmul.f32 %v6540_v53, %v6613_v46  ;;  %v309_v42 = vmul.f32 %v6540_v53, %v6678_v44 }
  0x9d   :  { %5825 = vrcp.f32 %v517_v30 }
  0x9e   :  { %v5808_v36 = vpop.eup %5807  ;;  %5827 = vrcp.f32 %v296_v34  ;;  %v312_v27 = vadd.f32 %v308_v18, %v6659_v22 }
  0x9f   :  { %v5810_v40 = vpop.eup %5809  ;;  %v297_v57 = vadd.f32 1.0, %v5808_v36  ;;  %5829 = vrcp.f32 %v518_v39  ;;  %v6698_v31 = vpop.permute.xlu0 %143  ;;  %v715_v36 = vmul.f32 %v6560_v3, %v6607_v43 }
  0xa0   :  { %v5812_v59 = vpop.eup %5811  ;;  %v298_v4 = vadd.f32 1.0, %v5810_v40  ;;  %v6703_v40 = vpop.permute.xlu1 %148  ;;  %v313_v18 = vadd.f32 %v309_v42, %v6698_v31 }
  0xa1   :  { %v5814_v5 = vpop.eup %5813  ;;  %5831 = vrcp.f32 %v297_v57  ;;  %v519_v17 = vadd.f32 1.0, %v5812_v59  ;;  %v310_v57 = vmul.f32 %v6540_v53, %v6683_v2  ;;  %v1060_v59 = vadd.f32 %v6627_v50, %v6542_v54 }
  0xa2   :  { %5833 = vrcp.f32 %v298_v4  ;;  %v520_v20 = vadd.f32 1.0, %v5814_v5  ;;  %v5816_v21 = vpop.eup %5815  ;;  %v531_v5 = vmul.f32 %v6546_v56, %v6678_v44  ;;  %v1246_v53 = vadd.f32 %v6631_v62, %v6542_v54 }
  0xa3   :  { %5835 = vrcp.f32 %v519_v17  ;;  %v5818_v26 = vpop.eup %5817  ;;  %v703_v29 = vadd.f32 1.0, %v5816_v21  ;;  %v314_v50 = vadd.f32 %v310_v57, %v6703_v40 }
  0xa4   :  { %5837 = vrcp.f32 %v520_v20  ;;  %v5820_v30 = vpop.eup %5819  ;;  %v704_v34 = vadd.f32 1.0, %v5818_v26  ;;  %v535_v21 = vadd.f32 %v531_v5, %v6698_v31  ;;  %v4563_v57 = vmul.f32 -1.442695, %v1246_v53 }
  0xa5   :  { %5839 = vpow2.f32 %v4516_v63  ;;  %v5822_v39 = vpop.eup %5821  ;;  %v532_v63 = vmul.f32 %v6546_v56, %v6683_v2  ;;  %v315_v56 = vmul.f32 %v5820_v30, %v311_v60  ;;  %v4564_v30 = vmul.f32 -1.442695, %v6681_v1 }
  0xa6   :  { %5841 = vrcp.f32 %v703_v29  ;;  %v5824_v4 = vpop.eup %5823  ;;  %v889_v8 = vadd.f32 1.0, %v5822_v39  ;;  %v901_v1 = vmul.f32 %v6570_v9, %v6607_v43  ;;  %v4565_v53 = vmul.f32 -1.442695, %v6670_v32  ;;  %v6740_v32 = vld [vmem:[%s7953_s5 + $0x8] sm:$0xff] }
  0xa7   :  { %5843 = vrcp.f32 %v704_v34  ;;  %v5826_v17 = vpop.eup %5825  ;;  %v890_v19 = vadd.f32 1.0, %v5824_v4  ;;  %v4547_v34 = vmul.f32 -1.442695, %v1060_v59  ;;  %v536_v60 = vadd.f32 %v532_v63, %v6703_v40 }
  0xa8   :  { %5845 = vpow2.f32 %v4517_v37  ;;  %v5828_v20 = vpop.eup %5827  ;;  %v537_v42 = vmul.f32 %v5826_v17, %v533_v28  ;;  %v4562_v37 = vmul.f32 -1.442695, %v6619_v52  ;;  %v716_v52 = vmul.f32 %v6560_v3, %v6613_v46 }
  0xa9   :  { %5847 = vrcp.f32 %v889_v8  ;;  %v5830_v26 = vpop.eup %5829  ;;  %v316_v29 = vmul.f32 %v5828_v20, %v312_v27  ;;  %v719_v59 = vadd.f32 %v715_v36, %v6653_v16 }
  0xaa   :  { %5849 = vrcp.f32 %v890_v19  ;;  %v538_v4 = vmul.f32 %v5830_v26, %v534_v33  ;;  %v720_v63 = vadd.f32 %v716_v52, %v6659_v22 }
  0xab   :  { %v5832_v39 = vpop.eup %5831  ;;  %5851 = vpow2.f32 %v4532_v7  ;;  %v5519_v48 = vpack.c.bf16 %v316_v29, %v315_v56 }
  0xac   :  { %v5834_v62 = vpop.eup %5833  ;;  %v317_v47 = vmul.f32 %v5832_v39, %v313_v18  ;;  %5853 = vpow2.f32 %v6673_v38  ;;  %v5527_v8 = vpack.c.bf16 %v538_v4, %v537_v42  ;;  %v1620_v4 = vadd.f32 %v6651_v12, %v6574_v11 }
  0xad   :  { %v5836_v5 = vpop.eup %5835  ;;  %v318_v51 = vmul.f32 %v5834_v62, %v314_v50  ;;  %5855 = vpow2.f32 %v4546_v24  ;;  %5520 = vmatprep.subr.bf16.mxu0 %v5519_v48 }
  0xae   :  { %v5838_v27 = vpop.eup %5837  ;;  %v539_v28 = vmul.f32 %v5836_v5, %v535_v21  ;;  %5857 = vpow2.f32 %v4547_v34  ;;  %5528 = vmatprep.subr.bf16.mxu1 %v5527_v8  ;;  %5522 = vmatpush3.bf16.msra.mxu0 %v5519_v48  ;;  %v905_v21 = vadd.f32 %v901_v1, %v6653_v16  ;;  %v1434_v34 = vadd.f32 %v6647_v10, %v6574_v11 }
  0xaf   :  { %v5840_v7 = vpop.eup %5839  ;;  %v5523_v38 = vpack.c.bf16 %v318_v51, %v317_v47  ;;  %v540_v33 = vmul.f32 %v5838_v27, %v536_v60  ;;  %5859 = vpow2.f32 %v4562_v37  ;;  %5530 = vmatpush3.bf16.msra.mxu1 %v5527_v8  ;;  %v902_v47 = vmul.f32 %v6570_v9, %v6613_v46 }
  0xb0   :  { %v5842_v17 = vpop.eup %5841  ;;  %v705_v18 = vadd.f32 1.0, %v5840_v7  ;;  %5861 = vpow2.f32 %v4563_v57  ;;  %v1614_v57 = vmul.f32 %v6593_v25, %v6544_v55  ;;  %v1617_v11 = vadd.f32 %v6611_v45, %v6533_v49  ;;  %v6764_v55 = vld [vmem:[%s7953_s5 + $0x18] sm:$0xff] }
  0xb1   :  { %v5844_v19 = vpop.eup %5843  ;;  %5524 = vmatprep.subr.bf16.mxu0 %v5523_v38  ;;  %v5531_v20 = vpack.c.bf16 %v540_v33, %v539_v28  ;;  %5863 = vpow2.f32 %v6691_v23  ;;  %v723_v36 = vmul.f32 %v5842_v17, %v719_v59  ;;  %v906_v26 = vadd.f32 %v902_v47, %v6659_v22 }
  0xb2   :  { %v5846_v48 = vpop.eup %5845  ;;  %v724_v50 = vmul.f32 %v5844_v19, %v720_v63  ;;  %5865 = vrcp.f32 %v705_v18  ;;  %5526 = vmatpush3.bf16.msra.mxu0 %v5523_v38  ;;  %v4578_v23 = vmul.f32 -1.442695, %v6623_v61  ;;  %v1432_v51 = vadd.f32 %v6635_v0, %v6542_v54  ;;  %v6779_v0 = vld [vmem:[%s7953_s5 + $0x20] sm:$0xff]  ;;  %v6799_v18 = vld [vmem:[%s7953_s5 + $0x28] sm:$0xff] }
  0xb3   :  { %v5848_v24 = vpop.eup %5847  ;;  %5532 = vmatprep.subr.bf16.mxu1 %v5531_v20  ;;  %v706_v56 = vadd.f32 1.0, %v5846_v48  ;;  %5867 = vpow2.f32 %v6675_v41  ;;  %v6751_v41 = vld [vmem:[%s7953_s5 + $0x10] sm:$0xff]  ;;  %v1429_v49 = vmul.f32 %v6580_v15, %v6549_v58  ;;  %v1615_v45 = vmul.f32 %v6593_v25, %v6549_v58 }
  0xb4   :  { %v5850_v29 = vpop.eup %5849  ;;  %5534 = vmatpush3.bf16.msra.mxu1 %v5531_v20  ;;  %v5535_v39 = vpack.c.bf16 %v724_v50, %v723_v36  ;;  %5869 = vpow2.f32 %v4564_v30  ;;  %v909_v37 = vmul.f32 %v5848_v24, %v905_v21  ;;  %v6781_v28 = vmul.f32 -1.442695, %v1434_v34 }
  0xb5   :  { %v5852_v42 = vpop.eup %5851  ;;  %v910_v62 = vmul.f32 %v5850_v29, %v906_v26  ;;  %5871 = vrcp.f32 %v706_v56  ;;  %5071 = vmatmul.mubr.msk.f32.vlgmr.msra.gmra.mrb[0].mxu0 %vm319_vm0, %v6740_v32  ;;  %v6783_v52 = vmul.f32 -1.442695, %v1620_v4  ;;  %v1433_v38 = vadd.f32 %v1429_v49, %v6566_v6 }
  0xb6   :  { %v5854_v61 = vpop.eup %5853  ;;  %5536 = vmatprep.subr.bf16.mxu0 %v5535_v39  ;;  %v891_v10 = vadd.f32 1.0, %v5852_v42  ;;  %5873 = vpow2.f32 %v4565_v53  ;;  %5073 = vmatprep.mubr.msk.f32.mxu0 %vm319_vm0, %v6751_v41  ;;  %v717_v33 = vmul.f32 %v6560_v3, %v6678_v44  ;;  %v718_v63 = vmul.f32 %v6560_v3, %v6683_v2  ;;  %v6808_v3 = vld [vmem:[%s7953_s5 + $0x30] sm:$0xff] }
  0xb7   :  { %v5856_v12 = vpop.eup %5855  ;;  %v5543_v5 = vpack.c.bf16 %v910_v62, %v909_v37  ;;  %5097 = vmatmul.mubr.msk.f32.vlgmr.msra.gmra.mrb[0].mxu1 %vm319_vm0, %v6740_v32  ;;  %5538 = vmatpush3.bf16.msra.mxu0 %v5535_v39  ;;  %v892_v8 = vadd.f32 1.0, %v5854_v61  ;;  %5875 = vpow2.f32 %v4578_v23  ;;  %v4579_v19 = vmul.f32 -1.442695, %v1432_v51  ;;  %v6835_v61 = vld [vmem:[%s7953_s5 + $0x40] sm:$0xff] }
  0xb8   :  { %v5858_v60 = vpop.eup %5857  ;;  %5877 = vrcp.f32 %v891_v10  ;;  %5099 = vmatprep.mubr.msk.f32.mxu1 %vm319_vm0, %v6751_v41  ;;  %v1075_v27 = vadd.f32 1.0, %v5856_v12  ;;  %v1619_v20 = vadd.f32 %v1615_v45, %v6566_v6  ;;  %v721_v47 = vadd.f32 %v717_v33, %v6698_v31 }
  0xb9   :  { %v5860_v30 = vpop.eup %5859  ;;  %5544 = vmatprep.subr.bf16.mxu1 %v5543_v5  ;;  %5879 = vrcp.f32 %v892_v8  ;;  %v1076_v58 = vadd.f32 1.0, %v5858_v60  ;;  %5074 = vmatmul.mubr.msk.f32.gmra.mrb[2].mxu0 %vm319_vm0, %v6764_v55  ;;  %v722_v50 = vadd.f32 %v718_v63, %v6703_v40  ;;  %v903_v21 = vmul.f32 %v6570_v9, %v6678_v44  ;;  %v6863_v63 = vld [vmem:[%s7953_s5 + $0x50] sm:$0xff] }
  0xba   :  { %v5862_v7 = vpop.eup %5861  ;;  %5546 = vmatpush3.bf16.msra.mxu1 %v5543_v5  ;;  %5881 = vrcp.f32 %v1075_v27  ;;  %v1261_v59 = vadd.f32 1.0, %v5860_v30  ;;  %5076 = vmatprep.mubr.msk.f32.mxu0 %vm319_vm0, %v6779_v0  ;;  %v1618_v6 = vadd.f32 %v1614_v57, %v6542_v54  ;;  %v4594_v23 = vmul.f32 -1.442695, %v1617_v11  ;;  %v6825_v54 = vld [vmem:[%s7953_s5 + $0x38] sm:$0xff] }
  0xbb   :  { %v5864_v17 = vpop.eup %5863  ;;  %5100 = vmatmul.mubr.msk.f32.gmra.mrb[2].mxu1 %vm319_vm0, %v6764_v55  ;;  %5883 = vrcp.f32 %v1076_v58  ;;  %v1262_v1 = vadd.f32 1.0, %v5862_v7  ;;  %v4580_v34 = vmul.f32 -1.442695, %v1433_v38  ;;  %v904_v39 = vmul.f32 %v6570_v9, %v6683_v2  ;;  %v6854_v58 = vld [vmem:[%s7953_s5 + $0x48] sm:$0xff] }
  0xbc   :  { %v5866_v53 = vpop.eup %5865  ;;  %5885 = vrcp.f32 %v1261_v59  ;;  %5102 = vmatprep.mubr.msk.f32.mxu1 %vm319_vm0, %v6779_v0  ;;  %v1077_v48 = vadd.f32 1.0, %v5864_v17  ;;  %v907_v62 = vadd.f32 %v903_v21, %v6698_v31  ;;  %v1087_v9 = vmul.f32 %v6576_v13, %v6607_v43 }
  0xbd   :  { %v5868_v36 = vpop.eup %5867  ;;  %5887 = vrcp.f32 %v1262_v1  ;;  %v725_v26 = vmul.f32 %v5866_v53, %v721_v47  ;;  %5077 = vmatmul.mubr.msk.f32.gmra.mrb[4].mxu0 %vm319_vm0, %v6799_v18  ;;  %v908_v10 = vadd.f32 %v904_v39, %v6703_v40  ;;  %v4595_v12 = vmul.f32 -1.442695, %v1618_v6  ;;  %v6877_v6 = vld [vmem:[%s7953_s5 + $0x58] sm:$0xff] }
  0xbe   :  { %v5870_v24 = vpop.eup %5869  ;;  %v1078_v56 = vadd.f32 1.0, %v5868_v36  ;;  %5889 = vrcp.f32 %v1077_v48  ;;  %5079 = vmatprep.mubr.msk.f32.mxu0 %vm319_vm0, %v6808_v3  ;;  %v1088_v51 = vmul.f32 %v6576_v13, %v6613_v46  ;;  %v1273_v60 = vmul.f32 %v6578_v14, %v6607_v43 }
  0xbf   :  { %v5872_v29 = vpop.eup %5871  ;;  %5103 = vmatmul.mubr.msk.f32.gmra.mrb[4].mxu1 %vm319_vm0, %v6799_v18  ;;  %v1263_v42 = vadd.f32 1.0, %v5870_v24  ;;  %5891 = vpow2.f32 %v4579_v19  ;;  %v1091_v27 = vadd.f32 %v1087_v9, %v6653_v16  ;;  %v1274_v30 = vmul.f32 %v6578_v14, %v6613_v46 }
  0xc0   :  { %v5874_v4 = vpop.eup %5873  ;;  %v726_v37 = vmul.f32 %v5872_v29, %v722_v50  ;;  %5105 = vmatprep.mubr.msk.f32.mxu1 %vm319_vm0, %v6808_v3  ;;  %5893 = vrcp.f32 %v1078_v56  ;;  %v4596_v38 = vmul.f32 -1.442695, %v1619_v20  ;;  %v1092_v59 = vadd.f32 %v1088_v51, %v6659_v22 }
  0xc1   :  { %v5876_v57 = vpop.eup %5875  ;;  %v1264_v11 = vadd.f32 1.0, %v5874_v4  ;;  %5895 = vrcp.f32 %v1263_v42  ;;  %5080 = vmatmul.mubr.msk.f32.gmra.mrb[6].mxu0 %vm319_vm0, %v6825_v54  ;;  %v1277_v17 = vadd.f32 %v1273_v60, %v6653_v16  ;;  %v1278_v19 = vadd.f32 %v1274_v30, %v6659_v22 }
  0xc2   :  { %v5878_v5 = vpop.eup %5877  ;;  %v5539_v8 = vpack.c.bf16 %v726_v37, %v725_v26  ;;  %5897 = vpow2.f32 %v4594_v23  ;;  %5082 = vmatprep.mubr.msk.f32.mxu0 %vm319_vm0, %v6835_v61  ;;  %v1089_v53 = vmul.f32 %v6576_v13, %v6678_v44  ;;  %v1447_v20 = vadd.f32 1.0, %v5876_v57 }
  0xc3   :  { %v5880_v49 = vpop.eup %5879  ;;  %v911_v45 = vmul.f32 %v5878_v5, %v907_v62  ;;  %5106 = vmatmul.mubr.msk.f32.gmra.mrb[6].mxu1 %vm319_vm0, %v6825_v54  ;;  %5899 = vrcp.f32 %v1264_v11  ;;  %v1090_v24 = vmul.f32 %v6576_v13, %v6683_v2  ;;  %v1275_v56 = vmul.f32 %v6578_v14, %v6678_v44 }
  0xc4   :  { %v5882_v7 = vpop.eup %5881  ;;  %5540 = vmatprep.subr.bf16.mxu0 %v5539_v8  ;;  %v912_v33 = vmul.f32 %v5880_v49, %v908_v10  ;;  %5108 = vmatprep.mubr.msk.f32.mxu1 %vm319_vm0, %v6835_v61  ;;  %5901 = vpow2.f32 %v4595_v12  ;;  %v1093_v26 = vadd.f32 %v1089_v53, %v6698_v31  ;;  %v1276_v4 = vmul.f32 %v6578_v14, %v6683_v2 }
  0xc5   :  { %v5884_v1 = vpop.eup %5883  ;;  %5542 = vmatpush3.bf16.msra.mxu0 %v5539_v8  ;;  %v1095_v36 = vmul.f32 %v5882_v7, %v1091_v27  ;;  %5903 = vpow2.f32 %v4580_v34  ;;  %v1094_v13 = vadd.f32 %v1090_v24, %v6703_v40  ;;  %v1279_v37 = vadd.f32 %v1275_v56, %v6698_v31 }
  0xc6   :  { %v5886_v47 = vpop.eup %5885  ;;  %v5547_v48 = vpack.c.bf16 %v912_v33, %v911_v45  ;;  %v1096_v50 = vmul.f32 %v5884_v1, %v1092_v59  ;;  %5083 = vmatmul.mubr.msk.f32.gmra.mrb[8].mxu0 %vm319_vm0, %v6854_v58  ;;  %5905 = vpow2.f32 %v6781_v28  ;;  %v1459_v1 = vmul.f32 %v6580_v15, %v6607_v43 }
  0xc7   :  { %v5888_v21 = vpop.eup %5887  ;;  %5109 = vmatmul.mubr.msk.f32.gmra.mrb[8].mxu1 %vm319_vm0, %v6854_v58  ;;  %5085 = vmatprep.mubr.msk.f32.mxu0 %vm319_vm0, %v6863_v63  ;;  %v1281_v34 = vmul.f32 %v5886_v47, %v1277_v17  ;;  %5907 = vpow2.f32 %v4596_v38  ;;  %v1645_v56 = vmul.f32 %v6593_v25, %v6607_v43 }
  0xc8   :  { %v5890_v23 = vpop.eup %5889  ;;  %5548 = vmatprep.subr.bf16.mxu1 %v5547_v48  ;;  %v5551_v29 = vpack.c.bf16 %v1096_v50, %v1095_v36  ;;  %v1282_v39 = vmul.f32 %v5888_v21, %v1278_v19  ;;  %5111 = vmatprep.mubr.msk.f32.mxu1 %vm319_vm0, %v6863_v63  ;;  %5909 = vpow2.f32 %v6783_v52  ;;  %v1280_v52 = vadd.f32 %v1276_v4, %v6703_v40 }
  0xc9   :  { %v5892_v42 = vpop.eup %5891  ;;  %5550 = vmatpush3.bf16.msra.mxu1 %v5547_v48  ;;  %v1097_v9 = vmul.f32 %v5890_v23, %v1093_v26  ;;  %5911 = vrcp.f32 %v1447_v20  ;;  %v1460_v19 = vmul.f32 %v6580_v15, %v6613_v46  ;;  %v1463_v48 = vadd.f32 %v1459_v1, %v6653_v16 }
  0xca   :  { %v5894_v28 = vpop.eup %5893  ;;  %5552 = vmatprep.subr.bf16.mxu0 %v5551_v29  ;;  %v5559_v62 = vpack.c.bf16 %v1282_v39, %v1281_v34  ;;  %5086 = vmatmul.mubr.msk.f32.gmra.mrb[10].mxu0 %vm319_vm0, %v6877_v6  ;;  %v1448_v57 = vadd.f32 1.0, %v5892_v42  ;;  %v1646_v23 = vmul.f32 %v6593_v25, %v6613_v46  ;;  %v1649_v34 = vadd.f32 %v1645_v56, %v6653_v16 }
  0xcb   :  { %v5896_v10 = vpop.eup %5895  ;;  %5112 = vmatmul.mubr.msk.f32.gmra.mrb[10].mxu1 %vm319_vm0, %v6877_v6  ;;  %5122 = vmatprep.mubr.msk.f32.mxu0 %vm319_vm0, %v6492_v35  ;;  %v1098_v14 = vmul.f32 %v5894_v28, %v1094_v13  ;;  %v1464_v36 = vadd.f32 %v1460_v19, %v6659_v22  ;;  %v1461_v16 = vmul.f32 %v6580_v15, %v6678_v44 }
  0xcc   :  { %v5898_v11 = vpop.eup %5897  ;;  %5560 = vmatprep.subr.bf16.mxu1 %v5559_v62  ;;  %5148 = vmatprep.mubr.msk.f32.mxu1 %vm319_vm0, %v6492_v35  ;;  %v1283_v12 = vmul.f32 %v5896_v10, %v1279_v37  ;;  %5913 = vrcp.f32 %v1448_v57  ;;  %v1650_v39 = vadd.f32 %v1646_v23, %v6659_v22  ;;  %v1462_v22 = vmul.f32 %v6580_v15, %v6683_v2  ;;  %v7204_v23 = vpop.permute.xlu1 %170 }
  0xcd   :  { %v5900_v5 = vpop.eup %5899  ;;  %v1633_v8 = vadd.f32 1.0, %v5898_v11  ;;  %v5555_v51 = vpack.c.bf16 %v1098_v14, %v1097_v9  ;;  %v1648_v9 = vmul.f32 %v6593_v25, %v6683_v2  ;;  %v1465_v15 = vadd.f32 %v1461_v16, %v6698_v31 }
  0xce   :  { %5123 = vmatmul.mubr.msk.f32.vlgmr.msra.gmra.mrb[12].mxu0 %vm319_vm0, %v6740_v32  ;;  %v1284_v60 = vmul.f32 %v5900_v5, %v1280_v52  ;;  %v5902_v49 = vpop.eup %5901  ;;  %v1466_v10 = vadd.f32 %v1462_v22, %v6703_v40  ;;  %v7150_v5 = vld [vmem:[%s7955_s7 + $0x58] sm:$0xff] }
  0xcf   :  { %5149 = vmatmul.mubr.msk.f32.vlgmr.msra.gmra.mrb[12].mxu1 %vm319_vm0, %v6740_v32  ;;  %5554 = vmatpush3.bf16.msra.mxu0 %v5551_v29  ;;  %v5904_v45 = vpop.eup %5903  ;;  %v1634_v30 = vadd.f32 1.0, %v5902_v49  ;;  %5915 = vrcp.f32 %v1633_v8  ;;  %v1652_v11 = vadd.f32 %v1648_v9, %v6703_v40 }
  0xd0   :  { %5562 = vmatpush3.bf16.msra.mxu1 %v5559_v62  ;;  %5556 = vmatprep.subr.bf16.mxu0 %v5555_v51  ;;  %v5563_v27 = vpack.c.bf16 %v1284_v60, %v1283_v12  ;;  %v5906_v7 = vpop.eup %5905  ;;  %v1449_v38 = vadd.f32 1.0, %v5904_v45  ;;  %v1647_v62 = vmul.f32 %v6593_v25, %v6678_v44  ;;  %v6257_v12 = vld [vmem:[%s7953_s5] sm:$0xff] }
  0xd1   :  { %5125 = vmatprep.mubr.msk.f32.mxu0 %vm319_vm0, %v6751_v41  ;;  %5151 = vmatprep.mubr.msk.f32.mxu1 %vm319_vm0, %v6751_v41  ;;  %v5908_v33 = vpop.eup %5907  ;;  %5917 = vrcp.f32 %v1634_v30  ;;  %v1450_v59 = vadd.f32 1.0, %v5906_v7 }
  0xd2   :  { %5564 = vmatprep.subr.bf16.mxu1 %v5563_v27  ;;  %5126 = vmatmul.mubr.msk.f32.gmra.mrb[14].mxu0 %vm319_vm0, %v6764_v55  ;;  %v5910_v17 = vpop.eup %5909  ;;  %5919 = vrcp.f32 %v1449_v38  ;;  %v1635_v53 = vadd.f32 1.0, %v5908_v33  ;;  %v1651_v14 = vadd.f32 %v1647_v62, %v6698_v31 }
  0xd3   :  { %5152 = vmatmul.mubr.msk.f32.gmra.mrb[14].mxu1 %vm319_vm0, %v6764_v55  ;;  %5558 = vmatpush3.bf16.msra.mxu0 %v5555_v51  ;;  %v5912_v20 = vpop.eup %5911  ;;  %5921 = vrcp.f32 %v1450_v59  ;;  %v1636_v47 = vadd.f32 1.0, %v5910_v17 }
  0xd4   :  { %5566 = vmatpush3.bf16.msra.mxu1 %v5563_v27  ;;  %5128 = vmatprep.mubr.msk.f32.mxu0 %vm319_vm0, %v6779_v0  ;;  %5923 = vrcp.f32 %v1635_v53  ;;  %v1467_v21 = vmul.f32 %v5912_v20, %v1463_v48 }
  0xd5   :  { %5154 = vmatprep.mubr.msk.f32.mxu1 %vm319_vm0, %v6779_v0  ;;  %5925 = vrcp.f32 %v1636_v47 }
  0xd6   :  { %v5914_v50 = vpop.eup %5913  ;;  %5129 = vmatmul.mubr.msk.f32.gmra.mrb[16].mxu0 %vm319_vm0, %v6799_v18 }
  0xd7   :  { %v1468_v24 = vmul.f32 %v5914_v50, %v1464_v36  ;;  %5155 = vmatmul.mubr.msk.f32.gmra.mrb[16].mxu1 %vm319_vm0, %v6799_v18  ;;  %5131 = vmatprep.mubr.msk.f32.mxu0 %vm319_vm0, %v6808_v3 }
  0xd8   :  { %5157 = vmatprep.mubr.msk.f32.mxu1 %vm319_vm0, %v6808_v3 }
  0xd9   :  { %v5567_v26 = vpack.c.bf16 %v1468_v24, %v1467_v21  ;;  %v5916_v29 = vpop.eup %5915 }
  0xda   :  { %5132 = vmatmul.mubr.msk.f32.gmra.mrb[18].mxu0 %vm319_vm0, %v6825_v54  ;;  %v1653_v46 = vmul.f32 %v5916_v29, %v1649_v34  ;;  %v7206_v29 = vpop.permute.xlu0 %165 }
  0xdb   :  { %5568 = vmatprep.subr.bf16.mxu0 %v5567_v26  ;;  %5158 = vmatmul.mubr.msk.f32.gmra.mrb[18].mxu1 %vm319_vm0, %v6825_v54  ;;  %v5918_v42 = vpop.eup %5917 }
  0xdc   :  { %5134 = vmatprep.mubr.msk.f32.mxu0 %vm319_vm0, %v6835_v61  ;;  %5160 = vmatprep.mubr.msk.f32.mxu1 %vm319_vm0, %v6835_v61  ;;  %v5920_v43 = vpop.eup %5919  ;;  %v1654_v13 = vmul.f32 %v5918_v42, %v1650_v39 }
  0xdd   :  { %v5922_v4 = vpop.eup %5921  ;;  %v1469_v44 = vmul.f32 %v5920_v43, %v1465_v15 }
  0xde   :  { %5135 = vmatmul.mubr.msk.f32.gmra.mrb[20].mxu0 %vm319_vm0, %v6854_v58  ;;  %v5924_v37 = vpop.eup %5923  ;;  %v5575_v28 = vpack.c.bf16 %v1654_v13, %v1653_v46  ;;  %v1470_v52 = vmul.f32 %v5922_v4, %v1466_v10  ;;  %v7216_v46 = vpop.permute.xlu1 %180 }
  0xdf   :  { %5161 = vmatmul.mubr.msk.f32.gmra.mrb[20].mxu1 %vm319_vm0, %v6854_v58  ;;  %5137 = vmatprep.mubr.msk.f32.mxu0 %vm319_vm0, %v6863_v63  ;;  %v5926_v57 = vpop.eup %5925  ;;  %v1655_v25 = vmul.f32 %v5924_v37, %v1651_v14  ;;  %v7218_v13 = vpop.permute.xlu0 %175 }
  0xe0   :  { %5163 = vmatprep.mubr.msk.f32.mxu1 %vm319_vm0, %v6863_v63  ;;  %5576 = vmatprep.subr.bf16.mxu1 %v5575_v28  ;;  %v1656_v2 = vmul.f32 %v5926_v57, %v1652_v11  ;;  %v5571_v31 = vpack.c.bf16 %v1470_v52, %v1469_v44 }
  0xe2   :  { %5138 = vmatmul.mubr.msk.f32.gmra.mrb[22].mxu0 %vm319_vm0, %v6877_v6  ;;  %v5579_v40 = vpack.c.bf16 %v1656_v2, %v1655_v25  ;;  %v7229_v57 = vpop.permute.xlu1 %190 }
  0xe3   :  { %5164 = vmatmul.mubr.msk.f32.gmra.mrb[22].mxu1 %vm319_vm0, %v6877_v6  ;;  %5174 = vmatprep.mubr.msk.f32.mxu0 %vm319_vm0, %v6492_v35  ;;  %v7232_v10 = vpop.permute.xlu0 %185 }
  0xe4   :  { %5200 = vmatprep.mubr.msk.f32.mxu1 %vm319_vm0, %v6492_v35  ;;  %v7968_v35 = vmov 0.0  }
  0xe6   :  { %5175 = vmatmul.mubr.msk.f32.vlgmr.msra.gmra.mrb[24].mxu0 %vm319_vm0, %v6740_v32 }
  0xe7   :  { %5201 = vmatmul.mubr.msk.f32.vlgmr.msra.gmra.mrb[24].mxu1 %vm319_vm0, %v6740_v32  ;;  %5570 = vmatpush3.bf16.msra.mxu0 %v5567_v26 }
  0xe8   :  { %5578 = vmatpush3.bf16.msra.mxu1 %v5575_v28  ;;  %5572 = vmatprep.subr.bf16.mxu0 %v5571_v31 }
  0xe9   :  { %5580 = vmatprep.subr.bf16.mxu1 %v5579_v40  ;;  %5177 = vmatprep.mubr.msk.f32.mxu0 %vm319_vm0, %v6751_v41 }
  0xea   :  { %5203 = vmatprep.mubr.msk.f32.mxu1 %vm319_vm0, %v6751_v41  ;;  %5178 = vmatmul.mubr.msk.f32.gmra.mrb[26].mxu0 %vm319_vm0, %v6764_v55 }
  0xeb   :  { %5204 = vmatmul.mubr.msk.f32.gmra.mrb[26].mxu1 %vm319_vm0, %v6764_v55  ;;  %5574 = vmatpush3.bf16.msra.mxu0 %v5571_v31 }
  0xec   :  { %5582 = vmatpush3.bf16.msra.mxu1 %v5579_v40  ;;  %5180 = vmatprep.mubr.msk.f32.mxu0 %vm319_vm0, %v6779_v0  ;;  %v7236_v40 = vpop.permute.xlu1 %200 }
  0xed   :  { %5206 = vmatprep.mubr.msk.f32.mxu1 %vm319_vm0, %v6779_v0  ;;  %5270 = vmatprep.subr.mxu0 %v7968_v35 }
  0xee   :  { %5181 = vmatmul.mubr.msk.f32.gmra.mrb[28].mxu0 %vm319_vm0, %v6799_v18 }
  0xef   :  { %5207 = vmatmul.mubr.msk.f32.gmra.mrb[28].mxu1 %vm319_vm0, %v6799_v18  ;;  %5183 = vmatprep.mubr.msk.f32.mxu0 %vm319_vm0, %v6808_v3 }
  0xf0   :  { %5209 = vmatprep.mubr.msk.f32.mxu1 %vm319_vm0, %v6808_v3 }
  0xf2   :  { %5184 = vmatmul.mubr.msk.f32.gmra.mrb[30].mxu0 %vm319_vm0, %v6825_v54 }
  0xf3   :  { %5210 = vmatmul.mubr.msk.f32.gmra.mrb[30].mxu1 %vm319_vm0, %v6825_v54  ;;  %5186 = vmatprep.mubr.msk.f32.mxu0 %vm319_vm0, %v6835_v61 }
  0xf4   :  { %5212 = vmatprep.mubr.msk.f32.mxu1 %vm319_vm0, %v6835_v61 }
  0xf6   :  { %5187 = vmatmul.mubr.msk.f32.gmra.mrb[32].mxu0 %vm319_vm0, %v6854_v58 }
  0xf7   :  { %5213 = vmatmul.mubr.msk.f32.gmra.mrb[32].mxu1 %vm319_vm0, %v6854_v58  ;;  %5189 = vmatprep.mubr.msk.f32.mxu0 %vm319_vm0, %v6863_v63 }
  0xf8   :  { %5215 = vmatprep.mubr.msk.f32.mxu1 %vm319_vm0, %v6863_v63 }
  0xfa   :  { %5190 = vmatmul.mubr.msk.f32.gmra.mrb[34].mxu0 %vm319_vm0, %v6877_v6 }
  0xfb   :  { %5216 = vmatmul.mubr.msk.f32.gmra.mrb[34].mxu1 %vm319_vm0, %v6877_v6  ;;  %5226 = vmatprep.mubr.msk.f32.mxu0 %vm319_vm0, %v6257_v12 }
  0xfc   :  { %5252 = vmatprep.mubr.msk.f32.mxu1 %vm319_vm0, %v6257_v12 }
  0xfe   :  { %5227 = vmatmul.mubr.msk.f32.vlgmr.msra.gmra.mrb[36].mxu0 %vm319_vm0, %v6740_v32 }
  0xff   :  { %5253 = vmatmul.mubr.msk.f32.vlgmr.msra.gmra.mrb[36].mxu1 %vm319_vm0, %v6740_v32  ;;  %5229 = vmatprep.mubr.msk.f32.mxu0 %vm319_vm0, %v6751_v41  ;;  %v7067_v32 = vld [vmem:[%s7955_s7] sm:$0xff] }
 0x100   :  { %5255 = vmatprep.mubr.msk.f32.mxu1 %vm319_vm0, %v6751_v41  ;;  %5271 = vmatpush3.msra.mxu0 %v7968_v35  ;;  %v7078_v41 = vld [vmem:[%s7955_s7 + $0x8] sm:$0xff]  ;;  %v7238_v35 = vpop.permute.xlu0 %195 }
 0x102   :  { %5230 = vmatmul.mubr.msk.f32.gmra.mrb[38].mxu0 %vm319_vm0, %v6764_v55 }
 0x103   :  { %5256 = vmatmul.mubr.msk.f32.gmra.mrb[38].mxu1 %vm319_vm0, %v6764_v55  ;;  %5232 = vmatprep.mubr.msk.f32.mxu0 %vm319_vm0, %v6779_v0  ;;  %v7083_v55 = vld [vmem:[%s7955_s7 + $0x10] sm:$0xff] }
 0x104   :  { %5258 = vmatprep.mubr.msk.f32.mxu1 %vm319_vm0, %v6779_v0  ;;  %v7094_v0 = vld [vmem:[%s7955_s7 + $0x18] sm:$0xff] }
 0x106   :  { %5233 = vmatmul.mubr.msk.f32.gmra.mrb[40].mxu0 %vm319_vm0, %v6799_v18 }
 0x107   :  { %5259 = vmatmul.mubr.msk.f32.gmra.mrb[40].mxu1 %vm319_vm0, %v6799_v18  ;;  %5235 = vmatprep.mubr.msk.f32.mxu0 %vm319_vm0, %v6808_v3  ;;  %v7099_v18 = vld [vmem:[%s7955_s7 + $0x20] sm:$0xff] }
 0x108   :  { %5261 = vmatprep.mubr.msk.f32.mxu1 %vm319_vm0, %v6808_v3  ;;  %v7108_v3 = vld [vmem:[%s7955_s7 + $0x28] sm:$0xff] }
 0x10a   :  { %5236 = vmatmul.mubr.msk.f32.gmra.mrb[42].mxu0 %vm319_vm0, %v6825_v54 }
 0x10b   :  { %5262 = vmatmul.mubr.msk.f32.gmra.mrb[42].mxu1 %vm319_vm0, %v6825_v54  ;;  %5238 = vmatprep.mubr.msk.f32.mxu0 %vm319_vm0, %v6835_v61  ;;  %v7113_v54 = vld [vmem:[%s7955_s7 + $0x30] sm:$0xff] }
 0x10c   :  { %5264 = vmatprep.mubr.msk.f32.mxu1 %vm319_vm0, %v6835_v61  ;;  %v7122_v61 = vld [vmem:[%s7955_s7 + $0x38] sm:$0xff] }
 0x10e   :  { %5239 = vmatmul.mubr.msk.f32.gmra.mrb[44].mxu0 %vm319_vm0, %v6854_v58 }
 0x10f   :  { %5265 = vmatmul.mubr.msk.f32.gmra.mrb[44].mxu1 %vm319_vm0, %v6854_v58  ;;  %5241 = vmatprep.mubr.msk.f32.mxu0 %vm319_vm0, %v6863_v63  ;;  %v7127_v58 = vld [vmem:[%s7955_s7 + $0x40] sm:$0xff] }
 0x110   :  { %5267 = vmatprep.mubr.msk.f32.mxu1 %vm319_vm0, %v6863_v63  ;;  %v7136_v63 = vld [vmem:[%s7955_s7 + $0x48] sm:$0xff] }
 0x112   :  { %5242 = vmatmul.mubr.msk.f32.gmra.mrb[46].mxu0 %vm319_vm0, %v6877_v6 }
 0x113   :  { %5268 = vmatmul.mubr.msk.f32.gmra.mrb[46].mxu1 %vm319_vm0, %v6877_v6  ;;  %5272 = vmatprep.mubr.msk.f32.mxu0 %vm319_vm0, %v7067_v32  ;;  %v7141_v6 = vld [vmem:[%s7955_s7 + $0x50] sm:$0xff] }
 0x114   :  { %5298 = vmatprep.mubr.msk.f32.mxu1 %vm319_vm0, %v7067_v32 }
 0x116   :  { %5273 = vmatmul.mubr.msk.f32.vlgmr.msra.gmra.mrb[0].mxu0 %vm319_vm0, %v7078_v41 }
 0x117   :  { %5275 = vmatprep.mubr.msk.f32.mxu0 %vm319_vm0, %v7083_v55 }
 0x11a   :  { %5276 = vmatmul.mubr.msk.f32.gmra.mrb[2].mxu0 %vm319_vm0, %v7094_v0 }
 0x11b   :  { %5278 = vmatprep.mubr.msk.f32.mxu0 %vm319_vm0, %v7099_v18 }
 0x11e   :  { %5279 = vmatmul.mubr.msk.f32.gmra.mrb[4].mxu0 %vm319_vm0, %v7108_v3 }
 0x11f   :  { %5281 = vmatprep.mubr.msk.f32.mxu0 %vm319_vm0, %v7113_v54 }
 0x122   :  { %5282 = vmatmul.mubr.msk.f32.gmra.mrb[6].mxu0 %vm319_vm0, %v7122_v61 }
 0x123   :  { %5284 = vmatprep.mubr.msk.f32.mxu0 %vm319_vm0, %v7127_v58 }
 0x126   :  { %5285 = vmatmul.mubr.msk.f32.gmra.mrb[48].mxu0 %vm319_vm0, %v7136_v63 }
 0x127   :  { %5287 = vmatprep.mubr.msk.f32.mxu0 %vm319_vm0, %v7141_v6 }
 0x12a   :  { %5288 = vmatmul.mubr.msk.f32.gmra.mrb[50].mxu0 %vm319_vm0, %v7150_v5 }
 0x12b   :  { %5324 = vmatprep.mubr.msk.f32.mxu0 %vm319_vm0, %v7067_v32 }
 0x199   :  { %v7156_v8 = vpop.f32.mrb[8].mxu0 }
 0x19a   :  { %v7158_v51 = vpop.f32.mrb[8].mxu1  ;;  %v7160_v60 = vpop.f32.mrb[9].mxu0 }
 0x19b   :  { %v7162_v49 = vpop.f32.mrb[9].mxu1 }
 0x19d   :  { %v7164_v45 = vpop.f32.mrb[10].mxu0 }
 0x19e   :  { %v7166_v27 = vpop.f32.mrb[10].mxu1  ;;  %v7168_v30 = vpop.f32.mrb[11].mxu0 }
 0x19f   :  { %v7170_v7 = vpop.f32.mrb[11].mxu1 }
 0x1b1   :  { %v7172_v38 = vpop.f32.mrb[20].mxu0 }
 0x1b2   :  { %v7174_v33 = vpop.f32.mrb[20].mxu1  ;;  %v7176_v59 = vpop.f32.mrb[21].mxu0 }
 0x1b3   :  { %v7178_v17 = vpop.f32.mrb[21].mxu1 }
 0x1b5   :  { %v7180_v1 = vpop.f32.mrb[22].mxu0 }
 0x1b6   :  { %v7182_v19 = vpop.f32.mrb[22].mxu1  ;;  %v7184_v53 = vpop.f32.mrb[23].mxu0 }
 0x1b7   :  { %8013 = vst [vmem:[#allocation9_spill] sm:$0xff] %v7182_v19  ;;  %v7186_v20 = vpop.f32.mrb[23].mxu1 }
 0x1b8   :  { %8014 = vst [vmem:[#allocation10_spill] sm:$0xff] %v7186_v20 }
 0x1c9   :  { %v7188_v47 = vpop.f32.mrb[32].mxu0 }
 0x1ca   :  { %8015 = vst [vmem:[#allocation11_spill] sm:$0xff] %v7188_v47  ;;  %v7190_v48 = vpop.f32.mrb[32].mxu1  ;;  %v7192_v36 = vpop.f32.mrb[33].mxu0 }
 0x1cb   :  { %8016 = vst [vmem:[#allocation12_spill] sm:$0xff] %v7190_v48  ;;  %8017 = vst [vmem:[#allocation13_spill] sm:$0xff] %v7192_v36  ;;  %v7194_v50 = vpop.f32.mrb[33].mxu1 }
 0x1cc   :  { %8018 = vst [vmem:[#allocation14_spill] sm:$0xff] %v7194_v50 }
 0x1cd   :  { %v7196_v21 = vpop.f32.mrb[34].mxu0 }
 0x1ce   :  { %8019 = vst [vmem:[#allocation15_spill] sm:$0xff] %v7196_v21  ;;  %v7198_v24 = vpop.f32.mrb[34].mxu1  ;;  %v7200_v26 = vpop.f32.mrb[35].mxu0 }
 0x1cf   :  { %8020 = vst [vmem:[#allocation16_spill] sm:$0xff] %v7198_v24  ;;  %8021 = vst [vmem:[#allocation17_spill] sm:$0xff] %v7200_v26  ;;  %v7202_v56 = vpop.f32.mrb[35].mxu1 }
 0x1d0   :  { %8022 = vst [vmem:[#allocation18_spill] sm:$0xff] %v7202_v56 }
 0x1e1   :  { %v7208_v34 = vpop.f32.mrb[44].mxu0 }
 0x1e2   :  { %8023 = vst [vmem:[#allocation19_spill] sm:$0xff] %v7208_v34  ;;  %v7210_v39 = vpop.f32.mrb[44].mxu1  ;;  %v7212_v42 = vpop.f32.mrb[45].mxu0 }
 0x1e3   :  { %8024 = vst [vmem:[#allocation20_spill] sm:$0xff] %v7210_v39  ;;  %8025 = vst [vmem:[#allocation21_spill] sm:$0xff] %v7212_v42  ;;  %v7214_v43 = vpop.f32.mrb[45].mxu1 }
 0x1e4   :  { %8026 = vst [vmem:[#allocation22_spill] sm:$0xff] %v7214_v43  ;;  %v7246_v43 = vpop.permute.xlu0 %229 }
 0x1e5   :  { %v7220_v4 = vpop.f32.mrb[46].mxu0 }
 0x1e6   :  { %8027 = vst [vmem:[#allocation23_spill] sm:$0xff] %v7220_v4  ;;  %v7222_v16 = vpop.f32.mrb[46].mxu1  ;;  %v7224_v22 = vpop.f32.mrb[47].mxu0 }
 0x1e7   :  { %8028 = vst [vmem:[#allocation24_spill] sm:$0xff] %v7222_v16  ;;  %8029 = vst [vmem:[#allocation25_spill] sm:$0xff] %v7224_v22  ;;  %v7226_v37 = vpop.f32.mrb[47].mxu1 }
 0x1e8   :  { %8030 = vst [vmem:[#allocation26_spill] sm:$0xff] %v7226_v37  ;;  %v7250_v34 = vpop.permute.xlu0 %205 }
 0x1e9   :  { %v5274_v28 = vpop.f32.mrb[0].mxu0 }
 0x1ea   :  { %v5661_v62 = vadd.f32 %v5274_v28, %v7204_v23  ;;  %v1909_v9 = vpop.f32.mrb[1].mxu0 }
 0x1eb   :  { %v5662_v15 = vadd.f32 %v1909_v9, %v7206_v29 }
 0x1ec   :  { %v4623_v14 = vmul.f32 -1.442695, %v5661_v62 }
 0x1ed   :  { %v4622_v11 = vmul.f32 -1.442695, %v5662_v15  ;;  %v5277_v44 = vpop.f32.mrb[2].mxu0 }
 0x1ee   :  { %5927 = vpow2.f32 %v4623_v14  ;;  %v5663_v52 = vadd.f32 %v5277_v44, %v7216_v46  ;;  %v1919_v25 = vpop.f32.mrb[3].mxu0 }
 0x1ef   :  { %5929 = vpow2.f32 %v4622_v11  ;;  %v5664_v2 = vadd.f32 %v1919_v25, %v7218_v13 }
 0x1f0   :  { %v4625_v31 = vmul.f32 -1.442695, %v5663_v52  ;;  %v7243_v52 = vpop.permute.xlu1 %234 }
 0x1f1   :  { %v4624_v12 = vmul.f32 -1.442695, %v5664_v2  ;;  %v5280_v28 = vpop.f32.mrb[4].mxu0 }
 0x1f2   :  { %5931 = vpow2.f32 %v4625_v31  ;;  %v5665_v9 = vadd.f32 %v5280_v28, %v7229_v57  ;;  %v1929_v62 = vpop.f32.mrb[5].mxu0 }
 0x1f3   :  { %5933 = vpow2.f32 %v4624_v12  ;;  %v5666_v15 = vadd.f32 %v1929_v62, %v7232_v10 }
 0x1f4   :  { %v4627_v14 = vmul.f32 -1.442695, %v5665_v9  ;;  %v7248_v4 = vpop.permute.xlu1 %210 }
 0x1f5   :  { %v5283_v44 = vpop.f32.mrb[6].mxu0  ;;  %v4626_v37 = vmul.f32 -1.442695, %v5666_v15 }
 0x1f6   :  { %v5667_v11 = vadd.f32 %v5283_v44, %v7236_v40  ;;  %v1939_v25 = vpop.f32.mrb[7].mxu0  ;;  %5935 = vpow2.f32 %v4627_v14 }
 0x1f7   :  { %v5668_v2 = vadd.f32 %v1939_v25, %v7238_v35  ;;  %5937 = vpow2.f32 %v4626_v37 }
 0x1f8   :  { %v5928_v16 = vpop.eup %5927  ;;  %v4629_v28 = vmul.f32 -1.442695, %v5667_v11  ;;  %v7252_v37 = vpop.permute.xlu1 %244 }
 0x1f9   :  { %v5930_v31 = vpop.eup %5929  ;;  %v2001_v39 = vadd.f32 1.0, %v5928_v16  ;;  %v5286_v12 = vpop.f32.mrb[48].mxu0  ;;  %v4628_v9 = vmul.f32 -1.442695, %v5668_v2 }
 0x1fa   :  { %v2000_v22 = vadd.f32 1.0, %v5930_v31  ;;  %v1949_v62 = vpop.f32.mrb[49].mxu0 }
 0x1fb   :  { %5939 = vrcp.f32 %v2001_v39  ;;  %v7254_v39 = vpop.permute.xlu0 %239  ;;  %v2024_v31 = vadd.f32 %v1949_v62, %v7246_v43 }
 0x1fc   :  { %v5932_v15 = vpop.eup %5931  ;;  %5941 = vrcp.f32 %v2000_v22  ;;  %v2025_v22 = vadd.f32 %v5286_v12, %v7243_v52  ;;  %v7263_v12 = vpop.permute.xlu1 %220 }
 0x1fd   :  { %v5934_v44 = vpop.eup %5933  ;;  %v2003_v42 = vadd.f32 1.0, %v5932_v15  ;;  %5943 = vpow2.f32 %v4629_v28  ;;  %v5289_v25 = vpop.f32.mrb[50].mxu0  ;;  %v468_v15 = vadd.f32 %v7156_v8, %v7248_v4 }
 0x1fe   :  { %v2002_v56 = vadd.f32 1.0, %v5934_v44  ;;  %5945 = vpow2.f32 %v4628_v9  ;;  %v1959_v16 = vpop.f32.mrb[51].mxu0  ;;  %v2027_v26 = vadd.f32 %v5289_v25, %v7252_v37 }
 0x1ff   :  { %5947 = vrcp.f32 %v2003_v42  ;;  %v2026_v47 = vadd.f32 %v1959_v16, %v7254_v39  ;;  %v7266_v8 = vpop.permute.xlu0 %215 }
 0x200   :  { %5949 = vrcp.f32 %v2002_v56  ;;  %v5936_v14 = vpop.eup %5935  ;;  %v463_v56 = vadd.f32 %v7160_v60, %v7250_v34 }
 0x201   :  { %v5938_v11 = vpop.eup %5937  ;;  %v2005_v44 = vadd.f32 1.0, %v5936_v14  ;;  %v478_v14 = vadd.f32 %v7164_v45, %v7263_v12 }
 0x202   :  { %v2004_v36 = vadd.f32 1.0, %v5938_v11 }
 0x203   :  { %5951 = vrcp.f32 %v2005_v44 }
 0x205   :  { %v5940_v2 = vpop.eup %5939 }
 0x206   :  { %v5942_v28 = vpop.eup %5941  ;;  %v2029_v9 = vmul.f32 %v5940_v2, %v2025_v22  ;;  %v473_v22 = vadd.f32 %v7168_v30, %v7266_v8 }
 0x207   :  { %v5944_v24 = vpop.eup %5943  ;;  %v2028_v42 = vmul.f32 %v5942_v28, %v2024_v31 }
 0x208   :  { %v5946_v50 = vpop.eup %5945  ;;  %v2033_v48 = vadd.f32 %v2029_v9, %v468_v15  ;;  %v2007_v2 = vadd.f32 1.0, %v5944_v24 }
 0x209   :  { %v5948_v21 = vpop.eup %5947  ;;  %v2032_v62 = vadd.f32 %v2028_v42, %v463_v56  ;;  %v2006_v11 = vadd.f32 1.0, %v5946_v50 }
 0x20a   :  { %v5950_v20 = vpop.eup %5949  ;;  %v2031_v60 = vmul.f32 %v5948_v21, %v2027_v26  ;;  %5953 = vtanh.f32 %v2033_v48 }
 0x20b   :  { %v2030_v25 = vmul.f32 %v5950_v20, %v2026_v47  ;;  %5955 = vtanh.f32 %v2032_v62 }
 0x20c   :  { %v2035_v31 = vadd.f32 %v2031_v60, %v478_v14  ;;  %5957 = vrcp.f32 %v2004_v36 }
 0x20d   :  { %v2034_v28 = vadd.f32 %v2030_v25, %v473_v22  ;;  %v5952_v16 = vpop.eup %5951 }
 0x20e   :  { %5959 = vtanh.f32 %v2035_v31 }
 0x20f   :  { %5961 = vtanh.f32 %v2034_v28 }
 0x210   :  { %5963 = vrcp.f32 %v2007_v2 }
 0x211   :  { %5965 = vrcp.f32 %v2006_v11 }
 0x214   :  { %v5954_v15 = vpop.eup %5953 }
 0x215   :  { %v5956_v45 = vpop.eup %5955  ;;  %v2041_v44 = vsub.f32 0.0, %v5954_v15 }
 0x216   :  { %v5958_v21 = vpop.eup %5957  ;;  %v2040_v26 = vsub.f32 0.0, %v5956_v45 }
 0x217   :  { %v2045_v30 = vmul.f32 %v5952_v16, %v2041_v44 }
 0x218   :  { %v5960_v9 = vpop.eup %5959  ;;  %v2044_v20 = vmul.f32 %v5958_v21, %v2040_v26 }
 0x219   :  { %v5962_v48 = vpop.eup %5961  ;;  %v2043_v47 = vsub.f32 0.0, %v5960_v9  ;;  %v7272_v56 = vadd.f32 %v5954_v15, %v2045_v30 }
 0x21a   :  { %v5964_v24 = vpop.eup %5963  ;;  %v2042_v36 = vsub.f32 0.0, %v5962_v48  ;;  %v7274_v42 = vadd.f32 %v5956_v45, %v2044_v20 }
 0x21b   :  { %v5966_v50 = vpop.eup %5965  ;;  %v2047_v62 = vmul.f32 %v5964_v24, %v2043_v47 }
 0x21c   :  { %v2046_v14 = vmul.f32 %v5966_v50, %v2042_v36  ;;  %v5583_v60 = vpack.c.bf16 %v7272_v56, %v7274_v42 }
 0x21d   :  { %v7278_v22 = vadd.f32 %v5960_v9, %v2047_v62 }
 0x21e   :  { %v7280_v25 = vadd.f32 %v5962_v48, %v2046_v14  ;;  %5584 = vmatprep.subr.bf16.mxu1 %v5583_v60 }
 0x21f   :  { %8031 = vst [vmem:[#allocation27_spill] sm:$0xff] %v7278_v22  ;;  %5586 = vmatpush3.bf16.msra.mxu1 %v5583_v60 }
 0x220   :  { %8032 = vst [vmem:[#allocation28_spill] sm:$0xff] %v7280_v25  ;;  %v5587_v2 = vpack.c.bf16 %v7278_v22, %v7280_v25 }
 0x222   :  { %5588 = vmatprep.subr.bf16.mxu1 %v5587_v2 }
 0x223   :  { %5590 = vmatpush3.bf16.msra.mxu1 %v5587_v2 }
 0x226   :  { %5299 = vmatmul.mubr.msk.f32.vlgmr.msra.gmra.mrb[0].mxu1 %vm319_vm0, %v7078_v41 }
 0x227   :  { %5301 = vmatprep.mubr.msk.f32.mxu1 %vm319_vm0, %v7083_v55 }
 0x22a   :  { %5302 = vmatmul.mubr.msk.f32.gmra.mrb[2].mxu1 %vm319_vm0, %v7094_v0 }
 0x22b   :  { %5304 = vmatprep.mubr.msk.f32.mxu1 %vm319_vm0, %v7099_v18 }
 0x22e   :  { %5305 = vmatmul.mubr.msk.f32.gmra.mrb[4].mxu1 %vm319_vm0, %v7108_v3 }
 0x22f   :  { %5307 = vmatprep.mubr.msk.f32.mxu1 %vm319_vm0, %v7113_v54 }
 0x232   :  { %5308 = vmatmul.mubr.msk.f32.gmra.mrb[6].mxu1 %vm319_vm0, %v7122_v61 }
 0x233   :  { %5310 = vmatprep.mubr.msk.f32.mxu1 %vm319_vm0, %v7127_v58 }
 0x236   :  { %5311 = vmatmul.mubr.msk.f32.gmra.mrb[48].mxu1 %vm319_vm0, %v7136_v63 }
 0x237   :  { %5313 = vmatprep.mubr.msk.f32.mxu1 %vm319_vm0, %v7141_v6 }
 0x23a   :  { %5314 = vmatmul.mubr.msk.f32.gmra.mrb[50].mxu1 %vm319_vm0, %v7150_v5 }
 0x23b   :  { %5350 = vmatprep.mubr.msk.f32.mxu1 %vm319_vm0, %v7067_v32 }
 0x2f9   :  { %v5300_v31 = vpop.f32.mrb[0].mxu1 }
 0x2fa   :  { %v5669_v11 = vadd.f32 %v5300_v31, %v7204_v23  ;;  %v2134_v28 = vpop.f32.mrb[1].mxu1 }
 0x2fb   :  { %v5670_v16 = vadd.f32 %v2134_v28, %v7206_v29 }
 0x2fc   :  { %v4643_v15 = vmul.f32 -1.442695, %v5669_v11 }
 0x2fd   :  { %v4642_v45 = vmul.f32 -1.442695, %v5670_v16  ;;  %v5303_v44 = vpop.f32.mrb[2].mxu1 }
 0x2fe   :  { %5967 = vpow2.f32 %v4643_v15  ;;  %v5671_v21 = vadd.f32 %v5303_v44, %v7216_v46  ;;  %v2144_v26 = vpop.f32.mrb[3].mxu1 }
 0x2ff   :  { %5969 = vpow2.f32 %v4642_v45  ;;  %v5672_v9 = vadd.f32 %v2144_v26, %v7218_v13 }
 0x300   :  { %v4645_v30 = vmul.f32 -1.442695, %v5671_v21 }
 0x301   :  { %v4644_v48 = vmul.f32 -1.442695, %v5672_v9  ;;  %v5306_v20 = vpop.f32.mrb[4].mxu1 }
 0x302   :  { %5971 = vpow2.f32 %v4645_v30  ;;  %v5673_v47 = vadd.f32 %v5306_v20, %v7229_v57  ;;  %v2154_v24 = vpop.f32.mrb[5].mxu1 }
 0x303   :  { %5973 = vpow2.f32 %v4644_v48  ;;  %v5674_v36 = vadd.f32 %v2154_v24, %v7232_v10 }
 0x304   :  { %v4647_v50 = vmul.f32 -1.442695, %v5673_v47 }
 0x305   :  { %v5309_v62 = vpop.f32.mrb[6].mxu1  ;;  %v4646_v14 = vmul.f32 -1.442695, %v5674_v36 }
 0x306   :  { %v5675_v60 = vadd.f32 %v5309_v62, %v7236_v40  ;;  %v2164_v2 = vpop.f32.mrb[7].mxu1  ;;  %5975 = vpow2.f32 %v4647_v50 }
 0x307   :  { %v5676_v31 = vadd.f32 %v2164_v2, %v7238_v35  ;;  %5977 = vpow2.f32 %v4646_v14 }
 0x308   :  { %v5968_v11 = vpop.eup %5967  ;;  %v4649_v15 = vmul.f32 -1.442695, %v5675_v60 }
 0x309   :  { %v5970_v28 = vpop.eup %5969  ;;  %v2226_v16 = vadd.f32 1.0, %v5968_v11  ;;  %v5312_v45 = vpop.f32.mrb[48].mxu1  ;;  %v4648_v21 = vmul.f32 -1.442695, %v5676_v31  ;;  %v653_v31 = vadd.f32 %v7158_v51, %v7248_v4  ;;  %v663_v51 = vadd.f32 %v7166_v27, %v7263_v12 }
 0x30a   :  { %v2225_v44 = vadd.f32 1.0, %v5970_v28  ;;  %v2174_v26 = vpop.f32.mrb[49].mxu1  ;;  %v2250_v62 = vadd.f32 %v5312_v45, %v7243_v52 }
 0x30b   :  { %5979 = vrcp.f32 %v2226_v16  ;;  %v2249_v14 = vadd.f32 %v2174_v26, %v7246_v43 }
 0x30c   :  { %v5972_v9 = vpop.eup %5971  ;;  %5981 = vrcp.f32 %v2225_v44 }
 0x30d   :  { %v5974_v30 = vpop.eup %5973  ;;  %v2228_v48 = vadd.f32 1.0, %v5972_v9  ;;  %5983 = vpow2.f32 %v4649_v15  ;;  %v5315_v20 = vpop.f32.mrb[50].mxu1  ;;  %v648_v15 = vadd.f32 %v7162_v49, %v7250_v34 }
 0x30e   :  { %v2227_v47 = vadd.f32 1.0, %v5974_v30  ;;  %5985 = vpow2.f32 %v4648_v21  ;;  %v2184_v24 = vpop.f32.mrb[51].mxu1  ;;  %v2252_v30 = vadd.f32 %v5315_v20, %v7252_v37 }
 0x30f   :  { %5987 = vrcp.f32 %v2228_v48  ;;  %v2251_v26 = vadd.f32 %v2184_v24, %v7254_v39 }
 0x310   :  { %5989 = vrcp.f32 %v2227_v47  ;;  %v5976_v36 = vpop.eup %5975 }
 0x311   :  { %v5978_v50 = vpop.eup %5977  ;;  %v2230_v11 = vadd.f32 1.0, %v5976_v36 }
 0x312   :  { %v2229_v45 = vadd.f32 1.0, %v5978_v50 }
 0x313   :  { %5991 = vrcp.f32 %v2230_v11 }
 0x315   :  { %v5980_v60 = vpop.eup %5979 }
 0x316   :  { %v5982_v2 = vpop.eup %5981  ;;  %v2254_v28 = vmul.f32 %v5980_v60, %v2250_v62  ;;  %v658_v62 = vadd.f32 %v7170_v7, %v7266_v8 }
 0x317   :  { %v5984_v16 = vpop.eup %5983  ;;  %v2253_v44 = vmul.f32 %v5982_v2, %v2249_v14 }
 0x318   :  { %v5986_v21 = vpop.eup %5985  ;;  %v2258_v9 = vadd.f32 %v2254_v28, %v653_v31  ;;  %v2232_v60 = vadd.f32 1.0, %v5984_v16 }
 0x319   :  { %v5988_v48 = vpop.eup %5987  ;;  %v2257_v47 = vadd.f32 %v2253_v44, %v648_v15  ;;  %v2231_v20 = vadd.f32 1.0, %v5986_v21 }
 0x31a   :  { %v5990_v19 = vpop.eup %5989  ;;  %v2256_v36 = vmul.f32 %v5988_v48, %v2252_v30  ;;  %5993 = vtanh.f32 %v2258_v9 }
 0x31b   :  { %v2255_v49 = vmul.f32 %v5990_v19, %v2251_v26  ;;  %5995 = vtanh.f32 %v2257_v47 }
 0x31c   :  { %v2260_v14 = vadd.f32 %v2256_v36, %v663_v51  ;;  %5997 = vrcp.f32 %v2229_v45 }
 0x31d   :  { %v2259_v50 = vadd.f32 %v2255_v49, %v658_v62  ;;  %v5992_v24 = vpop.eup %5991 }
 0x31e   :  { %5999 = vtanh.f32 %v2260_v14 }
 0x31f   :  { %6001 = vtanh.f32 %v2259_v50 }
 0x320   :  { %6003 = vrcp.f32 %v2232_v60 }
 0x321   :  { %6005 = vrcp.f32 %v2231_v20 }
 0x324   :  { %v5994_v2 = vpop.eup %5993 }
 0x325   :  { %v5996_v27 = vpop.eup %5995  ;;  %v2266_v31 = vsub.f32 %v7272_v56, %v5994_v2 }
 0x326   :  { %v5998_v11 = vpop.eup %5997  ;;  %v2265_v7 = vsub.f32 %v7274_v42, %v5996_v27 }
 0x327   :  { %v2270_v19 = vmul.f32 %v5992_v24, %v2266_v31 }
 0x328   :  { %v6000_v28 = vpop.eup %5999  ;;  %v2269_v15 = vmul.f32 %v5998_v11, %v2265_v7 }
 0x329   :  { %v6002_v16 = vpop.eup %6001  ;;  %v2268_v44 = vsub.f32 %v7278_v22, %v6000_v28  ;;  %v7331_v9 = vadd.f32 %v5994_v2, %v2270_v19  ;;  %v8055_v22 = vld [vmem:[#allocation16_spill] sm:$0xff] }
 0x32a   :  { %v6004_v21 = vpop.eup %6003  ;;  %v2267_v30 = vsub.f32 %v7280_v25, %v6002_v16  ;;  %v7334_v45 = vadd.f32 %v5996_v27, %v2269_v15 }
 0x32b   :  { %v6006_v48 = vpop.eup %6005  ;;  %v2272_v47 = vmul.f32 %v6004_v21, %v2268_v44 }
 0x32c   :  { %v2271_v26 = vmul.f32 %v6006_v48, %v2267_v30  ;;  %v5591_v51 = vpack.c.bf16 %v7331_v9, %v7334_v45 }
 0x32d   :  { %v7338_v36 = vadd.f32 %v6000_v28, %v2272_v47 }
 0x32e   :  { %v7340_v62 = vadd.f32 %v6002_v16, %v2271_v26  ;;  %5592 = vmatprep.subr.bf16.mxu0 %v5591_v51 }
 0x32f   :  { %8033 = vst [vmem:[#allocation29_spill] sm:$0xff] %v7338_v36  ;;  %5594 = vmatpush3.bf16.msra.mxu0 %v5591_v51 }
 0x330   :  { %8034 = vst [vmem:[#allocation30_spill] sm:$0xff] %v7340_v62  ;;  %v5595_v49 = vpack.c.bf16 %v7338_v36, %v7340_v62 }
 0x332   :  { %5596 = vmatprep.subr.bf16.mxu0 %v5595_v49 }
 0x333   :  { %5598 = vmatpush3.bf16.msra.mxu0 %v5595_v49 }
 0x336   :  { %5325 = vmatmul.mubr.msk.f32.vlgmr.msra.gmra.mrb[12].mxu0 %vm319_vm0, %v7078_v41 }
 0x337   :  { %5327 = vmatprep.mubr.msk.f32.mxu0 %vm319_vm0, %v7083_v55 }
 0x33a   :  { %5328 = vmatmul.mubr.msk.f32.gmra.mrb[14].mxu0 %vm319_vm0, %v7094_v0 }
 0x33b   :  { %5330 = vmatprep.mubr.msk.f32.mxu0 %vm319_vm0, %v7099_v18 }
 0x33e   :  { %5331 = vmatmul.mubr.msk.f32.gmra.mrb[16].mxu0 %vm319_vm0, %v7108_v3 }
 0x33f   :  { %5333 = vmatprep.mubr.msk.f32.mxu0 %vm319_vm0, %v7113_v54 }
 0x342   :  { %5334 = vmatmul.mubr.msk.f32.gmra.mrb[18].mxu0 %vm319_vm0, %v7122_v61 }
 0x343   :  { %5336 = vmatprep.mubr.msk.f32.mxu0 %vm319_vm0, %v7127_v58 }
 0x346   :  { %5337 = vmatmul.mubr.msk.f32.gmra.mrb[52].mxu0 %vm319_vm0, %v7136_v63 }
 0x347   :  { %5339 = vmatprep.mubr.msk.f32.mxu0 %vm319_vm0, %v7141_v6 }
 0x34a   :  { %5340 = vmatmul.mubr.msk.f32.gmra.mrb[54].mxu0 %vm319_vm0, %v7150_v5 }
 0x34b   :  { %5376 = vmatprep.mubr.msk.f32.mxu0 %vm319_vm0, %v7067_v32 }
 0x409   :  { %v5326_v60 = vpop.f32.mrb[12].mxu0 }
 0x40a   :  { %v5677_v14 = vadd.f32 %v5326_v60, %v7204_v23  ;;  %v2360_v20 = vpop.f32.mrb[13].mxu0 }
 0x40b   :  { %v5678_v50 = vadd.f32 %v2360_v20, %v7206_v29 }
 0x40c   :  { %v4663_v24 = vmul.f32 -1.442695, %v5677_v14 }
 0x40d   :  { %v4662_v2 = vmul.f32 -1.442695, %v5678_v50  ;;  %v5329_v27 = vpop.f32.mrb[14].mxu0 }
 0x40e   :  { %6007 = vpow2.f32 %v4663_v24  ;;  %v5679_v31 = vadd.f32 %v5329_v27, %v7216_v46  ;;  %v2370_v11 = vpop.f32.mrb[15].mxu0 }
 0x40f   :  { %6009 = vpow2.f32 %v4662_v2  ;;  %v5680_v7 = vadd.f32 %v2370_v11, %v7218_v13 }
 0x410   :  { %v4665_v28 = vmul.f32 -1.442695, %v5679_v31 }
 0x411   :  { %v4664_v19 = vmul.f32 -1.442695, %v5680_v7  ;;  %v5332_v16 = vpop.f32.mrb[16].mxu0 }
 0x412   :  { %6011 = vpow2.f32 %v4665_v28  ;;  %v5681_v15 = vadd.f32 %v5332_v16, %v7229_v57  ;;  %v2380_v44 = vpop.f32.mrb[17].mxu0 }
 0x413   :  { %6013 = vpow2.f32 %v4664_v19  ;;  %v5682_v21 = vadd.f32 %v2380_v44, %v7232_v10 }
 0x414   :  { %v4667_v30 = vmul.f32 -1.442695, %v5681_v15 }
 0x415   :  { %v5335_v48 = vpop.f32.mrb[18].mxu0  ;;  %v4666_v47 = vmul.f32 -1.442695, %v5682_v21 }
 0x416   :  { %v5683_v26 = vadd.f32 %v5335_v48, %v7236_v40  ;;  %v2390_v51 = vpop.f32.mrb[19].mxu0  ;;  %6015 = vpow2.f32 %v4667_v30 }
 0x417   :  { %v5684_v49 = vadd.f32 %v2390_v51, %v7238_v35  ;;  %6017 = vpow2.f32 %v4666_v47  ;;  %v839_v51 = vadd.f32 %v7172_v38, %v7248_v4  ;;  %v849_v38 = vadd.f32 %v7180_v1, %v7263_v12 }
 0x418   :  { %v6008_v60 = vpop.eup %6007  ;;  %v4669_v50 = vmul.f32 -1.442695, %v5683_v26 }
 0x419   :  { %v6010_v14 = vpop.eup %6009  ;;  %v2452_v20 = vadd.f32 1.0, %v6008_v60  ;;  %v5338_v24 = vpop.f32.mrb[52].mxu0  ;;  %v4668_v27 = vmul.f32 -1.442695, %v5684_v49 }
 0x41a   :  { %v2451_v2 = vadd.f32 1.0, %v6010_v14  ;;  %v2400_v31 = vpop.f32.mrb[53].mxu0  ;;  %v2476_v30 = vadd.f32 %v5338_v24, %v7243_v52 }
 0x41b   :  { %6019 = vrcp.f32 %v2452_v20  ;;  %v2475_v47 = vadd.f32 %v2400_v31, %v7246_v43  ;;  %v834_v20 = vadd.f32 %v7176_v59, %v7250_v34 }
 0x41c   :  { %v6012_v11 = vpop.eup %6011  ;;  %6021 = vrcp.f32 %v2451_v2 }
 0x41d   :  { %v6014_v7 = vpop.eup %6013  ;;  %v2454_v28 = vadd.f32 1.0, %v6012_v11  ;;  %6023 = vpow2.f32 %v4669_v50  ;;  %v5341_v19 = vpop.f32.mrb[54].mxu0 }
 0x41e   :  { %v2453_v16 = vadd.f32 1.0, %v6014_v7  ;;  %6025 = vpow2.f32 %v4668_v27  ;;  %v2410_v15 = vpop.f32.mrb[55].mxu0  ;;  %v2478_v11 = vadd.f32 %v5341_v19, %v7252_v37 }
 0x41f   :  { %6027 = vrcp.f32 %v2454_v28  ;;  %v2477_v31 = vadd.f32 %v2410_v15, %v7254_v39 }
 0x420   :  { %6029 = vrcp.f32 %v2453_v16  ;;  %v6016_v44 = vpop.eup %6015 }
 0x421   :  { %v6018_v21 = vpop.eup %6017  ;;  %v2456_v49 = vadd.f32 1.0, %v6016_v44 }
 0x422   :  { %v2455_v24 = vadd.f32 1.0, %v6018_v21 }
 0x423   :  { %6031 = vrcp.f32 %v2456_v49 }
 0x425   :  { %v6020_v48 = vpop.eup %6019 }
 0x426   :  { %v6022_v26 = vpop.eup %6021  ;;  %v2480_v60 = vmul.f32 %v6020_v48, %v2476_v30  ;;  %v844_v30 = vadd.f32 %v7184_v53, %v7266_v8 }
 0x427   :  { %v6024_v14 = vpop.eup %6023  ;;  %v2479_v50 = vmul.f32 %v6022_v26, %v2475_v47 }
 0x428   :  { %v6026_v2 = vpop.eup %6025  ;;  %v2484_v27 = vadd.f32 %v2480_v60, %v839_v51  ;;  %v2458_v48 = vadd.f32 1.0, %v6024_v14 }
 0x429   :  { %v6028_v7 = vpop.eup %6027  ;;  %v2483_v28 = vadd.f32 %v2479_v50, %v834_v20  ;;  %v2457_v19 = vadd.f32 1.0, %v6026_v2 }
 0x42a   :  { %v6030_v16 = vpop.eup %6029  ;;  %v2482_v44 = vmul.f32 %v6028_v7, %v2478_v11  ;;  %6033 = vtanh.f32 %v2484_v27 }
 0x42b   :  { %v2481_v59 = vmul.f32 %v6030_v16, %v2477_v31  ;;  %6035 = vtanh.f32 %v2483_v28 }
 0x42c   :  { %v2486_v47 = vadd.f32 %v2482_v44, %v849_v38  ;;  %6037 = vrcp.f32 %v2455_v24 }
 0x42d   :  { %v2485_v21 = vadd.f32 %v2481_v59, %v844_v30  ;;  %v6032_v15 = vpop.eup %6031 }
 0x42e   :  { %6039 = vtanh.f32 %v2486_v47 }
 0x42f   :  { %6041 = vtanh.f32 %v2485_v21 }
 0x430   :  { %6043 = vrcp.f32 %v2458_v48 }
 0x431   :  { %6045 = vrcp.f32 %v2457_v19 }
 0x434   :  { %v6034_v26 = vpop.eup %6033 }
 0x435   :  { %v6036_v1 = vpop.eup %6035  ;;  %v2492_v51 = vsub.f32 %v7331_v9, %v6034_v26 }
 0x436   :  { %v6038_v49 = vpop.eup %6037  ;;  %v2491_v53 = vsub.f32 %v7334_v45, %v6036_v1 }
 0x437   :  { %v2496_v20 = vmul.f32 %v6032_v15, %v2492_v51 }
 0x438   :  { %v6040_v60 = vpop.eup %6039  ;;  %v2495_v50 = vmul.f32 %v6038_v49, %v2491_v53 }
 0x439   :  { %v6042_v14 = vpop.eup %6041  ;;  %v2494_v27 = vsub.f32 %v7338_v36, %v6040_v60  ;;  %v7391_v11 = vadd.f32 %v6034_v26, %v2496_v20  ;;  %v8047_v36 = vld [vmem:[#allocation15_spill] sm:$0xff] }
 0x43a   :  { %v6044_v2 = vpop.eup %6043  ;;  %v2493_v7 = vsub.f32 %v7340_v62, %v6042_v14  ;;  %v7394_v28 = vadd.f32 %v6036_v1, %v2495_v50 }
 0x43b   :  { %8035 = vst [vmem:[#allocation31_spill] sm:$0xff] %v7391_v11  ;;  %v6046_v24 = vpop.eup %6045  ;;  %v2498_v31 = vmul.f32 %v6044_v2, %v2494_v27 }
 0x43c   :  { %8036 = vst [vmem:[#allocation32_spill] sm:$0xff] %v7394_v28  ;;  %v2497_v16 = vmul.f32 %v6046_v24, %v2493_v7  ;;  %v5599_v38 = vpack.c.bf16 %v7391_v11, %v7394_v28 }
 0x43d   :  { %v7398_v44 = vadd.f32 %v6040_v60, %v2498_v31 }
 0x43e   :  { %v7400_v30 = vadd.f32 %v6042_v14, %v2497_v16  ;;  %5600 = vmatprep.subr.bf16.mxu1 %v5599_v38 }
 0x43f   :  { %8037 = vst [vmem:[#allocation33_spill] sm:$0xff] %v7398_v44  ;;  %5602 = vmatpush3.bf16.msra.mxu1 %v5599_v38 }
 0x440   :  { %8038 = vst [vmem:[#allocation34_spill] sm:$0xff] %v7400_v30  ;;  %v5603_v59 = vpack.c.bf16 %v7398_v44, %v7400_v30 }
 0x442   :  { %5604 = vmatprep.subr.bf16.mxu1 %v5603_v59 }
 0x443   :  { %5606 = vmatpush3.bf16.msra.mxu1 %v5603_v59 }
 0x446   :  { %5351 = vmatmul.mubr.msk.f32.vlgmr.msra.gmra.mrb[12].mxu1 %vm319_vm0, %v7078_v41 }
 0x447   :  { %5353 = vmatprep.mubr.msk.f32.mxu1 %vm319_vm0, %v7083_v55 }
 0x44a   :  { %5354 = vmatmul.mubr.msk.f32.gmra.mrb[14].mxu1 %vm319_vm0, %v7094_v0 }
 0x44b   :  { %5356 = vmatprep.mubr.msk.f32.mxu1 %vm319_vm0, %v7099_v18 }
 0x44e   :  { %5357 = vmatmul.mubr.msk.f32.gmra.mrb[16].mxu1 %vm319_vm0, %v7108_v3 }
 0x44f   :  { %5359 = vmatprep.mubr.msk.f32.mxu1 %vm319_vm0, %v7113_v54 }
 0x452   :  { %5360 = vmatmul.mubr.msk.f32.gmra.mrb[18].mxu1 %vm319_vm0, %v7122_v61 }
 0x453   :  { %5362 = vmatprep.mubr.msk.f32.mxu1 %vm319_vm0, %v7127_v58 }
 0x456   :  { %5363 = vmatmul.mubr.msk.f32.gmra.mrb[52].mxu1 %vm319_vm0, %v7136_v63 }
 0x457   :  { %5365 = vmatprep.mubr.msk.f32.mxu1 %vm319_vm0, %v7141_v6 }
 0x45a   :  { %5366 = vmatmul.mubr.msk.f32.gmra.mrb[54].mxu1 %vm319_vm0, %v7150_v5 }
 0x45b   :  { %5402 = vmatprep.mubr.msk.f32.mxu1 %vm319_vm0, %v7067_v32 }
 0x519   :  { %v5352_v41 = vpop.f32.mrb[12].mxu1 }
 0x51a   :  { %v5685_v55 = vadd.f32 %v5352_v41, %v7204_v23  ;;  %v2586_v0 = vpop.f32.mrb[13].mxu1 }
 0x51b   :  { %v5686_v18 = vadd.f32 %v2586_v0, %v7206_v29 }
 0x51c   :  { %v4683_v3 = vmul.f32 -1.442695, %v5685_v55 }
 0x51d   :  { %v4682_v54 = vmul.f32 -1.442695, %v5686_v18  ;;  %v5355_v61 = vpop.f32.mrb[14].mxu1 }
 0x51e   :  { %6047 = vpow2.f32 %v4683_v3  ;;  %v5687_v58 = vadd.f32 %v5355_v61, %v7216_v46  ;;  %v2596_v63 = vpop.f32.mrb[15].mxu1 }
 0x51f   :  { %6049 = vpow2.f32 %v4682_v54  ;;  %v5688_v6 = vadd.f32 %v2596_v63, %v7218_v13  ;;  %v1025_v63 = vadd.f32 %v7174_v33, %v7248_v4 }
 0x520   :  { %v4685_v5 = vmul.f32 -1.442695, %v5687_v58 }
 0x521   :  { %v4684_v48 = vmul.f32 -1.442695, %v5688_v6  ;;  %v5358_v47 = vpop.f32.mrb[16].mxu1 }
 0x522   :  { %6051 = vpow2.f32 %v4685_v5  ;;  %v5689_v32 = vadd.f32 %v5358_v47, %v7229_v57  ;;  %v2606_v19 = vpop.f32.mrb[17].mxu1  ;;  %v1020_v47 = vadd.f32 %v7178_v17, %v7250_v34 }
 0x523   :  { %6053 = vpow2.f32 %v4684_v48  ;;  %v5690_v21 = vadd.f32 %v2606_v19, %v7232_v10 }
 0x524   :  { %v4687_v15 = vmul.f32 -1.442695, %v5689_v32 }
 0x525   :  { %v5361_v26 = vpop.f32.mrb[18].mxu1  ;;  %v4686_v1 = vmul.f32 -1.442695, %v5690_v21 }
 0x526   :  { %v5691_v51 = vadd.f32 %v5361_v26, %v7236_v40  ;;  %v2616_v49 = vpop.f32.mrb[19].mxu1  ;;  %6055 = vpow2.f32 %v4687_v15 }
 0x527   :  { %v5692_v53 = vadd.f32 %v2616_v49, %v7238_v35  ;;  %6057 = vpow2.f32 %v4686_v1 }
 0x528   :  { %v6048_v60 = vpop.eup %6047  ;;  %v4689_v50 = vmul.f32 -1.442695, %v5691_v51 }
 0x529   :  { %v6050_v20 = vpop.eup %6049  ;;  %v2678_v14 = vadd.f32 1.0, %v6048_v60  ;;  %v5364_v27 = vpop.f32.mrb[52].mxu1  ;;  %v4688_v7 = vmul.f32 -1.442695, %v5692_v53  ;;  %v8039_v60 = vld [vmem:[#allocation9_spill] sm:$0xff] }
 0x52a   :  { %v2677_v2 = vadd.f32 1.0, %v6050_v20  ;;  %v2626_v24 = vpop.f32.mrb[53].mxu1  ;;  %v2702_v3 = vadd.f32 %v5364_v27, %v7243_v52  ;;  %v1035_v33 = vadd.f32 %v8039_v60, %v7263_v12  ;;  %v7495_v60 = vld [vmem:[%s7955_s7 + $0x28] sm:$0xff] }
 0x52b   :  { %6059 = vrcp.f32 %v2678_v14  ;;  %v2701_v61 = vadd.f32 %v2626_v24, %v7246_v43  ;;  %v8040_v14 = vld [vmem:[#allocation10_spill] sm:$0xff] }
 0x52c   :  { %v6052_v31 = vpop.eup %6051  ;;  %6061 = vrcp.f32 %v2677_v2 }
 0x52d   :  { %v6054_v16 = vpop.eup %6053  ;;  %v2680_v38 = vadd.f32 1.0, %v6052_v31  ;;  %6063 = vpow2.f32 %v4689_v50  ;;  %v5367_v59 = vpop.f32.mrb[54].mxu1  ;;  %v1030_v50 = vadd.f32 %v8040_v14, %v7266_v8  ;;  %v7516_v14 = vld [vmem:[%s7955_s7 + $0x40] sm:$0xff] }
 0x52e   :  { %v2679_v41 = vadd.f32 1.0, %v6054_v16  ;;  %6065 = vpow2.f32 %v4688_v7  ;;  %v2636_v55 = vpop.f32.mrb[55].mxu1  ;;  %v2704_v15 = vadd.f32 %v5367_v59, %v7252_v37 }
 0x52f   :  { %6067 = vrcp.f32 %v2680_v38  ;;  %v2703_v49 = vadd.f32 %v2636_v55, %v7254_v39 }
 0x530   :  { %6069 = vrcp.f32 %v2679_v41  ;;  %v6056_v0 = vpop.eup %6055 }
 0x531   :  { %v6058_v18 = vpop.eup %6057  ;;  %v2682_v6 = vadd.f32 1.0, %v6056_v0 }
 0x532   :  { %v2681_v1 = vadd.f32 1.0, %v6058_v18 }
 0x533   :  { %6071 = vrcp.f32 %v2682_v6 }
 0x535   :  { %v6060_v54 = vpop.eup %6059 }
 0x536   :  { %v6062_v58 = vpop.eup %6061  ;;  %v2706_v5 = vmul.f32 %v6060_v54, %v2702_v3 }
 0x537   :  { %v6064_v48 = vpop.eup %6063  ;;  %v2705_v32 = vmul.f32 %v6062_v58, %v2701_v61 }
 0x538   :  { %v6066_v19 = vpop.eup %6065  ;;  %v2710_v21 = vadd.f32 %v2706_v5, %v1025_v63  ;;  %v2684_v27 = vadd.f32 1.0, %v6064_v48 }
 0x539   :  { %v6068_v26 = vpop.eup %6067  ;;  %v2709_v51 = vadd.f32 %v2705_v32, %v1020_v47  ;;  %v2683_v7 = vadd.f32 1.0, %v6066_v19 }
 0x53a   :  { %v6070_v53 = vpop.eup %6069  ;;  %v2708_v20 = vmul.f32 %v6068_v26, %v2704_v15  ;;  %6073 = vtanh.f32 %v2710_v21 }
 0x53b   :  { %v2707_v17 = vmul.f32 %v6070_v53, %v2703_v49  ;;  %6075 = vtanh.f32 %v2709_v51  ;;  %v7474_v51 = vld [vmem:[%s7955_s7 + $0x10] sm:$0xff]  ;;  %v7481_v49 = vld [vmem:[%s7955_s7 + $0x18] sm:$0xff]  ;;  %v7488_v53 = vld [vmem:[%s7955_s7 + $0x20] sm:$0xff] }
 0x53c   :  { %v2712_v2 = vadd.f32 %v2708_v20, %v1035_v33  ;;  %6077 = vrcp.f32 %v2681_v1  ;;  %v7467_v1 = vld [vmem:[%s7955_s7 + $0x8] sm:$0xff]  ;;  %v7502_v33 = vld [vmem:[%s7955_s7 + $0x30] sm:$0xff]  ;;  %v7509_v20 = vld [vmem:[%s7955_s7 + $0x38] sm:$0xff] }
 0x53d   :  { %v2711_v24 = vadd.f32 %v2707_v17, %v1030_v50  ;;  %v6072_v31 = vpop.eup %6071  ;;  %v7523_v50 = vld [vmem:[%s7955_s7 + $0x48] sm:$0xff]  ;;  %v7530_v17 = vld [vmem:[%s7955_s7 + $0x50] sm:$0xff] }
 0x53e   :  { %6079 = vtanh.f32 %v2712_v2  ;;  %v7544_v2 = vld [vmem:[%s7955_s7] sm:$0xff] }
 0x53f   :  { %6081 = vtanh.f32 %v2711_v24 }
 0x540   :  { %6083 = vrcp.f32 %v2684_v27  ;;  %v7537_v27 = vld [vmem:[%s7955_s7 + $0x58] sm:$0xff] }
 0x541   :  { %6085 = vrcp.f32 %v2683_v7 }
 0x544   :  { %v6074_v16 = vpop.eup %6073 }
 0x545   :  { %v6076_v38 = vpop.eup %6075  ;;  %v2718_v59 = vsub.f32 %v7391_v11, %v6074_v16 }
 0x546   :  { %v6078_v41 = vpop.eup %6077  ;;  %v2717_v55 = vsub.f32 %v7394_v28, %v6076_v38 }
 0x547   :  { %v2722_v18 = vmul.f32 %v6072_v31, %v2718_v59 }
 0x548   :  { %v6080_v0 = vpop.eup %6079  ;;  %v2721_v54 = vmul.f32 %v6078_v41, %v2717_v55 }
 0x549   :  { %v6082_v3 = vpop.eup %6081  ;;  %v2720_v61 = vsub.f32 %v7398_v44, %v6080_v0  ;;  %v7451_v63 = vadd.f32 %v6074_v16, %v2722_v18 }
 0x54a   :  { %v6084_v58 = vpop.eup %6083  ;;  %v2719_v6 = vsub.f32 %v7400_v30, %v6082_v3  ;;  %v7454_v48 = vadd.f32 %v6076_v38, %v2721_v54 }
 0x54b   :  { %8041 = vst [vmem:[#allocation9_spill] sm:$0xff] %v7451_v63  ;;  %v6086_v5 = vpop.eup %6085  ;;  %v2724_v47 = vmul.f32 %v6084_v58, %v2720_v61 }
 0x54c   :  { %8042 = vst [vmem:[#allocation10_spill] sm:$0xff] %v7454_v48  ;;  %v2723_v32 = vmul.f32 %v6086_v5, %v2719_v6  ;;  %v5607_v19 = vpack.c.bf16 %v7451_v63, %v7454_v48 }
 0x54d   :  { %v7458_v21 = vadd.f32 %v6080_v0, %v2724_v47 }
 0x54e   :  { %v7460_v15 = vadd.f32 %v6082_v3, %v2723_v32  ;;  %5608 = vmatprep.subr.bf16.mxu0 %v5607_v19 }
 0x54f   :  { %8043 = vst [vmem:[#allocation35_spill] sm:$0xff] %v7458_v21  ;;  %5610 = vmatpush3.bf16.msra.mxu0 %v5607_v19 }
 0x550   :  { %8044 = vst [vmem:[#allocation36_spill] sm:$0xff] %v7460_v15  ;;  %v5611_v26 = vpack.c.bf16 %v7458_v21, %v7460_v15 }
 0x552   :  { %5612 = vmatprep.subr.bf16.mxu0 %v5611_v26 }
 0x553   :  { %5614 = vmatpush3.bf16.msra.mxu0 %v5611_v26 }
 0x556   :  { %5377 = vmatmul.mubr.msk.f32.vlgmr.msra.gmra.mrb[24].mxu0 %vm319_vm0, %v7467_v1 }
 0x557   :  { %5379 = vmatprep.mubr.msk.f32.mxu0 %vm319_vm0, %v7474_v51 }
 0x55a   :  { %5380 = vmatmul.mubr.msk.f32.gmra.mrb[26].mxu0 %vm319_vm0, %v7481_v49 }
 0x55b   :  { %5382 = vmatprep.mubr.msk.f32.mxu0 %vm319_vm0, %v7488_v53 }
 0x55e   :  { %5383 = vmatmul.mubr.msk.f32.gmra.mrb[28].mxu0 %vm319_vm0, %v7495_v60 }
 0x55f   :  { %5385 = vmatprep.mubr.msk.f32.mxu0 %vm319_vm0, %v7502_v33 }
 0x562   :  { %5386 = vmatmul.mubr.msk.f32.gmra.mrb[30].mxu0 %vm319_vm0, %v7509_v20 }
 0x563   :  { %5388 = vmatprep.mubr.msk.f32.mxu0 %vm319_vm0, %v7516_v14 }
 0x566   :  { %5389 = vmatmul.mubr.msk.f32.gmra.mrb[56].mxu0 %vm319_vm0, %v7523_v50 }
 0x567   :  { %5391 = vmatprep.mubr.msk.f32.mxu0 %vm319_vm0, %v7530_v17 }
 0x56a   :  { %5392 = vmatmul.mubr.msk.f32.gmra.mrb[58].mxu0 %vm319_vm0, %v7537_v27 }
 0x56b   :  { %5428 = vmatprep.mubr.msk.f32.mxu0 %vm319_vm0, %v7544_v2 }
 0x629   :  { %v5378_v7 = vpop.f32.mrb[24].mxu0 }
 0x62a   :  { %v5693_v24 = vadd.f32 %v5378_v7, %v7204_v23  ;;  %v2812_v31 = vpop.f32.mrb[25].mxu0 }
 0x62b   :  { %v5694_v16 = vadd.f32 %v2812_v31, %v7206_v29 }
 0x62c   :  { %v4703_v38 = vmul.f32 -1.442695, %v5693_v24 }
 0x62d   :  { %v4702_v59 = vmul.f32 -1.442695, %v5694_v16  ;;  %v5381_v41 = vpop.f32.mrb[26].mxu0 }
 0x62e   :  { %6087 = vpow2.f32 %v4703_v38  ;;  %v5695_v55 = vadd.f32 %v5381_v41, %v7216_v46  ;;  %v2822_v0 = vpop.f32.mrb[27].mxu0 }
 0x62f   :  { %6089 = vpow2.f32 %v4702_v59  ;;  %v5696_v18 = vadd.f32 %v2822_v0, %v7218_v13 }
 0x630   :  { %v4705_v3 = vmul.f32 -1.442695, %v5695_v55 }
 0x631   :  { %v4704_v54 = vmul.f32 -1.442695, %v5696_v18  ;;  %v5384_v61 = vpop.f32.mrb[28].mxu0 }
 0x632   :  { %6091 = vpow2.f32 %v4705_v3  ;;  %v5697_v58 = vadd.f32 %v5384_v61, %v7229_v57  ;;  %v2832_v6 = vpop.f32.mrb[29].mxu0 }
 0x633   :  { %6093 = vpow2.f32 %v4704_v54  ;;  %v5698_v5 = vadd.f32 %v2832_v6, %v7232_v10 }
 0x634   :  { %v4707_v47 = vmul.f32 -1.442695, %v5697_v58 }
 0x635   :  { %v5387_v32 = vpop.f32.mrb[30].mxu0  ;;  %v4706_v19 = vmul.f32 -1.442695, %v5698_v5 }
 0x636   :  { %v5699_v26 = vadd.f32 %v5387_v32, %v7236_v40  ;;  %v2842_v7 = vpop.f32.mrb[31].mxu0  ;;  %6095 = vpow2.f32 %v4707_v47 }
 0x637   :  { %v5700_v24 = vadd.f32 %v2842_v7, %v7238_v35  ;;  %6097 = vpow2.f32 %v4706_v19 }
 0x638   :  { %v6088_v31 = vpop.eup %6087  ;;  %v4709_v59 = vmul.f32 -1.442695, %v5699_v26 }
 0x639   :  { %v6090_v16 = vpop.eup %6089  ;;  %v2904_v38 = vadd.f32 1.0, %v6088_v31  ;;  %v5390_v41 = vpop.f32.mrb[56].mxu0  ;;  %v4708_v0 = vmul.f32 -1.442695, %v5700_v24  ;;  %v8045_v31 = vld [vmem:[#allocation11_spill] sm:$0xff] }
 0x63a   :  { %v2903_v55 = vadd.f32 1.0, %v6090_v16  ;;  %v2852_v18 = vpop.f32.mrb[57].mxu0  ;;  %v2928_v26 = vadd.f32 %v5390_v41, %v7243_v52  ;;  %v1211_v16 = vadd.f32 %v8045_v31, %v7248_v4  ;;  %v1221_v31 = vadd.f32 %v8047_v36, %v7263_v12 }
 0x63b   :  { %6099 = vrcp.f32 %v2904_v38  ;;  %v2927_v19 = vadd.f32 %v2852_v18, %v7246_v43 }
 0x63c   :  { %v6092_v3 = vpop.eup %6091  ;;  %6101 = vrcp.f32 %v2903_v55 }
 0x63d   :  { %v6094_v54 = vpop.eup %6093  ;;  %v2906_v61 = vadd.f32 1.0, %v6092_v3  ;;  %6103 = vpow2.f32 %v4709_v59  ;;  %v5393_v58 = vpop.f32.mrb[58].mxu0  ;;  %v8046_v3 = vld [vmem:[#allocation13_spill] sm:$0xff] }
 0x63e   :  { %v2905_v6 = vadd.f32 1.0, %v6094_v54  ;;  %6105 = vpow2.f32 %v4708_v0  ;;  %v2862_v5 = vpop.f32.mrb[59].mxu0  ;;  %v1206_v0 = vadd.f32 %v8046_v3, %v7250_v34  ;;  %v2930_v30 = vadd.f32 %v5393_v58, %v7252_v37 }
 0x63f   :  { %6107 = vrcp.f32 %v2906_v61  ;;  %v2929_v18 = vadd.f32 %v2862_v5, %v7254_v39 }
 0x640   :  { %6109 = vrcp.f32 %v2905_v6  ;;  %v6096_v32 = vpop.eup %6095 }
 0x641   :  { %v6098_v47 = vpop.eup %6097  ;;  %v2908_v38 = vadd.f32 1.0, %v6096_v32 }
 0x642   :  { %v2907_v41 = vadd.f32 1.0, %v6098_v47 }
 0x643   :  { %6111 = vrcp.f32 %v2908_v38 }
 0x645   :  { %v6100_v7 = vpop.eup %6099 }
 0x646   :  { %v6102_v24 = vpop.eup %6101  ;;  %v2932_v55 = vmul.f32 %v6100_v7, %v2928_v26  ;;  %v8048_v26 = vld [vmem:[#allocation17_spill] sm:$0xff] }
 0x647   :  { %v6104_v59 = vpop.eup %6103  ;;  %v2931_v54 = vmul.f32 %v6102_v24, %v2927_v19  ;;  %v1216_v7 = vadd.f32 %v8048_v26, %v7266_v8 }
 0x648   :  { %v6106_v61 = vpop.eup %6105  ;;  %v2936_v6 = vadd.f32 %v2932_v55, %v1211_v16  ;;  %v2910_v24 = vadd.f32 1.0, %v6104_v59 }
 0x649   :  { %v6108_v62 = vpop.eup %6107  ;;  %v2935_v25 = vadd.f32 %v2931_v54, %v1206_v0  ;;  %v2909_v58 = vadd.f32 1.0, %v6106_v61 }
 0x64a   :  { %v6110_v44 = vpop.eup %6109  ;;  %v2934_v32 = vmul.f32 %v6108_v62, %v2930_v30  ;;  %6113 = vtanh.f32 %v2936_v6 }
 0x64b   :  { %v2933_v19 = vmul.f32 %v6110_v44, %v2929_v18  ;;  %6115 = vtanh.f32 %v2935_v25 }
 0x64c   :  { %v2938_v16 = vadd.f32 %v2934_v32, %v1221_v31  ;;  %6117 = vrcp.f32 %v2907_v41 }
 0x64d   :  { %v2937_v47 = vadd.f32 %v2933_v19, %v1216_v7  ;;  %v6112_v5 = vpop.eup %6111 }
 0x64e   :  { %6119 = vtanh.f32 %v2938_v16 }
 0x64f   :  { %6121 = vtanh.f32 %v2937_v47 }
 0x650   :  { %6123 = vrcp.f32 %v2910_v24 }
 0x651   :  { %6125 = vrcp.f32 %v2909_v58 }
 0x654   :  { %v6114_v55 = vpop.eup %6113 }
 0x655   :  { %v6116_v36 = vpop.eup %6115  ;;  %v2944_v62 = vsub.f32 %v7451_v63, %v6114_v55 }
 0x656   :  { %v6118_v30 = vpop.eup %6117  ;;  %v2943_v38 = vsub.f32 %v7454_v48, %v6116_v36 }
 0x657   :  { %v2948_v44 = vmul.f32 %v6112_v5, %v2944_v62 }
 0x658   :  { %v6120_v3 = vpop.eup %6119  ;;  %v2947_v25 = vmul.f32 %v6118_v30, %v2943_v38 }
 0x659   :  { %v6122_v59 = vpop.eup %6121  ;;  %v2946_v0 = vsub.f32 %v7458_v21, %v6120_v3  ;;  %v7571_v61 = vadd.f32 %v6114_v55, %v2948_v44 }
 0x65a   :  { %v6124_v54 = vpop.eup %6123  ;;  %v2945_v6 = vsub.f32 %v7460_v15, %v6122_v59  ;;  %v7574_v18 = vadd.f32 %v6116_v36, %v2947_v25 }
 0x65b   :  { %8049 = vst [vmem:[#allocation11_spill] sm:$0xff] %v7571_v61  ;;  %v6126_v41 = vpop.eup %6125  ;;  %v2950_v31 = vmul.f32 %v6124_v54, %v2946_v0 }
 0x65c   :  { %8050 = vst [vmem:[#allocation13_spill] sm:$0xff] %v7574_v18  ;;  %v2949_v32 = vmul.f32 %v6126_v41, %v2945_v6  ;;  %v5615_v26 = vpack.c.bf16 %v7571_v61, %v7574_v18 }
 0x65d   :  { %v7578_v7 = vadd.f32 %v6120_v3, %v2950_v31 }
 0x65e   :  { %v7580_v19 = vadd.f32 %v6122_v59, %v2949_v32  ;;  %5616 = vmatprep.subr.bf16.mxu1 %v5615_v26 }
 0x65f   :  { %8051 = vst [vmem:[#allocation15_spill] sm:$0xff] %v7578_v7  ;;  %5618 = vmatpush3.bf16.msra.mxu1 %v5615_v26 }
 0x660   :  { %8052 = vst [vmem:[#allocation17_spill] sm:$0xff] %v7580_v19  ;;  %v5619_v24 = vpack.c.bf16 %v7578_v7, %v7580_v19 }
 0x662   :  { %5620 = vmatprep.subr.bf16.mxu1 %v5619_v24 }
 0x663   :  { %5622 = vmatpush3.bf16.msra.mxu1 %v5619_v24 }
 0x666   :  { %5403 = vmatmul.mubr.msk.f32.vlgmr.msra.gmra.mrb[24].mxu1 %vm319_vm0, %v7467_v1 }
 0x667   :  { %5405 = vmatprep.mubr.msk.f32.mxu1 %vm319_vm0, %v7474_v51 }
 0x66a   :  { %5406 = vmatmul.mubr.msk.f32.gmra.mrb[26].mxu1 %vm319_vm0, %v7481_v49 }
 0x66b   :  { %5408 = vmatprep.mubr.msk.f32.mxu1 %vm319_vm0, %v7488_v53 }
 0x66e   :  { %5409 = vmatmul.mubr.msk.f32.gmra.mrb[28].mxu1 %vm319_vm0, %v7495_v60 }
 0x66f   :  { %5411 = vmatprep.mubr.msk.f32.mxu1 %vm319_vm0, %v7502_v33 }
 0x672   :  { %5412 = vmatmul.mubr.msk.f32.gmra.mrb[30].mxu1 %vm319_vm0, %v7509_v20 }
 0x673   :  { %5414 = vmatprep.mubr.msk.f32.mxu1 %vm319_vm0, %v7516_v14 }
 0x676   :  { %5415 = vmatmul.mubr.msk.f32.gmra.mrb[56].mxu1 %vm319_vm0, %v7523_v50 }
 0x677   :  { %5417 = vmatprep.mubr.msk.f32.mxu1 %vm319_vm0, %v7530_v17 }
 0x67a   :  { %5418 = vmatmul.mubr.msk.f32.gmra.mrb[58].mxu1 %vm319_vm0, %v7537_v27 }
 0x67b   :  { %5454 = vmatprep.mubr.msk.f32.mxu1 %vm319_vm0, %v7544_v2 }
 0x739   :  { %v5404_v16 = vpop.f32.mrb[24].mxu1 }
 0x73a   :  { %v5701_v58 = vadd.f32 %v5404_v16, %v7204_v23  ;;  %v3038_v47 = vpop.f32.mrb[25].mxu1 }
 0x73b   :  { %v5702_v5 = vadd.f32 %v3038_v47, %v7206_v29 }
 0x73c   :  { %v4723_v55 = vmul.f32 -1.442695, %v5701_v58 }
 0x73d   :  { %v4722_v36 = vmul.f32 -1.442695, %v5702_v5  ;;  %v5407_v62 = vpop.f32.mrb[26].mxu1 }
 0x73e   :  { %6127 = vpow2.f32 %v4723_v55  ;;  %v5703_v30 = vadd.f32 %v5407_v62, %v7216_v46  ;;  %v3048_v38 = vpop.f32.mrb[27].mxu1 }
 0x73f   :  { %6129 = vpow2.f32 %v4722_v36  ;;  %v5704_v3 = vadd.f32 %v3048_v38, %v7218_v13 }
 0x740   :  { %v4725_v44 = vmul.f32 -1.442695, %v5703_v30 }
 0x741   :  { %v4724_v59 = vmul.f32 -1.442695, %v5704_v3  ;;  %v5410_v25 = vpop.f32.mrb[28].mxu1 }
 0x742   :  { %6131 = vpow2.f32 %v4725_v44  ;;  %v5705_v2 = vadd.f32 %v5410_v25, %v7229_v57  ;;  %v3058_v0 = vpop.f32.mrb[29].mxu1 }
 0x743   :  { %6133 = vpow2.f32 %v4724_v59  ;;  %v5706_v54 = vadd.f32 %v3058_v0, %v7232_v10 }
 0x744   :  { %v4727_v6 = vmul.f32 -1.442695, %v5705_v2 }
 0x745   :  { %v5413_v41 = vpop.f32.mrb[30].mxu1  ;;  %v4726_v31 = vmul.f32 -1.442695, %v5706_v54 }
 0x746   :  { %v5707_v32 = vadd.f32 %v5413_v41, %v7236_v40  ;;  %v3068_v26 = vpop.f32.mrb[31].mxu1  ;;  %6135 = vpow2.f32 %v4727_v6 }
 0x747   :  { %v5708_v24 = vadd.f32 %v3068_v26, %v7238_v35  ;;  %6137 = vpow2.f32 %v4726_v31  ;;  %v8053_v26 = vld [vmem:[#allocation12_spill] sm:$0xff] }
 0x748   :  { %v6128_v16 = vpop.eup %6127  ;;  %v4729_v5 = vmul.f32 -1.442695, %v5707_v32 }
 0x749   :  { %v6130_v58 = vpop.eup %6129  ;;  %v3130_v47 = vadd.f32 1.0, %v6128_v16  ;;  %v5416_v55 = vpop.f32.mrb[56].mxu1  ;;  %v4728_v62 = vmul.f32 -1.442695, %v5708_v24  ;;  %v1397_v24 = vadd.f32 %v8053_v26, %v7248_v4  ;;  %v1407_v26 = vadd.f32 %v8055_v22, %v7263_v12 }
 0x74a   :  { %v3129_v36 = vadd.f32 1.0, %v6130_v58  ;;  %v3078_v30 = vpop.f32.mrb[57].mxu1  ;;  %v3154_v6 = vadd.f32 %v5416_v55, %v7243_v52 }
 0x74b   :  { %6139 = vrcp.f32 %v3130_v47  ;;  %v3153_v31 = vadd.f32 %v3078_v30, %v7246_v43 }
 0x74c   :  { %v6132_v38 = vpop.eup %6131  ;;  %6141 = vrcp.f32 %v3129_v36 }
 0x74d   :  { %v6134_v3 = vpop.eup %6133  ;;  %v3132_v44 = vadd.f32 1.0, %v6132_v38  ;;  %6143 = vpow2.f32 %v4729_v5  ;;  %v5419_v59 = vpop.f32.mrb[58].mxu1  ;;  %v8054_v5 = vld [vmem:[#allocation14_spill] sm:$0xff] }
 0x74e   :  { %v3131_v25 = vadd.f32 1.0, %v6134_v3  ;;  %6145 = vpow2.f32 %v4728_v62  ;;  %v3088_v2 = vpop.f32.mrb[59].mxu1  ;;  %v1392_v36 = vadd.f32 %v8054_v5, %v7250_v34 }
 0x74f   :  { %6147 = vrcp.f32 %v3132_v44  ;;  %v3156_v44 = vadd.f32 %v5419_v59, %v7252_v37  ;;  %v3155_v30 = vadd.f32 %v3088_v2, %v7254_v39 }
 0x750   :  { %6149 = vrcp.f32 %v3131_v25  ;;  %v6136_v0 = vpop.eup %6135 }
 0x751   :  { %v6138_v54 = vpop.eup %6137  ;;  %v3134_v16 = vadd.f32 1.0, %v6136_v0 }
 0x752   :  { %v3133_v55 = vadd.f32 1.0, %v6138_v54 }
 0x753   :  { %6151 = vrcp.f32 %v3134_v16 }
 0x755   :  { %v6140_v41 = vpop.eup %6139 }
 0x756   :  { %v6142_v32 = vpop.eup %6141  ;;  %v3158_v58 = vmul.f32 %v6140_v41, %v3154_v6  ;;  %v8056_v6 = vld [vmem:[#allocation18_spill] sm:$0xff] }
 0x757   :  { %v6144_v47 = vpop.eup %6143  ;;  %v3157_v62 = vmul.f32 %v6142_v32, %v3153_v31  ;;  %v1402_v41 = vadd.f32 %v8056_v6, %v7266_v8 }
 0x758   :  { %v6146_v38 = vpop.eup %6145  ;;  %v3162_v3 = vadd.f32 %v3158_v58, %v1397_v24  ;;  %v3136_v32 = vadd.f32 1.0, %v6144_v47 }
 0x759   :  { %v6148_v25 = vpop.eup %6147  ;;  %v3161_v15 = vadd.f32 %v3157_v62, %v1392_v36  ;;  %v3135_v59 = vadd.f32 1.0, %v6146_v38 }
 0x75a   :  { %v6150_v21 = vpop.eup %6149  ;;  %v3160_v0 = vmul.f32 %v6148_v25, %v3156_v44  ;;  %6153 = vtanh.f32 %v3162_v3 }
 0x75b   :  { %v3159_v31 = vmul.f32 %v6150_v21, %v3155_v30  ;;  %6155 = vtanh.f32 %v3161_v15 }
 0x75c   :  { %v3164_v24 = vadd.f32 %v3160_v0, %v1407_v26  ;;  %6157 = vrcp.f32 %v3133_v55 }
 0x75d   :  { %v3163_v54 = vadd.f32 %v3159_v31, %v1402_v41  ;;  %v6152_v2 = vpop.eup %6151 }
 0x75e   :  { %6159 = vtanh.f32 %v3164_v24 }
 0x75f   :  { %6161 = vtanh.f32 %v3163_v54 }
 0x760   :  { %6163 = vrcp.f32 %v3136_v32 }
 0x761   :  { %6165 = vrcp.f32 %v3135_v59 }
 0x764   :  { %v6154_v58 = vpop.eup %6153 }
 0x765   :  { %v6156_v22 = vpop.eup %6155  ;;  %v3170_v16 = vsub.f32 %v7571_v61, %v6154_v58 }
 0x766   :  { %v6158_v5 = vpop.eup %6157  ;;  %v3169_v36 = vsub.f32 %v7574_v18, %v6156_v22  ;;  %v8063_v18 = vld [vmem:[#allocation23_spill] sm:$0xff] }
 0x767   :  { %v3174_v21 = vmul.f32 %v6152_v2, %v3170_v16 }
 0x768   :  { %v6160_v62 = vpop.eup %6159  ;;  %v3173_v15 = vmul.f32 %v6158_v5, %v3169_v36 }
 0x769   :  { %v6162_v47 = vpop.eup %6161  ;;  %v3172_v3 = vsub.f32 %v7578_v7, %v6160_v62  ;;  %v7631_v44 = vadd.f32 %v6154_v58, %v3174_v21 }
 0x76a   :  { %v6164_v38 = vpop.eup %6163  ;;  %v3171_v25 = vsub.f32 %v7580_v19, %v6162_v47  ;;  %v7634_v30 = vadd.f32 %v6156_v22, %v3173_v15 }
 0x76b   :  { %8057 = vst [vmem:[#allocation12_spill] sm:$0xff] %v7631_v44  ;;  %v6166_v55 = vpop.eup %6165  ;;  %v3176_v26 = vmul.f32 %v6164_v38, %v3172_v3 }
 0x76c   :  { %8058 = vst [vmem:[#allocation14_spill] sm:$0xff] %v7634_v30  ;;  %v3175_v0 = vmul.f32 %v6166_v55, %v3171_v25  ;;  %v5623_v6 = vpack.c.bf16 %v7631_v44, %v7634_v30 }
 0x76d   :  { %v7638_v41 = vadd.f32 %v6160_v62, %v3176_v26 }
 0x76e   :  { %v7640_v31 = vadd.f32 %v6162_v47, %v3175_v0  ;;  %5624 = vmatprep.subr.bf16.mxu0 %v5623_v6 }
 0x76f   :  { %8059 = vst [vmem:[#allocation16_spill] sm:$0xff] %v7638_v41  ;;  %5626 = vmatpush3.bf16.msra.mxu0 %v5623_v6 }
 0x770   :  { %8060 = vst [vmem:[#allocation18_spill] sm:$0xff] %v7640_v31  ;;  %v5627_v32 = vpack.c.bf16 %v7638_v41, %v7640_v31 }
 0x772   :  { %5628 = vmatprep.subr.bf16.mxu0 %v5627_v32 }
 0x773   :  { %5630 = vmatpush3.bf16.msra.mxu0 %v5627_v32 }
 0x776   :  { %5429 = vmatmul.mubr.msk.f32.vlgmr.msra.gmra.mrb[36].mxu0 %vm319_vm0, %v7467_v1 }
 0x777   :  { %5431 = vmatprep.mubr.msk.f32.mxu0 %vm319_vm0, %v7474_v51 }
 0x77a   :  { %5432 = vmatmul.mubr.msk.f32.gmra.mrb[38].mxu0 %vm319_vm0, %v7481_v49 }
 0x77b   :  { %5434 = vmatprep.mubr.msk.f32.mxu0 %vm319_vm0, %v7488_v53 }
 0x77e   :  { %5435 = vmatmul.mubr.msk.f32.gmra.mrb[40].mxu0 %vm319_vm0, %v7495_v60 }
 0x77f   :  { %5437 = vmatprep.mubr.msk.f32.mxu0 %vm319_vm0, %v7502_v33 }
 0x782   :  { %5438 = vmatmul.mubr.msk.f32.gmra.mrb[42].mxu0 %vm319_vm0, %v7509_v20 }
 0x783   :  { %5440 = vmatprep.mubr.msk.f32.mxu0 %vm319_vm0, %v7516_v14 }
 0x786   :  { %5441 = vmatmul.mubr.msk.f32.gmra.mrb[60].mxu0 %vm319_vm0, %v7523_v50 }
 0x787   :  { %5443 = vmatprep.mubr.msk.f32.mxu0 %vm319_vm0, %v7530_v17 }
 0x78a   :  { %5444 = vmatmul.mubr.msk.f32.gmra.mrb[62].mxu0 %vm319_vm0, %v7537_v27 }
 0x849   :  { %v5430_v24 = vpop.f32.mrb[36].mxu0 }
 0x84a   :  { %v5709_v59 = vadd.f32 %v5430_v24, %v7204_v23  ;;  %v3264_v54 = vpop.f32.mrb[37].mxu0 }
 0x84b   :  { %v5710_v2 = vadd.f32 %v3264_v54, %v7206_v29 }
 0x84c   :  { %v4743_v58 = vmul.f32 -1.442695, %v5709_v59 }
 0x84d   :  { %v4742_v22 = vmul.f32 -1.442695, %v5710_v2  ;;  %v5433_v16 = vpop.f32.mrb[38].mxu0 }
 0x84e   :  { %6167 = vpow2.f32 %v4743_v58  ;;  %v5711_v5 = vadd.f32 %v5433_v16, %v7216_v46  ;;  %v3274_v36 = vpop.f32.mrb[39].mxu0 }
 0x84f   :  { %6169 = vpow2.f32 %v4742_v22  ;;  %v5712_v62 = vadd.f32 %v3274_v36, %v7218_v13 }
 0x850   :  { %v4745_v21 = vmul.f32 -1.442695, %v5711_v5 }
 0x851   :  { %v4744_v47 = vmul.f32 -1.442695, %v5712_v62  ;;  %v5436_v15 = vpop.f32.mrb[40].mxu0 }
 0x852   :  { %6171 = vpow2.f32 %v4745_v21  ;;  %v5713_v3 = vadd.f32 %v5436_v15, %v7229_v57  ;;  %v3284_v38 = vpop.f32.mrb[41].mxu0 }
 0x853   :  { %6173 = vpow2.f32 %v4744_v47  ;;  %v5714_v25 = vadd.f32 %v3284_v38, %v7232_v10 }
 0x854   :  { %v4747_v55 = vmul.f32 -1.442695, %v5713_v3 }
 0x855   :  { %v5439_v26 = vpop.f32.mrb[42].mxu0  ;;  %v4746_v0 = vmul.f32 -1.442695, %v5714_v25 }
 0x856   :  { %v5715_v6 = vadd.f32 %v5439_v26, %v7236_v40  ;;  %v3294_v32 = vpop.f32.mrb[43].mxu0  ;;  %6175 = vpow2.f32 %v4747_v55 }
 0x857   :  { %v5716_v24 = vadd.f32 %v3294_v32, %v7238_v35  ;;  %6177 = vpow2.f32 %v4746_v0 }
 0x858   :  { %v6168_v59 = vpop.eup %6167  ;;  %v4749_v58 = vmul.f32 -1.442695, %v5715_v6 }
 0x859   :  { %v6170_v54 = vpop.eup %6169  ;;  %v3356_v2 = vadd.f32 1.0, %v6168_v59  ;;  %v5442_v22 = vpop.f32.mrb[60].mxu0  ;;  %v4748_v5 = vmul.f32 -1.442695, %v5716_v24  ;;  %v8061_v24 = vld [vmem:[#allocation19_spill] sm:$0xff] }
 0x85a   :  { %v3355_v16 = vadd.f32 1.0, %v6170_v54  ;;  %v3304_v36 = vpop.f32.mrb[61].mxu0  ;;  %v3380_v26 = vadd.f32 %v5442_v22, %v7243_v52  ;;  %v1583_v59 = vadd.f32 %v8061_v24, %v7248_v4  ;;  %v1593_v24 = vadd.f32 %v8063_v18, %v7263_v12 }
 0x85b   :  { %6179 = vrcp.f32 %v3356_v2  ;;  %v3379_v0 = vadd.f32 %v3304_v36, %v7246_v43 }
 0x85c   :  { %v6172_v62 = vpop.eup %6171  ;;  %6181 = vrcp.f32 %v3355_v16  ;;  %v8062_v16 = vld [vmem:[#allocation21_spill] sm:$0xff] }
 0x85d   :  { %v6174_v21 = vpop.eup %6173  ;;  %v3358_v47 = vadd.f32 1.0, %v6172_v62  ;;  %6183 = vpow2.f32 %v4749_v58  ;;  %v5445_v15 = vpop.f32.mrb[62].mxu0 }
 0x85e   :  { %v3357_v3 = vadd.f32 1.0, %v6174_v21  ;;  %6185 = vpow2.f32 %v4748_v5  ;;  %v3314_v38 = vpop.f32.mrb[63].mxu0  ;;  %v1578_v5 = vadd.f32 %v8062_v16, %v7250_v34 }
 0x85f   :  { %6187 = vrcp.f32 %v3358_v47  ;;  %v3381_v36 = vadd.f32 %v3314_v38, %v7254_v39 }
 0x860   :  { %6189 = vrcp.f32 %v3357_v3  ;;  %v6176_v25 = vpop.eup %6175  ;;  %v3382_v3 = vadd.f32 %v5445_v15, %v7252_v37 }
 0x861   :  { %v6178_v55 = vpop.eup %6177  ;;  %v3360_v54 = vadd.f32 1.0, %v6176_v25 }
 0x862   :  { %v3359_v22 = vadd.f32 1.0, %v6178_v55 }
 0x863   :  { %6191 = vrcp.f32 %v3360_v54 }
 0x865   :  { %v6180_v6 = vpop.eup %6179 }
 0x866   :  { %v6182_v32 = vpop.eup %6181  ;;  %v3384_v2 = vmul.f32 %v6180_v6, %v3380_v26  ;;  %v8064_v26 = vld [vmem:[#allocation25_spill] sm:$0xff] }
 0x867   :  { %v6184_v58 = vpop.eup %6183  ;;  %v3383_v62 = vmul.f32 %v6182_v32, %v3379_v0  ;;  %v1588_v6 = vadd.f32 %v8064_v26, %v7266_v8 }
 0x868   :  { %v6186_v21 = vpop.eup %6185  ;;  %v3388_v47 = vadd.f32 %v3384_v2, %v1583_v59  ;;  %v3362_v32 = vadd.f32 1.0, %v6184_v58 }
 0x869   :  { %v6188_v7 = vpop.eup %6187  ;;  %v3387_v19 = vadd.f32 %v3383_v62, %v1578_v5  ;;  %v3361_v15 = vadd.f32 1.0, %v6186_v21 }
 0x86a   :  { %v6190_v61 = vpop.eup %6189  ;;  %v3386_v25 = vmul.f32 %v6188_v7, %v3382_v3  ;;  %6193 = vtanh.f32 %v3388_v47 }
 0x86b   :  { %v3385_v0 = vmul.f32 %v6190_v61, %v3381_v36  ;;  %6195 = vtanh.f32 %v3387_v19 }
 0x86c   :  { %v3390_v59 = vadd.f32 %v3386_v25, %v1593_v24  ;;  %6197 = vrcp.f32 %v3359_v22 }
 0x86d   :  { %v3389_v55 = vadd.f32 %v3385_v0, %v1588_v6  ;;  %v6192_v38 = vpop.eup %6191 }
 0x86e   :  { %6199 = vtanh.f32 %v3390_v59 }
 0x86f   :  { %6201 = vtanh.f32 %v3389_v55 }
 0x870   :  { %6203 = vrcp.f32 %v3362_v32 }
 0x871   :  { %6205 = vrcp.f32 %v3361_v15 }
 0x874   :  { %v6194_v2 = vpop.eup %6193 }
 0x875   :  { %v6196_v18 = vpop.eup %6195  ;;  %v3396_v7 = vsub.f32 %v7631_v44, %v6194_v2 }
 0x876   :  { %v6198_v54 = vpop.eup %6197  ;;  %v3395_v16 = vsub.f32 %v7634_v30, %v6196_v18 }
 0x877   :  { %v3400_v61 = vmul.f32 %v6192_v38, %v3396_v7 }
 0x878   :  { %v6200_v5 = vpop.eup %6199  ;;  %v3399_v19 = vmul.f32 %v6198_v54, %v3395_v16 }
 0x879   :  { %v6202_v58 = vpop.eup %6201  ;;  %v3398_v62 = vsub.f32 %v7638_v41, %v6200_v5  ;;  %v7689_v47 = vadd.f32 %v6194_v2, %v3400_v61 }
 0x87a   :  { %v6204_v21 = vpop.eup %6203  ;;  %v3397_v3 = vsub.f32 %v7640_v31, %v6202_v58  ;;  %v7692_v36 = vadd.f32 %v6196_v18, %v3399_v19 }
 0x87b   :  { %8065 = vst [vmem:[#allocation19_spill] sm:$0xff] %v7689_v47  ;;  %v6206_v22 = vpop.eup %6205  ;;  %v3402_v24 = vmul.f32 %v6204_v21, %v3398_v62 }
 0x87c   :  { %8066 = vst [vmem:[#allocation21_spill] sm:$0xff] %v7692_v36  ;;  %v3401_v25 = vmul.f32 %v6206_v22, %v3397_v3  ;;  %v5631_v26 = vpack.c.bf16 %v7689_v47, %v7692_v36 }
 0x87d   :  { %v7696_v6 = vadd.f32 %v6200_v5, %v3402_v24 }
 0x87e   :  { %v7698_v0 = vadd.f32 %v6202_v58, %v3401_v25  ;;  %5632 = vmatprep.subr.bf16.mxu1 %v5631_v26 }
 0x87f   :  { %8067 = vst [vmem:[#allocation23_spill] sm:$0xff] %v7696_v6  ;;  %5634 = vmatpush3.bf16.msra.mxu1 %v5631_v26 }
 0x880   :  { %8068 = vst [vmem:[#allocation25_spill] sm:$0xff] %v7698_v0  ;;  %v5635_v32 = vpack.c.bf16 %v7696_v6, %v7698_v0 }
 0x882   :  { %5636 = vmatprep.subr.bf16.mxu1 %v5635_v32 }
 0x883   :  { %5638 = vmatpush3.bf16.msra.mxu1 %v5635_v32 }
 0x886   :  { %5455 = vmatmul.mubr.msk.f32.vlgmr.msra.gmra.mrb[36].mxu1 %vm319_vm0, %v7467_v1  ;;  %v3638_v1 = vld [vmem:[%s7960_s12] sm:$0xff] }
 0x887   :  { %5457 = vmatprep.mubr.msk.f32.mxu1 %vm319_vm0, %v7474_v51  ;;  %5480 = vmatprep.mubr.msk.f32.mxu0 %vm319_vm0, %v3638_v1 }
 0x88a   :  { %5458 = vmatmul.mubr.msk.f32.gmra.mrb[38].mxu1 %vm319_vm0, %v7481_v49 }
 0x88b   :  { %5460 = vmatprep.mubr.msk.f32.mxu1 %vm319_vm0, %v7488_v53 }
 0x88e   :  { %5461 = vmatmul.mubr.msk.f32.gmra.mrb[40].mxu1 %vm319_vm0, %v7495_v60 }
 0x88f   :  { %5463 = vmatprep.mubr.msk.f32.mxu1 %vm319_vm0, %v7502_v33 }
 0x892   :  { %5464 = vmatmul.mubr.msk.f32.gmra.mrb[42].mxu1 %vm319_vm0, %v7509_v20 }
 0x893   :  { %5466 = vmatprep.mubr.msk.f32.mxu1 %vm319_vm0, %v7516_v14 }
 0x896   :  { %5467 = vmatmul.mubr.msk.f32.gmra.mrb[60].mxu1 %vm319_vm0, %v7523_v50 }
 0x897   :  { %5469 = vmatprep.mubr.msk.f32.mxu1 %vm319_vm0, %v7530_v17 }
 0x89a   :  { %5470 = vmatmul.mubr.msk.f32.gmra.mrb[62].mxu1 %vm319_vm0, %v7537_v27 }
 0x959   :  { %v5456_v51 = vpop.f32.mrb[36].mxu1 }
 0x95a   :  { %v5717_v49 = vadd.f32 %v5456_v51, %v7204_v23  ;;  %v3490_v53 = vpop.f32.mrb[37].mxu1 }
 0x95b   :  { %v5718_v60 = vadd.f32 %v3490_v53, %v7206_v29  ;;  %v8069_v53 = vld [vmem:[#allocation20_spill] sm:$0xff] }
 0x95c   :  { %v4763_v33 = vmul.f32 -1.442695, %v5717_v49 }
 0x95d   :  { %v4762_v20 = vmul.f32 -1.442695, %v5718_v60  ;;  %v5459_v14 = vpop.f32.mrb[38].mxu1  ;;  %v1769_v60 = vadd.f32 %v8069_v53, %v7248_v4  ;;  %v3639_v53 = vld [vmem:[%s7960_s12 + $0x8] sm:$0xff] }
 0x95e   :  { %6207 = vpow2.f32 %v4763_v33  ;;  %v5719_v50 = vadd.f32 %v5459_v14, %v7216_v46  ;;  %v3500_v17 = vpop.f32.mrb[39].mxu1 }
 0x95f   :  { %6209 = vpow2.f32 %v4762_v20  ;;  %v5720_v27 = vadd.f32 %v3500_v17, %v7218_v13 }
 0x960   :  { %v4765_v59 = vmul.f32 -1.442695, %v5719_v50  ;;  %v8070_v50 = vld [vmem:[#allocation22_spill] sm:$0xff] }
 0x961   :  { %v4764_v15 = vmul.f32 -1.442695, %v5720_v27  ;;  %v5462_v55 = vpop.f32.mrb[40].mxu1  ;;  %v1764_v17 = vadd.f32 %v8070_v50, %v7250_v34  ;;  %v3649_v50 = vpop.permute.xlu0 %3648 }
 0x962   :  { %6211 = vpow2.f32 %v4765_v59  ;;  %v5721_v38 = vadd.f32 %v5462_v55, %v7229_v57  ;;  %v3510_v23 = vpop.f32.mrb[41].mxu1 }
 0x963   :  { %6213 = vpow2.f32 %v4764_v15  ;;  %v5722_v29 = vadd.f32 %v3510_v23, %v7232_v10 }
 0x964   :  { %v4767_v2 = vmul.f32 -1.442695, %v5721_v38 }
 0x965   :  { %v5465_v18 = vpop.f32.mrb[42].mxu1  ;;  %v4766_v7 = vmul.f32 -1.442695, %v5722_v29 }
 0x966   :  { %v5723_v54 = vadd.f32 %v5465_v18, %v7236_v40  ;;  %v3520_v46 = vpop.f32.mrb[43].mxu1  ;;  %6215 = vpow2.f32 %v4767_v2  ;;  %v8071_v2 = vld [vmem:[#allocation24_spill] sm:$0xff] }
 0x967   :  { %v5724_v16 = vadd.f32 %v3520_v46, %v7238_v35  ;;  %6217 = vpow2.f32 %v4766_v7  ;;  %v1779_v4 = vadd.f32 %v8071_v2, %v7263_v12  ;;  %v8072_v7 = vld [vmem:[#allocation26_spill] sm:$0xff] }
 0x968   :  { %v6208_v5 = vpop.eup %6207  ;;  %v4769_v58 = vmul.f32 -1.442695, %v5723_v54  ;;  %v1774_v54 = vadd.f32 %v8072_v7, %v7266_v8 }
 0x969   :  { %v6210_v13 = vpop.eup %6209  ;;  %v3582_v61 = vadd.f32 1.0, %v6208_v5  ;;  %v5468_v19 = vpop.f32.mrb[60].mxu1  ;;  %v4768_v57 = vmul.f32 -1.442695, %v5724_v16 }
 0x96a   :  { %v3581_v62 = vadd.f32 1.0, %v6210_v13  ;;  %v3530_v21 = vpop.f32.mrb[61].mxu1  ;;  %v3606_v32 = vadd.f32 %v5468_v19, %v7243_v52 }
 0x96b   :  { %6219 = vrcp.f32 %v3582_v61  ;;  %v3605_v51 = vadd.f32 %v3530_v21, %v7246_v43 }
 0x96c   :  { %v6212_v10 = vpop.eup %6211  ;;  %6221 = vrcp.f32 %v3581_v62 }
 0x96d   :  { %v6214_v3 = vpop.eup %6213  ;;  %v3584_v22 = vadd.f32 1.0, %v6212_v10  ;;  %6223 = vpow2.f32 %v4769_v58  ;;  %v5471_v40 = vpop.f32.mrb[62].mxu1 }
 0x96e   :  { %v3583_v24 = vadd.f32 1.0, %v6214_v3  ;;  %6225 = vpow2.f32 %v4768_v57  ;;  %v3540_v35 = vpop.f32.mrb[63].mxu1  ;;  %v3608_v55 = vadd.f32 %v5471_v40, %v7252_v37 }
 0x96f   :  { %6227 = vrcp.f32 %v3584_v22  ;;  %v3607_v43 = vadd.f32 %v3540_v35, %v7254_v39 }
 0x970   :  { %6229 = vrcp.f32 %v3583_v24  ;;  %v6216_v25 = vpop.eup %6215 }
 0x971   :  { %v6218_v26 = vpop.eup %6217  ;;  %v3586_v33 = vadd.f32 1.0, %v6216_v25 }
 0x972   :  { %v3585_v52 = vadd.f32 1.0, %v6218_v26 }
 0x973   :  { %6231 = vrcp.f32 %v3586_v33  ;;  %v3641_v33 = vld [vmem:[%s7960_s12 + $0x18] sm:$0xff] }
 0x975   :  { %v6220_v1 = vpop.eup %6219 }
 0x976   :  { %v6222_v49 = vpop.eup %6221  ;;  %v3610_v20 = vmul.f32 %v6220_v1, %v3606_v32 }
 0x977   :  { %v6224_v14 = vpop.eup %6223  ;;  %v3609_v27 = vmul.f32 %v6222_v49, %v3605_v51 }
 0x978   :  { %v6226_v59 = vpop.eup %6225  ;;  %v3614_v15 = vadd.f32 %v3610_v20, %v1769_v60  ;;  %v3588_v46 = vadd.f32 1.0, %v6224_v14  ;;  %v3640_v60 = vld [vmem:[%s7960_s12 + $0x10] sm:$0xff]  ;;  %v3912_v20 = vld [vmem:[%s7957_s9] sm:$0xff]  ;;  %v3654_v14 = vpop.permute.xlu1 %3653 }
 0x979   :  { %v6228_v38 = vpop.eup %6227  ;;  %v3613_v23 = vadd.f32 %v3609_v27, %v1764_v17  ;;  %v3587_v37 = vadd.f32 1.0, %v6226_v59  ;;  %5488 = vmatprep.mubr.msk.f32.mxu1 %vm3963_vm1, %v3912_v20 }
 0x97a   :  { %v6230_v29 = vpop.eup %6229  ;;  %v3612_v18 = vmul.f32 %v6228_v38, %v3608_v55  ;;  %6233 = vtanh.f32 %v3614_v15 }
 0x97b   :  { %v3611_v34 = vmul.f32 %v6230_v29, %v3607_v43  ;;  %6235 = vtanh.f32 %v3613_v23 }
 0x97c   :  { %v3616_v16 = vadd.f32 %v3612_v18, %v1779_v4  ;;  %6237 = vrcp.f32 %v3585_v52  ;;  %v3664_v43 = vpop.permute.xlu1 %3663 }
 0x97d   :  { %v3615_v5 = vadd.f32 %v3611_v34, %v1774_v54  ;;  %v6232_v39 = vpop.eup %6231  ;;  %v3659_v54 = vpop.permute.xlu0 %3658 }
 0x97e   :  { %6239 = vtanh.f32 %v3616_v16  ;;  %v8077_v16 = vld [vmem:[#allocation13_spill] sm:$0xff] }
 0x97f   :  { %6241 = vtanh.f32 %v3615_v5  ;;  %v8078_v5 = vld [vmem:[#allocation11_spill] sm:$0xff] }
 0x980   :  { %6243 = vrcp.f32 %v3588_v46 }
 0x981   :  { %6245 = vrcp.f32 %v3587_v37 }
 0x984   :  { %v6234_v13 = vpop.eup %6233 }
 0x985   :  { %v6236_v12 = vpop.eup %6235  ;;  %v3622_v61 = vsub.f32 %v7689_v47, %v6234_v13 }
 0x986   :  { %v6238_v58 = vpop.eup %6237  ;;  %v3621_v8 = vsub.f32 %v7692_v36, %v6236_v12 }
 0x987   :  { %v3626_v62 = vmul.f32 %v6232_v39, %v3622_v61 }
 0x988   :  { %v6240_v19 = vpop.eup %6239  ;;  %v3625_v21 = vmul.f32 %v6238_v58, %v3621_v8 }
 0x989   :  { %v6242_v57 = vpop.eup %6241  ;;  %v3624_v10 = vsub.f32 %v7696_v6, %v6240_v19  ;;  %v7751_v22 = vadd.f32 %v6234_v13, %v3626_v62 }
 0x98a   :  { %v6244_v3 = vpop.eup %6243  ;;  %v3623_v40 = vsub.f32 %v7698_v0, %v6242_v57  ;;  %v7754_v35 = vadd.f32 %v6236_v12, %v3625_v21 }
 0x98b   :  { %8073 = vst [vmem:[#allocation20_spill] sm:$0xff] %v7751_v22  ;;  %v6246_v24 = vpop.eup %6245  ;;  %v3628_v25 = vmul.f32 %v6244_v3, %v3624_v10  ;;  %v8081_v10 = vld [vmem:[#allocation33_spill] sm:$0xff] }
 0x98c   :  { %8074 = vst [vmem:[#allocation22_spill] sm:$0xff] %v7754_v35  ;;  %v3627_v26 = vmul.f32 %v6246_v24, %v3623_v40  ;;  %v5639_v32 = vpack.c.bf16 %v7751_v22, %v7754_v35  ;;  %v8082_v40 = vld [vmem:[#allocation35_spill] sm:$0xff] }
 0x98d   :  { %v7758_v1 = vadd.f32 %v6240_v19, %v3628_v25  ;;  %v8079_v19 = vld [vmem:[#allocation27_spill] sm:$0xff]  ;;  %v8083_v25 = vld [vmem:[#allocation28_spill] sm:$0xff] }
 0x98e   :  { %v7760_v51 = vadd.f32 %v6242_v57, %v3627_v26  ;;  %5640 = vmatprep.subr.bf16.mxu0 %v5639_v32  ;;  %v8080_v57 = vld [vmem:[#allocation29_spill] sm:$0xff] }
 0x98f   :  { %8075 = vst [vmem:[#allocation24_spill] sm:$0xff] %v7758_v1  ;;  %5642 = vmatpush3.bf16.msra.mxu0 %v5639_v32  ;;  %v8084_v32 = vld [vmem:[#allocation30_spill] sm:$0xff] }
 0x990   :  { %8076 = vst [vmem:[#allocation26_spill] sm:$0xff] %v7760_v51  ;;  %v5643_v49 = vpack.c.bf16 %v7758_v1, %v7760_v51 }
 0x992   :  { %5644 = vmatprep.subr.bf16.mxu0 %v5643_v49 }
 0x993   :  { %5646 = vmatpush3.bf16.msra.mxu0 %v5643_v49 }
 0x996   :  { %5481 = vmatmul.mubr.msk.f32.vlgmr.msra.gmra.mrb[64].mxu0 %vm319_vm0, %v3639_v53  ;;  %v8085_v53 = vld [vmem:[#allocation34_spill] sm:$0xff] }
 0x997   :  { %5483 = vmatprep.mubr.msk.f32.mxu0 %vm319_vm0, %v3640_v60 }
 0x99a   :  { %5484 = vmatmul.mubr.msk.f32.gmra.mrb[66].mxu0 %vm319_vm0, %v3641_v33  ;;  %v8086_v33 = vld [vmem:[#allocation36_spill] sm:$0xff] }
 0xa69   :  { %v5482_v17 = vpop.f32.mrb[64].mxu0 }
 0xa6a   :  { %v7780_v27 = vadd.f32 %v5482_v17, %v3654_v14  ;;  %v3744_v59 = vpop.f32.mrb[65].mxu0  ;;  %v8087_v14 = vld [vmem:[#allocation17_spill] sm:$0xff]  ;;  %v8088_v17 = vld [vmem:[#allocation15_spill] sm:$0xff] }
 0xa6b   :  { %v7782_v15 = vadd.f32 %v3744_v59, %v3649_v50 }
 0xa6c   :  { %v3809_v55 = vmul.f32 %v7780_v27, %v7272_v56  ;;  %v3813_v38 = vmul.f32 %v7780_v27, %v7331_v9  ;;  %v3817_v52 = vmul.f32 %v7780_v27, %v7391_v11  ;;  %v3821_v23 = vmul.f32 %v7780_v27, %v7451_v63 }
 0xa6d   :  { %v5485_v29 = vpop.f32.mrb[66].mxu0  ;;  %v3808_v2 = vmul.f32 %v7782_v15, %v7274_v42  ;;  %v3812_v4 = vmul.f32 %v7782_v15, %v7334_v45  ;;  %v3816_v18 = vmul.f32 %v7782_v15, %v7394_v28  ;;  %v3820_v7 = vmul.f32 %v7782_v15, %v7454_v48 }
 0xa6e   :  { %v7800_v34 = vadd.f32 %v5485_v29, %v3664_v43  ;;  %v3754_v46 = vpop.f32.mrb[67].mxu0  ;;  %v3824_v37 = vmul.f32 %v7782_v15, %v8077_v16  ;;  %v3825_v39 = vmul.f32 %v7780_v27, %v8078_v5  ;;  %v3828_v13 = vmul.f32 %v7782_v15, %v7634_v30 }
 0xa6f   :  { %v7808_v12 = vadd.f32 %v3754_v46, %v3659_v54  ;;  %v3829_v61 = vmul.f32 %v7780_v27, %v7631_v44  ;;  %v3832_v58 = vmul.f32 %v7782_v15, %v7692_v36  ;;  %v3833_v8 = vmul.f32 %v7780_v27, %v7689_v47 }
 0xa70   :  { %v3811_v62 = vmul.f32 %v7800_v34, %v8079_v19  ;;  %v3815_v21 = vmul.f32 %v7800_v34, %v8080_v57  ;;  %v3819_v3 = vmul.f32 %v7800_v34, %v8081_v10  ;;  %v3823_v24 = vmul.f32 %v7800_v34, %v8082_v40 }
 0xa71   :  { %v3810_v26 = vmul.f32 %v7808_v12, %v8083_v25  ;;  %v3814_v49 = vmul.f32 %v7808_v12, %v8084_v32  ;;  %v3818_v60 = vmul.f32 %v7808_v12, %v8085_v53  ;;  %v3822_v20 = vmul.f32 %v7808_v12, %v8086_v33 }
 0xa72   :  { %v3826_v50 = vmul.f32 %v7808_v12, %v8087_v14  ;;  %v3827_v59 = vmul.f32 %v7800_v34, %v8088_v17  ;;  %v3830_v43 = vmul.f32 %v7808_v12, %v7640_v31  ;;  %v3831_v29 = vmul.f32 %v7800_v34, %v7638_v41 }
 0xa73   :  { %v3834_v54 = vmul.f32 %v7808_v12, %v7698_v0  ;;  %v3835_v46 = vmul.f32 %v7800_v34, %v7696_v6  ;;  %v3836_v47 = vmul.f32 %v7782_v15, %v7754_v35  ;;  %v3837_v36 = vmul.f32 %v7780_v27, %v7751_v22 }
 0xa74   :  { %v3838_v44 = vmul.f32 %v7808_v12, %v7760_v51  ;;  %v3839_v31 = vmul.f32 %v7800_v34, %v7758_v1  ;;  %v3840_v30 = vadd.f32 %v3809_v55, %v3808_v2  ;;  %v3849_v41 = vadd.f32 %v3813_v38, %v3812_v4 }
 0xa75   :  { %v3858_v17 = vadd.f32 %v3817_v52, %v3816_v18  ;;  %v3867_v14 = vadd.f32 %v3821_v23, %v3820_v7  ;;  %v3876_v0 = vadd.f32 %v3825_v39, %v3824_v37  ;;  %v3885_v5 = vadd.f32 %v3829_v61, %v3828_v13 }
 0xa76   :  { %v3841_v16 = vadd.f32 %v3840_v30, %v3810_v26  ;;  %v3850_v6 = vadd.f32 %v3849_v41, %v3814_v49  ;;  %v3894_v40 = vadd.f32 %v3833_v8, %v3832_v58  ;;  %v3903_v33 = vadd.f32 %v3837_v36, %v3836_v47 }
 0xa77   :  { %v3859_v35 = vadd.f32 %v3858_v17, %v3818_v60  ;;  %v3868_v63 = vadd.f32 %v3867_v14, %v3822_v20  ;;  %v3877_v48 = vadd.f32 %v3876_v0, %v3826_v50  ;;  %v3886_v22 = vadd.f32 %v3885_v5, %v3830_v43 }
 0xa78   :  { %v3842_v10 = vadd.f32 %v3841_v16, %v3811_v62  ;;  %v3851_v53 = vadd.f32 %v3850_v6, %v3815_v21  ;;  %v3895_v51 = vadd.f32 %v3894_v40, %v3834_v54  ;;  %v3904_v11 = vadd.f32 %v3903_v33, %v3838_v44 }
 0xa79   :  { %v3860_v28 = vadd.f32 %v3859_v35, %v3819_v3  ;;  %v3869_v1 = vadd.f32 %v3868_v63, %v3823_v24  ;;  %v3878_v55 = vadd.f32 %v3877_v48, %v3827_v59  ;;  %v3887_v38 = vadd.f32 %v3886_v22, %v3831_v29 }
 0xa7a   :  { %v3843_v52 = vrot.slane %v3842_v10, 4  ;;  %v3852_v23 = vrot.slane %v3851_v53, 4  ;;  %v3896_v2 = vadd.f32 %v3895_v51, %v3835_v46  ;;  %v3905_v4 = vadd.f32 %v3904_v11, %v3839_v31 }
 0xa7b   :  { %v3861_v30 = vrot.slane %v3860_v28, 4  ;;  %v3870_v41 = vrot.slane %v3869_v1, 4  ;;  %v3879_v18 = vrot.slane %v3878_v55, 4  ;;  %v3888_v47 = vrot.slane %v3887_v38, 4 }
 0xa7c   :  { %v3844_v36 = vadd.f32 %v3843_v52, %v3842_v10  ;;  %v3853_v7 = vadd.f32 %v3852_v23, %v3851_v53  ;;  %v3897_v0 = vrot.slane %v3896_v2, 4  ;;  %v3906_v37 = vrot.slane %v3905_v4, 4 }
 0xa7d   :  { %v3862_v16 = vadd.f32 %v3861_v30, %v3860_v28  ;;  %v3871_v6 = vadd.f32 %v3870_v41, %v3869_v1  ;;  %v3880_v5 = vadd.f32 %v3879_v18, %v3878_v55  ;;  %v3889_v44 = vadd.f32 %v3888_v47, %v3887_v38 }
 0xa7e   :  { %v3845_v35 = vrot.slane %v3844_v36, 2  ;;  %v3854_v63 = vrot.slane %v3853_v7, 2  ;;  %v3898_v48 = vadd.f32 %v3897_v0, %v3896_v2  ;;  %v3907_v22 = vadd.f32 %v3906_v37, %v3905_v4 }
 0xa7f   :  { %v3863_v39 = vrot.slane %v3862_v16, 2  ;;  %v3872_v13 = vrot.slane %v3871_v6, 2  ;;  %v3881_v51 = vrot.slane %v3880_v5, 2  ;;  %v3890_v11 = vrot.slane %v3889_v44, 2 }
 0xa80   :  { %v3846_v31 = vadd.f32 %v3845_v35, %v3844_v36  ;;  %v3855_v61 = vadd.f32 %v3854_v63, %v3853_v7  ;;  %v3899_v58 = vrot.slane %v3898_v48, 2  ;;  %v3908_v8 = vrot.slane %v3907_v22, 2  ;;  %v3919_v35 = vpop.permute.xlu0 %3918 }
 0xa81   :  { %v3864_v62 = vadd.f32 %v3863_v39, %v3862_v16  ;;  %v3873_v21 = vadd.f32 %v3872_v13, %v3871_v6  ;;  %v3882_v10 = vadd.f32 %v3881_v51, %v3880_v5  ;;  %v3891_v3 = vadd.f32 %v3890_v11, %v3889_v44  ;;  %v3924_v44 = vpop.permute.xlu1 %3923 }
 0xa82   :  { %v3847_v28 = vrot.slane %v3846_v31, 1  ;;  %v3856_v1 = vrot.slane %v3855_v61, 1  ;;  %v3900_v40 = vadd.f32 %v3899_v58, %v3898_v48  ;;  %v3909_v24 = vadd.f32 %v3908_v8, %v3907_v22 }
 0xa83   :  { %v3865_v26 = vrot.slane %v3864_v62, 1  ;;  %v3874_v49 = vrot.slane %v3873_v21, 1  ;;  %v3883_v53 = vrot.slane %v3882_v10, 1  ;;  %v3892_v20 = vrot.slane %v3891_v3, 1 }
 0xa84   :  { %v3848_v60 = vadd.f32 %v3847_v28, %v3846_v31  ;;  %v3857_v33 = vadd.f32 %v3856_v1, %v3855_v61  ;;  %v3901_v50 = vrot.slane %v3900_v40, 1  ;;  %v3910_v59 = vrot.slane %v3909_v24, 1  ;;  %v3929_v31 = vpop.permute.xlu0 %3928 }
 0xa85   :  { %v3866_v14 = vadd.f32 %v3865_v26, %v3864_v62  ;;  %v3875_v17 = vadd.f32 %v3874_v49, %v3873_v21  ;;  %v3763_v29 = vadd.f32 %v7780_v27, %v7782_v15  ;;  %v3884_v54 = vadd.f32 %v3883_v53, %v3882_v10  ;;  %v3913_v27 = vld [vmem:[%s7957_s9 + $0x8] sm:$0xff]  ;;  %v3914_v15 = vld [vmem:[%s7957_s9 + $0x10] sm:$0xff]  ;;  %v3934_v51 = vpop.permute.xlu1 %3933 }
 0xa86   :  { %v3949_v43 = vsel %vm3948_vm2, %v3857_v33, %v3848_v60  ;;  %v3893_v55 = vadd.f32 %v3892_v20, %v3891_v3  ;;  %v3902_v23 = vadd.f32 %v3901_v50, %v3900_v40  ;;  %v3911_v4 = vadd.f32 %v3910_v59, %v3909_v24 }
 0xa87   :  { %v3951_v46 = vsel %vm3950_vm3, %v3866_v14, %v3949_v43  ;;  %v3764_v52 = vadd.f32 %v3763_v29, %v7808_v12  ;;  %v6296_v12 = vmov 0.0|0.0   ;;  %v8089_v36 = vmov 0.0  }
 0xa88   :  { %v3953_v38 = vsel %vm3952_vm4, %v3875_v17, %v3951_v46  ;;  %5647 = vmatprep.subr.bf16.mxu0 %v6296_v12  ;;  %5502 = vmatprep.mubr.msk.f32.mxu0 %vm6297_vm9, %v8089_v36 }
 0xa89   :  { %v3955_v2 = vsel %vm3954_vm5, %v3884_v54, %v3953_v38  ;;  %v3765_v41 = vadd.f32 %v3764_v52, %v7800_v34  ;;  %v3915_v34 = vld [vmem:[%s7957_s9 + $0x18] sm:$0xff] }
 0xa8a   :  { %v3957_v30 = vsel %vm3956_vm6, %v3893_v55, %v3955_v2 }
 0xa8b   :  { %v3959_v18 = vsel %vm3958_vm7, %v3902_v23, %v3957_v30  ;;  %v3766_v7 = vrot.slane %v3765_v41, 4 }
 0xa8c   :  { %v3961_v47 = vsel %vm3960_vm8, %v3911_v4, %v3959_v18 }
 0xa8d   :  { %5486 = vmatprep.subr.mxu1 %v3961_v47  ;;  %v3767_v0 = vadd.f32 %v3766_v7, %v3765_v41 }
 0xa8e   :  { %5487 = vmatpush3.msra.mxu1 %v3961_v47 }
 0xa8f   :  { %5489 = vmatmul.mubr.msk.f32.vlgmr.msra.gmra.mrb[64].mxu1 %vm3963_vm1, %v3913_v27  ;;  %v3768_v37 = vrot.slane %v3767_v0, 2 }
 0xa90   :  { %5491 = vmatprep.mubr.msk.f32.mxu1 %vm3963_vm1, %v3914_v15 }
 0xa91   :  { %v3769_v16 = vadd.f32 %v3768_v37, %v3767_v0 }
 0xa93   :  { %5492 = vmatmul.mubr.msk.f32.gmra.mrb[66].mxu1 %vm3963_vm1, %v3915_v34  ;;  %v3770_v6 = vrot.slane %v3769_v16, 1 }
 0xa95   :  { %v3771_v5 = vadd.f32 %v3770_v6, %v3769_v16 }
 0xa97   :  { %v3937_v63 = vmul.f32 %v3924_v44, %v3771_v5  ;;  %v3936_v22 = vmul.f32 %v3919_v35, %v3771_v5  ;;  %v3939_v61 = vmul.f32 %v3934_v51, %v3771_v5  ;;  %v3938_v62 = vmul.f32 %v3929_v31, %v3771_v5 }
 0xb62   :  { %v5490_v48 = vpop.f32.mrb[64].mxu1 }
 0xb63   :  { %v4048_v39 = vadd.f32 %v5490_v48, %v3937_v63  ;;  %v4042_v13 = vpop.f32.mrb[65].mxu1 }
 0xb64   :  { %v4043_v11 = vadd.f32 %v4042_v13, %v3936_v22 }
 0xb66   :  { %v4061_v58 = vmax.f32 %v4043_v11, %v4048_v39  ;;  %v5493_v8 = vpop.f32.mrb[66].mxu1 }
 0xb67   :  { %v4058_v21 = vadd.f32 %v5493_v8, %v3939_v61  ;;  %v4052_v10 = vpop.f32.mrb[67].mxu1 }
 0xb68   :  { %v4053_v3 = vadd.f32 %v4052_v10, %v3938_v62 }
 0xb6a   :  { %v4062_v28 = vmax.f32 %v4053_v3, %v4058_v21 }
 0xb6c   :  { %v4063_v1 = vmax.f32 %v4061_v58, %v4062_v28 }
 0xb6e   :  { %v4064_v40 = vrot.slane %v4063_v1, 4 }
 0xb70   :  { %v4065_v24 = vmax.f32 %v4063_v1, %v4064_v40 }
 0xb72   :  { %v4066_v26 = vrot.slane %v4065_v24, 2 }
 0xb74   :  { %v4067_v49 = vmax.f32 %v4065_v24, %v4066_v26 }
 0xb76   :  { %v4068_v53 = vrot.slane %v4067_v49, 1 }
 0xb78   :  { %v4069_v60 = vmax.f32 %v4067_v49, %v4068_v53 }
 0xb7a   :  { %v4070_v33 = vsub.f32 %v4043_v11, %v4069_v60  ;;  %v4071_v20 = vsub.f32 %v4048_v39, %v4069_v60  ;;  %v4072_v14 = vsub.f32 %v4053_v3, %v4069_v60  ;;  %v4073_v50 = vsub.f32 %v4058_v21, %v4069_v60  ;;  %v4096_v11 = vld [vmem:[%s7958_s10] sm:$0xff] }
 0xb7c   :  { %v4074_v17 = vmul.f32 1.442695, %v4070_v33  ;;  %v4076_v59 = vmul.f32 1.442695, %v4071_v20  ;;  %v4078_v43 = vmul.f32 1.442695, %v4072_v14 }
 0xb7d   :  { %v4080_v29 = vmul.f32 1.442695, %v4073_v50  ;;  %v8091_v20 = vld [vmem:[#allocation8_spill] sm:$0xff] }
 0xb7e   :  { %6247 = vpow2.f32 %v4074_v17 }
 0xb7f   :  { %6249 = vpow2.f32 %v4076_v59 }
 0xb80   :  { %6251 = vpow2.f32 %v4078_v43 }
 0xb81   :  { %6253 = vpow2.f32 %v4080_v29 }
 0xb88   :  { %v6248_v54 = vpop.eup %6247 }
 0xb89   :  { %v6250_v46 = vpop.eup %6249 }
 0xb8a   :  { %v4082_v55 = vadd.f32 %v6250_v46, %v6248_v54  ;;  %v6252_v38 = vpop.eup %6251 }
 0xb8b   :  { %v6254_v23 = vpop.eup %6253 }
 0xb8c   :  { %v4083_v52 = vadd.f32 %v6252_v38, %v4082_v55 }
 0xb8e   :  { %v4084_v2 = vadd.f32 %v6254_v23, %v4083_v52 }
 0xb90   :  { %v4085_v4 = vrot.slane %v4084_v2, 4 }
 0xb92   :  { %v4086_v30 = vadd.f32 %v4085_v4, %v4084_v2 }
 0xb94   :  { %v4087_v41 = vrot.slane %v4086_v30, 2 }
 0xb96   :  { %v4088_v18 = vadd.f32 %v4087_v41, %v4086_v30 }
 0xb98   :  { %v4089_v47 = vrot.slane %v4088_v18, 1 }
 0xb9a   :  { %v4090_v27 = vadd.f32 %v4089_v47, %v4088_v18 }
 0xb9c   :  { %6255 = vrcp.f32 %v4090_v27 }
 0xba6   :  { %v6256_v15 = vpop.eup %6255 }
 0xba7   :  { %v4092_v34 = vmul.f32 %v6256_v15, %v6248_v54  ;;  %v4093_v36 = vmul.f32 %v6256_v15, %v6250_v46  ;;  %v4094_v7 = vmul.f32 %v6256_v15, %v6252_v38  ;;  %v4095_v0 = vmul.f32 %v6256_v15, %v6254_v23 }
 0xba9   :  { %v5648_v37 = vpack.c.bf16 %v4093_v36, %v4092_v34  ;;  %v4320_v16 = vmul.f32 %v4092_v34, %v3919_v35  ;;  %v4321_v6 = vmul.f32 %v4093_v36, %v3924_v44  ;;  %v5651_v5 = vpack.c.bf16 %v4095_v0, %v4094_v7  ;;  %v4337_v44 = vld [vmem:[%s7962_s14] sm:$0xff] }
 0xbaa   :  { %v4322_v48 = vmul.f32 %v4094_v7, %v3929_v31  ;;  %v4323_v22 = vmul.f32 %v4095_v0, %v3934_v51  ;;  %5513 = vmatprep.mubr.msk.f32.mxu1 %vm319_vm0, %v4337_v44  ;;  %v6298_v35 = vmov 1966171168   ;;  %v8090_v51 = vld [vmem:[#allocation7_spill] sm:$0xff]  ;;  %v8095_v7 = vld [vmem:[#allocation33_spill] sm:$0xff] }
 0xbab   :  { %5649 = vmatpush3.bf16.msra.mxu0 %v5648_v37  ;;  %v4324_v63 = vadd.f32 %v4321_v6, %v4320_v16  ;;  %v4173_v31 = vunpack.c.l.s4 %v6298_v35  ;;  %v8099_v35 = vld [vmem:[#allocation35_spill] sm:$0xff] }
 0xbac   :  { %5650 = vmatprep.subr.bf16.mxu0 %v6296_v12 }
 0xbad   :  { %v4325_v39 = vadd.f32 %v4324_v63, %v4322_v48  ;;  %v4174_v61 = vunpack.c.0.s8 %v4173_v31 }
 0xbaf   :  { %5652 = vmatpush3.bf16.msra.mxu0 %v5651_v5  ;;  %v4326_v13 = vadd.f32 %v4325_v39, %v4323_v22  ;;  %v4177_v58 = vsub.s32 %v4174_v61, %v8090_v51  ;;  %v8096_v5 = vld [vmem:[#allocation10_spill] sm:$0xff]  ;;  %v8100_v61 = vld [vmem:[#allocation13_spill] sm:$0xff] }
 0xbb1   :  { %v4327_v12 = vrot.slane %v4326_v13, 4 }
 0xbb2   :  { %5503 = vmatmul.mubr.msk.f32.vlgmr.msra.gmra.mrb[68].mxu0 %vm319_vm0, %v4096_v11  ;;  %v8098_v11 = vld [vmem:[#allocation36_spill] sm:$0xff] }
 0xbb3   :  { %v4328_v8 = vadd.f32 %v4327_v12, %v4326_v13 }
 0xbb5   :  { %v4329_v28 = vrot.slane %v4328_v8, 2 }
 0xbb7   :  { %v7880_v60 = vadd.f32 %v4329_v28, %v4328_v8 }
 0xbb9   :  { %v4331_v54 = vrot.slane %v7880_v60, 1 }
 0xc85   :  { %v4166_v62 = vpop.f32.mrb[68].mxu0 }
 0xc86   :  { %v4171_v21 = vcombine.high %v4166_v62, %v4166_v62  ;;  %v4178_v10 = vrot.slane %v4166_v62, %v4177_v58  ;;  %v5504_v3 = vpop.f32.mrb[69].mxu0  ;;  %v8102_v62 = vld [vmem:[#allocation17_spill] sm:$0xff] }
 0xc88   :  { %v4185_v1 = vrot.slane %v4171_v21, %v4177_v58  ;;  %v4186_v40 = vcombine.high %v4178_v10, %v4178_v10  ;;  %v4194_v24 = vrot.slane %v4178_v10, %v4177_v58  ;;  %v8103_v10 = vld [vmem:[#allocation15_spill] sm:$0xff] }
 0xc8a   :  { %v4187_v26 = vcombine.high %v4185_v1, %v4185_v1  ;;  %v4208_v49 = vrot.slane %v4186_v40, %v4177_v58  ;;  %v4216_v53 = vcombine.high %v4194_v24, %v4194_v24  ;;  %v4201_v33 = vrot.slane %v4185_v1, %v4177_v58  ;;  %v8104_v1 = vld [vmem:[#allocation14_spill] sm:$0xff] }
 0xc8b   :  { %v4223_v59 = vrot.slane %v4194_v24, %v8091_v20 }
 0xc8c   :  { %v4227_v14 = vrot.slane %v4208_v49, %v8091_v20  ;;  %v4215_v50 = vrot.slane %v4187_v26, %v4177_v58  ;;  %v4218_v17 = vcombine.high %v4208_v49, %v4208_v49  ;;  %v4231_v43 = vrot.slane %v4216_v53, %v8091_v20  ;;  %v8101_v58 = vld [vmem:[#allocation11_spill] sm:$0xff]  ;;  %v8105_v53 = vld [vmem:[#allocation12_spill] sm:$0xff] }
 0xc8d   :  { %v4217_v46 = vcombine.high %v4201_v33, %v4201_v33  ;;  %v4239_v4 = vrot.slane %v4201_v33, %v8091_v20  ;;  %v4260_v30 = vmul.f32 %v4223_v59, %v7274_v42  ;;  %v4262_v18 = vmul.f32 %v4223_v59, %v8083_v25 }
 0xc8e   :  { %v4264_v29 = vmul.f32 %v4227_v14, %v7334_v45  ;;  %v4265_v55 = vmul.f32 %v4227_v14, %v7331_v9  ;;  %v4266_v38 = vmul.f32 %v4227_v14, %v8084_v32  ;;  %v4267_v52 = vmul.f32 %v4227_v14, %v8080_v57  ;;  %v8092_v9 = vld [vmem:[#allocation32_spill] sm:$0xff]  ;;  %v8093_v32 = vld [vmem:[#allocation31_spill] sm:$0xff]  ;;  %v8094_v57 = vld [vmem:[#allocation34_spill] sm:$0xff] }
 0xc8f   :  { %v4219_v23 = vcombine.high %v4215_v50, %v4215_v50  ;;  %v4235_v2 = vrot.slane %v4218_v17, %v8091_v20  ;;  %v4243_v41 = vrot.slane %v4215_v50, %v8091_v20  ;;  %v4261_v45 = vmul.f32 %v4223_v59, %v7272_v56  ;;  %v8107_v17 = vld [vmem:[#allocation18_spill] sm:$0xff] }
 0xc90   :  { %v4263_v47 = vmul.f32 %v4223_v59, %v8079_v19  ;;  %v4268_v27 = vmul.f32 %v4231_v43, %v8092_v9  ;;  %v4269_v15 = vmul.f32 %v4231_v43, %v8093_v32  ;;  %v4270_v34 = vmul.f32 %v4231_v43, %v8094_v57  ;;  %v8097_v19 = vld [vmem:[#allocation9_spill] sm:$0xff]  ;;  %v8112_v9 = vld [vmem:[#allocation23_spill] sm:$0xff]  ;;  %v8113_v57 = vld [vmem:[#allocation20_spill] sm:$0xff] }
 0xc91   :  { %v4292_v36 = vadd.f32 %v4264_v29, %v4260_v30  ;;  %v4271_v0 = vmul.f32 %v4231_v43, %v8095_v7  ;;  %v4299_v37 = vadd.f32 %v4265_v55, %v4261_v45  ;;  %v4306_v16 = vadd.f32 %v4266_v38, %v4262_v18  ;;  %v8108_v29 = vld [vmem:[#allocation16_spill] sm:$0xff]  ;;  %v8111_v45 = vld [vmem:[#allocation25_spill] sm:$0xff] }
 0xc92   :  { %v4313_v42 = vadd.f32 %v4267_v52, %v4263_v47  ;;  %v4247_v6 = vrot.slane %v4217_v46, %v8091_v20  ;;  %v4251_v56 = vrot.slane %v4219_v23, %v8091_v20  ;;  %v4272_v25 = vmul.f32 %v4235_v2, %v8096_v5  ;;  %v8106_v20 = vld [vmem:[#allocation21_spill] sm:$0xff]  ;;  %v8109_v52 = vld [vmem:[#allocation19_spill] sm:$0xff] }
 0xc93   :  { %v4293_v63 = vadd.f32 %v4292_v36, %v4268_v27  ;;  %v4273_v48 = vmul.f32 %v4235_v2, %v8097_v19  ;;  %v4300_v22 = vadd.f32 %v4299_v37, %v4269_v15  ;;  %v4307_v39 = vadd.f32 %v4306_v16, %v4270_v34  ;;  %v8115_v16 = vld [vmem:[#allocation24_spill] sm:$0xff] }
 0xc94   :  { %v4314_v13 = vadd.f32 %v4313_v42, %v4271_v0  ;;  %v4274_v44 = vmul.f32 %v4235_v2, %v8098_v11  ;;  %v4275_v31 = vmul.f32 %v4235_v2, %v8099_v35  ;;  %v4276_v12 = vmul.f32 %v4239_v4, %v8100_v61  ;;  %v8110_v2 = vld [vmem:[#allocation22_spill] sm:$0xff]  ;;  %v4353_v35 = vpop.permute.xlu1 %4352 }
 0xc95   :  { %v4294_v51 = vadd.f32 %v4293_v63, %v4272_v25  ;;  %v4277_v8 = vmul.f32 %v4239_v4, %v8101_v58  ;;  %v4278_v21 = vmul.f32 %v4239_v4, %v8102_v62  ;;  %v4279_v3 = vmul.f32 %v4239_v4, %v8103_v10 }
 0xc96   :  { %v4301_v28 = vadd.f32 %v4300_v22, %v4273_v48  ;;  %v4280_v40 = vmul.f32 %v4243_v41, %v8104_v1  ;;  %v4308_v26 = vadd.f32 %v4307_v39, %v4274_v44  ;;  %v4315_v49 = vadd.f32 %v4314_v13, %v4275_v31  ;;  %v4348_v31 = vpop.permute.xlu0 %4347 }
 0xc97   :  { %v4295_v24 = vadd.f32 %v4294_v51, %v4276_v12  ;;  %v4281_v33 = vmul.f32 %v4243_v41, %v8105_v53  ;;  %v4284_v14 = vmul.f32 %v4247_v6, %v8106_v20  ;;  %v4282_v59 = vmul.f32 %v4243_v41, %v8107_v17 }
 0xc98   :  { %v4302_v50 = vadd.f32 %v4301_v28, %v4277_v8  ;;  %v4283_v46 = vmul.f32 %v4243_v41, %v8108_v29  ;;  %v4309_v55 = vadd.f32 %v4308_v26, %v4278_v21  ;;  %v4316_v38 = vadd.f32 %v4315_v49, %v4279_v3  ;;  %v8114_v41 = vld [vmem:[#allocation26_spill] sm:$0xff]  ;;  %v4363_v8 = vpop.permute.xlu1 %4362 }
 0xc99   :  { %v4296_v43 = vadd.f32 %v4295_v24, %v4280_v40  ;;  %v4285_v23 = vmul.f32 %v4247_v6, %v8109_v52  ;;  %v4288_v4 = vmul.f32 %v4251_v56, %v8110_v2  ;;  %v4286_v18 = vmul.f32 %v4247_v6, %v8111_v45 }
 0xc9a   :  { %v4303_v30 = vadd.f32 %v4302_v50, %v4281_v33  ;;  %v4287_v27 = vmul.f32 %v4247_v6, %v8112_v9  ;;  %v4310_v32 = vadd.f32 %v4309_v55, %v4282_v59  ;;  %v4317_v15 = vadd.f32 %v4316_v38, %v4283_v46  ;;  %v4358_v21 = vpop.permute.xlu0 %4357 }
 0xc9b   :  { %v4297_v47 = vadd.f32 %v4296_v43, %v4284_v14  ;;  %v4289_v34 = vmul.f32 %v4251_v56, %v8113_v57  ;;  %v4332_v7 = vadd.f32 %v4331_v54, %v7880_v60  ;;  %v4290_v0 = vmul.f32 %v4251_v56, %v8114_v41  ;;  %v4338_v60 = vld [vmem:[%s7962_s14 + $0x8] sm:$0xff]  ;;  %v4339_v54 = vld [vmem:[%s7962_s14 + $0x10] sm:$0xff] }
 0xc9c   :  { %v4304_v36 = vadd.f32 %v4303_v30, %v4285_v23  ;;  %v4291_v42 = vmul.f32 %v4251_v56, %v8115_v16  ;;  %v4311_v5 = vadd.f32 %v4310_v32, %v4286_v18  ;;  %v4318_v25 = vadd.f32 %v4317_v15, %v4287_v27  ;;  %v4340_v56 = vld [vmem:[%s7962_s14 + $0x18] sm:$0xff]  ;;  %s6270_s14 = scalar_lea.vmem %s4472_s18, 512 }
 0xc9d   :  { %v4298_v37 = vadd.f32 %v4297_v47, %v4288_v4  ;;  %p6271_p0 = scmp.ne.s32.totalorder %s4472_s18, %s6270_s14  ;;  %p6276_p2 = scmp.lt.s32.totalorder %s6270_s14, %s6270_s14 }
 0xc9e   :  { %v4305_v63 = vadd.f32 %v4304_v36, %v4289_v34  ;;  %v4312_v48 = vadd.f32 %v4311_v5, %v4290_v0  ;;  %v4319_v22 = vadd.f32 %v4318_v25, %v4291_v42 }
 0xc9f   :  { %v4333_v19 = vadd.f32 %v4332_v7, %v4298_v37  ;;  %p6277_p3 = por %p6276_p2, %p6275_p1 }
 0xca0   :  { %v4334_v39 = vadd.f32 %v4332_v7, %v4305_v63  ;;  %v4335_v6 = vadd.f32 %v4332_v7, %v4312_v48  ;;  %v4336_v13 = vadd.f32 %v4332_v7, %v4319_v22 }
 0xca1   :  { %p6278_p4 = pnand %p6277_p3, %p6271_p0 }
 0xca2   :  { %v5653_v11 = vpack.c.bf16 %v4334_v39, %v4333_v19  ;;  %v5657_v44 = vpack.c.bf16 %v4336_v13, %v4335_v6 }
 0xca4   :  { %5654 = vmatprep.subr.bf16.mxu1 %v5653_v11 }
 0xca5   :  { %5656 = vmatpush3.bf16.msra.mxu1 %v5653_v11 }
 0xca6   :  { %5658 = vmatprep.subr.bf16.mxu1 %v5657_v44 }
 0xca9   :  { %5660 = vmatpush3.bf16.msra.mxu1 %v5657_v44 }
 0xcac   :  { %5514 = vmatmul.mubr.msk.f32.vlgmr.msra.gmra.mrb[68].mxu1 %vm319_vm0, %v4338_v60 }
 0xcad   :  { %5516 = vmatprep.mubr.msk.f32.mxu1 %vm319_vm0, %v4339_v54 }
 0xcb0   :  { %5517 = vmatmul.mubr.msk.f32.gmra.mrb[70].mxu1 %vm319_vm0, %v4340_v56 }
 0xd7f   :  { %v5515_v61 = vpop.f32.mrb[68].mxu1 }
 0xd80   :  { %v4449_v12 = vadd.f32 %v5515_v61, %v4353_v35  ;;  %v4443_v51 = vpop.f32.mrb[69].mxu1 }
 0xd81   :  { %v4444_v58 = vadd.f32 %v4443_v51, %v4348_v31 }
 0xd82   :  { %4463 = vst [vmem:[#allocation4 + $0x8] sm:$0xff] %v4449_v12 }
 0xd83   :  { %4462 = vst [vmem:[#allocation4] sm:$0xff] %v4444_v58  ;;  %v5518_v62 = vpop.f32.mrb[70].mxu1 }
 0xd84   :  { %v4459_v10 = vadd.f32 %v5518_v62, %v4363_v8  ;;  %v4453_v3 = vpop.f32.mrb[71].mxu1 }
 0xd85   :  { %v4454_v28 = vadd.f32 %v4453_v3, %v4358_v21 }
 0xd86   :  { %4465 = vst [vmem:[#allocation4 + $0x18] sm:$0xff] %v4459_v10 }
 0xd87   :  { %4464 = vst [vmem:[#allocation4 + $0x10] sm:$0xff] %v4454_v28 }
 0xd88   :  { %6281 = shalt.err (!%p6278_p4)
}
 0xd89   :  { %s6282_s8 = scalar_lea.hbm %s7964_s16, 512 }
 0xd8a   :  { %p6283_p5 = scmp.ne.s32.totalorder %s7964_s16, %s6282_s8  ;;  %p6286_p6 = scmp.lt.u32.totalorder %s6282_s8, %s7964_s16 }
 0xd8c   :  { %p6288_p7 = pnand %p6286_p6, %p6283_p5 }
 0xd8e   :  { %6291 = shalt.err (!%p6288_p7)
}
 0xd8f   :  { %s6300_s20 = smov 128   ;;  %s6301_s21 = smov 8  }
 0xd90   :  { %4477 = dma.vmem_to_hbm [thread:$0]  %s4472_s18, 512, %s7964_s16, [#allocation5], %s6300_s20, %s6300_s20, %s6301_s21  }
 0xd91   :  { %6292 = dma.done.wait [#allocation5], 512  }
 0xd92   :  { %6293 = vsyncadd [#allocation5], 4294966784 }
 0xd93   :  { %4481 = vsyncpa [#allocation5], 1 }

</bundles_post_ra>
